<compile_context>
chip_gen: v7x
topology: tpu7x:2x2x1
jax: 0.10.0
libtpu: 0.0.40
codegen_flags: <defaults>
</compile_context>

<pallas_src>
import functools

import jax
import jax.numpy as jnp
from jax import lax
from jax.experimental import pallas as pl
from jax.experimental.pallas import tpu as pltpu


def _sigmoid(x):
    # Stable sigmoid: exp() only of non-positive values, reciprocal on the EUP.
    z = jnp.exp(-jnp.abs(x))
    r = pl.reciprocal(1.0 + z, approx=True)
    return jnp.where(x >= 0, r, z * r)


def _swish(x):
    return x * _sigmoid(x)


def _bn_swish(v, gamma, beta, count, eps=1e-5):
    """Training-mode BatchNorm2d + swish on a (C, N*spatial) slab.

    Channels sit on sublanes, batch*spatial on lanes, so batch statistics are
    one fused cross-lane sum / sum-of-squares pass and gamma/beta (shape
    (C, 1)) broadcast as cheap lane-broadcasts.
    """
    inv = 1.0 / count
    s = jnp.sum(v, axis=1, keepdims=True)            # (C, 1)
    ss = jnp.sum(v * v, axis=1, keepdims=True)       # (C, 1)
    mean = s * inv
    var = jnp.maximum(ss * inv - mean * mean, 0.0)   # biased variance (train)
    y = (v - mean) * (lax.rsqrt(var + eps) * gamma) + beta
    return _swish(y)


def _mbconv_kernel(*refs, H, W, K, padding, stride, squeeze):
    if squeeze:
        (x_ref, w_exp_ref, bn1_ref, w_dw_ref, dwm_ref,
         w_se1_ref, w_se2_ref, w_pw_ref, bn3_ref,
         out_ref, pad_ref, dw_ref) = refs
    else:
        (x_ref, w_exp_ref, bn1_ref, w_dw_ref, dwm_ref,
         w_pw_ref, bn3_ref, out_ref, pad_ref, dw_ref) = refs
        w_se1_ref = w_se2_ref = None

    N = x_ref.shape[0]
    Chid = w_exp_ref.shape[0]
    HW = H * W
    Hp, Wp = H + 2 * padding, W + 2 * padding
    Ho = (Hp - K) // stride + 1
    Wo = (Wp - K) // stride + 1
    HWo = Ho * Wo
    Lp = Hp * Wp + (K - 1)        # per-sample flat padded length (+ tap tail)
    f32 = jnp.float32

    # ---- 1x1 expansion conv: ONE bf16 MXU matmul over the whole batch ------
    # Batch is concatenated along the lane axis: columns [n*HW, (n+1)*HW).
    xcat = jnp.concatenate([x_ref[n] for n in range(N)],
                           axis=1).astype(jnp.bfloat16)          # (Cin, N*HW)
    h = jnp.dot(w_exp_ref[...], xcat,
                preferred_element_type=f32)                      # (Chid, N*HW)

    # ---- BN1 (training batch stats over N,H,W) + swish ---------------------
    h = _bn_swish(h, bn1_ref[:, 0:1], bn1_ref[:, 1:2], float(N * HW))

    # ---- depthwise KxK conv on a flat zero-padded scratch ------------------
    # pad_ref holds, per sample, the padded image flattened row-major
    # (index r*Wp + c) plus a (K-1) zero tail so every tap slice stays in
    # bounds; samples are back to back along the lane axis.
    pad_ref[...] = jnp.zeros_like(pad_ref)    # one cheap store zeroes the halo
    for n in range(N):
        for y in range(H):
            dst = n * Lp + (y + padding) * Wp + padding
            pad_ref[:, dst:dst + W] = h[:, n * HW + y * W:n * HW + (y + 1) * W]

    w_dw = w_dw_ref[...]                                         # (Chid, K*K)
    if stride == 1:
        # Each tap is one flat lane-offset slice covering the whole batch (the
        # per-sample zero tail keeps every tap slice in bounds).  Columns
        # x in [Wo, Wp) of each output row are scratch slots dropped by the
        # compaction below and never enter any statistic.
        La = (N - 1) * Lp + Ho * Wp
        acc = jnp.zeros((Chid, La), f32)
        for t in range(K * K):
            dy, dx = t // K, t % K
            off = dy * Wp + dx
            acc = acc + pad_ref[:, off:off + La] * w_dw[:, t:t + 1]
        if Wo == Wp and Lp == Ho * Wp:                           # K == 1, pad == 0
            dw_ref[...] = acc
        else:
            for n in range(N):
                for y in range(Ho):
                    src = n * Lp + y * Wp
                    dw_ref[:, n * HWo + y * Wo:n * HWo + (y + 1) * Wo] = (
                        acc[:, src:src + Wo])
    else:
        # TODO(synk): stride > 1 path is unexercised at these test shapes; the
        # per-row strided lane reads could be replaced by a one-time strided
        # repack if this path ever becomes hot.
        for n in range(N):
            for y in range(Ho):
                row = jnp.zeros((Chid, Wo), f32)
                for t in range(K * K):
                    dy, dx = t // K, t % K
                    base = n * Lp + (y * stride + dy) * Wp + dx
                    row = row + (pad_ref[:, pl.ds(base, Wo, stride=stride)]
                                 * w_dw[:, t:t + 1])
                dw_ref[:, n * HWo + y * Wo:n * HWo + (y + 1) * Wo] = row

    # depthwise bias (mathematically cancels under training-mode BN, kept for
    # fidelity with the module) + BN2 + swish
    d = dw_ref[...] + dwm_ref[:, 0:1]                            # (Chid, N*HWo)
    d = _bn_swish(d, dwm_ref[:, 1:2], dwm_ref[:, 2:3], float(N * HWo))

    # ---- squeeze & excitation (tiny: kept on the VPU, no MXU round trip) ---
    if squeeze:
        rd = w_se1_ref.shape[1]
        pool = jnp.concatenate(
            [jnp.sum(d[:, n * HWo:(n + 1) * HWo], axis=1, keepdims=True)
             for n in range(N)], axis=1) * (1.0 / HWo)           # (Chid, N)
        w1 = w_se1_ref[...]                          # (Chid, rd) = fc1.weight^T
        w2 = w_se2_ref[...]                          # (Chid, rd) = fc2.weight
        # fc1 (no bias) + swish:   z1[r, n] = sum_c w1[c, r] * pool[c, n]
        z1 = jnp.concatenate(
            [jnp.sum(w1[:, r:r + 1] * pool, axis=0, keepdims=True)
             for r in range(rd)], axis=0)                        # (rd, N)
        z1 = _swish(z1)
        # fc2 (no bias) + sigmoid: z2[c, n] = sum_r w2[c, r] * z1[r, n]
        z2 = jnp.zeros((Chid, N), f32)
        for r in range(rd):
            z2 = z2 + w2[:, r:r + 1] * z1[r:r + 1, :]
        gate = _sigmoid(z2)                                      # (Chid, N)
        d = jnp.concatenate(
            [d[:, n * HWo:(n + 1) * HWo] * gate[:, n:n + 1] for n in range(N)],
            axis=1)

    # ---- 1x1 pointwise conv (ONE bf16 MXU matmul) + BN3 + swish ------------
    p = jnp.dot(w_pw_ref[...], d.astype(jnp.bfloat16),
                preferred_element_type=f32)                      # (Cout, N*HWo)
    o = _bn_swish(p, bn3_ref[:, 0:1], bn3_ref[:, 1:2], float(N * HWo))

    # Lane-dense (HWo-wide) store, one per sample.
    for n in range(N):
        out_ref[n] = o[:, n * HWo:(n + 1) * HWo]


def mbconv_forward(x_nchw, params, *, kernel_size, padding, stride, squeeze):
    """x_nchw: (N, Cin, H, W) float32 (PyTorch layout). Returns NCHW output.

    The kernel consumes/produces the flat NCHW layout directly (channels on
    sublanes, flattened spatial on lanes), so the boundary conversion is a
    free reshape -- no HBM transposes -- and the output store is lane-dense.
    """
    N, Cin, H, W = x_nchw.shape
    Chid = params["w_exp"].shape[0]
    Cout = params["w_pw"].shape[0]
    K = kernel_size
    Hp, Wp = H + 2 * padding, W + 2 * padding
    Ho = (Hp - K) // stride + 1
    Wo = (Wp - K) // stride + 1
    HWo = Ho * Wo
    Lp = Hp * Wp + (K - 1)

    x = x_nchw.astype(jnp.float32).reshape(N, Cin, H * W)

    kernel = functools.partial(_mbconv_kernel, H=H, W=W, K=K, padding=padding,
                               stride=stride, squeeze=squeeze)

    args = [x,
            params["w_exp"].astype(jnp.bfloat16),
            params["bn1"].astype(jnp.float32),
            params["w_dw"].astype(jnp.float32),
            params["dw_misc"].astype(jnp.float32)]
    if squeeze:
        args += [params["w_se1"].astype(jnp.float32),
                 params["w_se2"].astype(jnp.float32)]
    args += [params["w_pw"].astype(jnp.bfloat16),
             params["bn3"].astype(jnp.float32)]

    vmem = pl.BlockSpec(memory_space=pltpu.MemorySpace.VMEM)

    flops = (2 * N * H * W * Cin * Chid            # expansion 1x1
             + 2 * N * HWo * K * K * Chid          # depthwise KxK
             + 2 * N * HWo * Chid * Cout)          # pointwise 1x1
    transcendentals = N * (H * W * Chid + 2 * HWo * Chid + HWo * Cout)
    bytes_accessed = 4 * (int(x.size) + N * Cout * HWo) + sum(
        int(a.size) * a.dtype.itemsize for a in args[1:])

    out_flat = pl.pallas_call(
        kernel,
        out_shape=jax.ShapeDtypeStruct((N, Cout, HWo), jnp.float32),
        in_specs=[vmem] * len(args),
        out_specs=vmem,
        scratch_shapes=[
            pltpu.VMEM((Chid, N * Lp), jnp.float32),   # flat zero-padded dw input
            pltpu.VMEM((Chid, N * HWo), jnp.float32),  # compacted dw output
        ],
        compiler_params=pltpu.CompilerParams(
            vmem_limit_bytes=32 * 1024 * 1024),        # re-derive per shape on v7x
        cost_estimate=pl.CostEstimate(flops=flops,
                                      transcendentals=transcendentals,
                                      bytes_accessed=bytes_accessed),
    )(*args)
    return out_flat.reshape(N, Cout, Ho, Wo)


def init_params(key, cin, cout, chid, k, reduction_rate):
    """Deterministic synthetic parameters; shapes follow MBConv.__init__
    (conv/linear/BN weights stored in the layouts the kernel consumes)."""
    rd = max(1, chid // reduction_rate)
    ks = jax.random.split(key, 12)

    def nrm(kk, shape, scale=0.1):
        return scale * jax.random.normal(kk, shape, dtype=jnp.float32)

    return {
        # Conv2d(cin->chid, 1x1, bias=False).weight (chid, cin, 1, 1) -> (chid, cin)
        "w_exp": nrm(ks[0], (chid, cin)),
        # BatchNorm2d(chid): columns [gamma, beta] as (chid, 2)
        "bn1": jnp.concatenate([1.0 + nrm(ks[1], (chid, 1)),
                                nrm(ks[2], (chid, 1))], axis=1),
        # depthwise Conv2d weight (chid, 1, k, k) -> (chid, k*k), tap t = dy*k+dx
        "w_dw": nrm(ks[3], (chid, k * k)),
        # columns [depthwise bias, BN gamma, BN beta] as (chid, 3)
        "dw_misc": jnp.concatenate([nrm(ks[4], (chid, 1)),
                                    1.0 + nrm(ks[5], (chid, 1)),
                                    nrm(ks[6], (chid, 1))], axis=1),
        # SE: fc1.weight^T (chid, rd), fc2.weight (chid, rd)
        "w_se1": nrm(ks[7], (chid, rd)),
        "w_se2": nrm(ks[8], (chid, rd)),
        # pointwise Conv2d weight (cout, chid, 1, 1) -> (cout, chid)
        "w_pw": nrm(ks[9], (cout, chid)),
        # BatchNorm2d(cout): columns [gamma, beta] as (cout, 2)
        "bn3": jnp.concatenate([1.0 + nrm(ks[10], (cout, 1)),
                                nrm(ks[11], (cout, 1))], axis=1),
    }


if __name__ == "__main__":
    # Small shapes consistent with the module.
    N, Cin, H, W = 2, 4, 16, 16
    Cout = 8
    kernel_size, padding, stride = 3, 1, 1
    expansion_ratio, reduction_rate = 4, 16
    squeeze = True
    Chid = int(Cin * expansion_ratio)      # 16

    key = jax.random.PRNGKey(0)
    kx, kp = jax.random.split(key)
    x = jax.random.normal(kx, (N, Cin, H, W), dtype=jnp.float32)
    params = init_params(kp, Cin, Cout, Chid, kernel_size, reduction_rate)

    out = mbconv_forward(x, params, kernel_size=kernel_size, padding=padding,
                         stride=stride, squeeze=squeeze)
    jax.block_until_ready(out)
    assert out.shape == (N, Cout, H, W), out.shape
    assert bool(jnp.all(jnp.isfinite(out)))
    print("KERNEL_OK")
</pallas_src>

<mosaic_0001>
module attributes {stable_mosaic.version = 11 : i64} {
  func.func @_mbconv_kernel(%arg0: memref<2x4x256xf32, #tpu.memory_space<vmem>>, %arg1: memref<16x4xbf16, #tpu.memory_space<vmem>>, %arg2: memref<16x2xf32, #tpu.memory_space<vmem>>, %arg3: memref<16x9xf32, #tpu.memory_space<vmem>>, %arg4: memref<16x3xf32, #tpu.memory_space<vmem>>, %arg5: memref<16x1xf32, #tpu.memory_space<vmem>>, %arg6: memref<16x1xf32, #tpu.memory_space<vmem>>, %arg7: memref<8x16xbf16, #tpu.memory_space<vmem>>, %arg8: memref<8x2xf32, #tpu.memory_space<vmem>>, %arg9: memref<2x8x256xf32, #tpu.memory_space<vmem>>, %arg10: memref<16x652xf32, #tpu.memory_space<vmem>>, %arg11: memref<16x512xf32, #tpu.memory_space<vmem>>) attributes {dimension_semantics = [], scalar_prefetch = 0 : i64, scratch_operands = 2 : i64, tpu.core_type = #tpu.core_type<tc>} {
    %c0 = arith.constant 0 : index
    %c0_0 = arith.constant 0 : index
    %c0_1 = arith.constant 0 : index
    %0 = vector.load %arg0[%c0, %c0_0, %c0_1] : memref<2x4x256xf32, #tpu.memory_space<vmem>>, vector<1x4x256xf32>
    %1 = vector.shape_cast %0 : vector<1x4x256xf32> to vector<4x256xf32>
    %c1 = arith.constant 1 : index
    %c0_2 = arith.constant 0 : index
    %c0_3 = arith.constant 0 : index
    %2 = vector.load %arg0[%c1, %c0_2, %c0_3] : memref<2x4x256xf32, #tpu.memory_space<vmem>>, vector<1x4x256xf32>
    %3 = vector.shape_cast %2 : vector<1x4x256xf32> to vector<4x256xf32>
    %4 = tpu.concatenate %1, %3 in 1 : vector<4x256xf32>, vector<4x256xf32> -> vector<4x512xf32>
    %5 = arith.truncf %4 : vector<4x512xf32> to vector<4x512xbf16>
    %c0_4 = arith.constant 0 : index
    %c0_5 = arith.constant 0 : index
    %6 = vector.load %arg1[%c0_4, %c0_5] : memref<16x4xbf16, #tpu.memory_space<vmem>>, vector<16x4xbf16>
    %cst = arith.constant dense<0.000000e+00> : vector<16x512xf32>
    %7 = tpu.matmul %6, %5, %cst {dimension_numbers = #tpu.dot_dimension_numbers<[1], [0], [0], [1], [0, 0, 1, 1], [], []>} : vector<16x4xbf16>, vector<4x512xbf16>, vector<16x512xf32> -> vector<16x512xf32>
    %c0_6 = arith.constant 0 : index
    %c0_7 = arith.constant 0 : index
    %8 = vector.load %arg2[%c0_6, %c0_7] : memref<16x2xf32, #tpu.memory_space<vmem>>, vector<16x1xf32>
    %c0_8 = arith.constant 0 : index
    %c1_9 = arith.constant 1 : index
    %9 = vector.load %arg2[%c0_8, %c1_9] : memref<16x2xf32, #tpu.memory_space<vmem>>, vector<16x1xf32>
    %cst_10 = arith.constant dense<0.000000e+00> : vector<16xf32>
    %10 = vector.multi_reduction <add>, %7, %cst_10 [1] : vector<16x512xf32> to vector<16xf32>
    %11 = vector.shape_cast %10 : vector<16xf32> to vector<16x1xf32>
    %12 = arith.mulf %7, %7 : vector<16x512xf32>
    %cst_11 = arith.constant dense<0.000000e+00> : vector<16xf32>
    %13 = vector.multi_reduction <add>, %12, %cst_11 [1] : vector<16x512xf32> to vector<16xf32>
    %14 = vector.shape_cast %13 : vector<16xf32> to vector<16x1xf32>
    %cst_12 = arith.constant 0.001953125 : f32
    %15 = vector.broadcast %cst_12 : f32 to vector<16x1xf32>
    %16 = arith.mulf %11, %15 : vector<16x1xf32>
    %cst_13 = arith.constant 0.001953125 : f32
    %17 = vector.broadcast %cst_13 : f32 to vector<16x1xf32>
    %18 = arith.mulf %14, %17 : vector<16x1xf32>
    %19 = arith.mulf %16, %16 : vector<16x1xf32>
    %20 = arith.subf %18, %19 : vector<16x1xf32>
    %cst_14 = arith.constant 0.000000e+00 : f32
    %21 = vector.broadcast %cst_14 : f32 to vector<16x1xf32>
    %22 = arith.maximumf %20, %21 : vector<16x1xf32>
    %23 = vector.broadcast %16 : vector<16x1xf32> to vector<16x512xf32>
    %24 = arith.subf %7, %23 : vector<16x512xf32>
    %cst_15 = arith.constant 9.99999974E-6 : f32
    %25 = vector.broadcast %cst_15 : f32 to vector<16x1xf32>
    %26 = arith.addf %22, %25 : vector<16x1xf32>
    %27 = math.rsqrt %26 : vector<16x1xf32>
    %28 = arith.mulf %27, %8 : vector<16x1xf32>
    %29 = vector.broadcast %28 : vector<16x1xf32> to vector<16x512xf32>
    %30 = arith.mulf %24, %29 : vector<16x512xf32>
    %31 = vector.broadcast %9 : vector<16x1xf32> to vector<16x512xf32>
    %32 = arith.addf %30, %31 : vector<16x512xf32>
    %33 = math.absf %32 : vector<16x512xf32>
    %cst_16 = arith.constant 0.000000e+00 : f32
    %34 = vector.broadcast %cst_16 : f32 to vector<16x512xf32>
    %35 = arith.subf %34, %33 : vector<16x512xf32>
    %36 = math.exp %35 : vector<16x512xf32>
    %cst_17 = arith.constant 1.000000e+00 : f32
    %37 = vector.broadcast %cst_17 : f32 to vector<16x512xf32>
    %38 = arith.addf %37, %36 : vector<16x512xf32>
    %39 = tpu.reciprocal %38 {approx = true} : vector<16x512xf32> -> vector<16x512xf32>
    %cst_18 = arith.constant 0.000000e+00 : f32
    %40 = vector.broadcast %cst_18 : f32 to vector<16x512xf32>
    %41 = arith.cmpf oge, %32, %40 : vector<16x512xf32>
    %42 = arith.mulf %36, %39 : vector<16x512xf32>
    %43 = arith.select %41, %39, %42 : vector<16x512xi1>, vector<16x512xf32>
    %44 = arith.mulf %32, %43 : vector<16x512xf32>
    %cst_19 = arith.constant 0.000000e+00 : f32
    %45 = vector.broadcast %cst_19 : f32 to vector<16x652xf32>
    %c0_20 = arith.constant 0 : index
    %c0_21 = arith.constant 0 : index
    %46 = vector.load %arg10[%c0_20, %c0_21] : memref<16x652xf32, #tpu.memory_space<vmem>>, vector<16x652xf32>
    tpu.vector_store %arg10[%c0_20, %c0_21], %45 {strides = array<i32>} : memref<16x652xf32, #tpu.memory_space<vmem>>, vector<16x652xf32>,
    %47 = vector.extract_strided_slice %44 {offsets = [0, 0], sizes = [16, 16], strides = [1, 1]} : vector<16x512xf32> to vector<16x16xf32>
    %c0_22 = arith.constant 0 : index
    %c19 = arith.constant 19 : index
    %48 = vector.load %arg10[%c0_22, %c19] : memref<16x652xf32, #tpu.memory_space<vmem>>, vector<16x16xf32>
    tpu.vector_store %arg10[%c0_22, %c19], %47 {strides = array<i32>} : memref<16x652xf32, #tpu.memory_space<vmem>>, vector<16x16xf32>,
    %49 = vector.extract_strided_slice %44 {offsets = [0, 16], sizes = [16, 16], strides = [1, 1]} : vector<16x512xf32> to vector<16x16xf32>
    %c0_23 = arith.constant 0 : index
    %c37 = arith.constant 37 : index
    %50 = vector.load %arg10[%c0_23, %c37] : memref<16x652xf32, #tpu.memory_space<vmem>>, vector<16x16xf32>
    tpu.vector_store %arg10[%c0_23, %c37], %49 {strides = array<i32>} : memref<16x652xf32, #tpu.memory_space<vmem>>, vector<16x16xf32>,
    %51 = vector.extract_strided_slice %44 {offsets = [0, 32], sizes = [16, 16], strides = [1, 1]} : vector<16x512xf32> to vector<16x16xf32>
    %c0_24 = arith.constant 0 : index
    %c55 = arith.constant 55 : index
    %52 = vector.load %arg10[%c0_24, %c55] : memref<16x652xf32, #tpu.memory_space<vmem>>, vector<16x16xf32>
    tpu.vector_store %arg10[%c0_24, %c55], %51 {strides = array<i32>} : memref<16x652xf32, #tpu.memory_space<vmem>>, vector<16x16xf32>,
    %53 = vector.extract_strided_slice %44 {offsets = [0, 48], sizes = [16, 16], strides = [1, 1]} : vector<16x512xf32> to vector<16x16xf32>
    %c0_25 = arith.constant 0 : index
    %c73 = arith.constant 73 : index
    %54 = vector.load %arg10[%c0_25, %c73] : memref<16x652xf32, #tpu.memory_space<vmem>>, vector<16x16xf32>
    tpu.vector_store %arg10[%c0_25, %c73], %53 {strides = array<i32>} : memref<16x652xf32, #tpu.memory_space<vmem>>, vector<16x16xf32>,
    %55 = vector.extract_strided_slice %44 {offsets = [0, 64], sizes = [16, 16], strides = [1, 1]} : vector<16x512xf32> to vector<16x16xf32>
    %c0_26 = arith.constant 0 : index
    %c91 = arith.constant 91 : index
    %56 = vector.load %arg10[%c0_26, %c91] : memref<16x652xf32, #tpu.memory_space<vmem>>, vector<16x16xf32>
    tpu.vector_store %arg10[%c0_26, %c91], %55 {strides = array<i32>} : memref<16x652xf32, #tpu.memory_space<vmem>>, vector<16x16xf32>,
    %57 = vector.extract_strided_slice %44 {offsets = [0, 80], sizes = [16, 16], strides = [1, 1]} : vector<16x512xf32> to vector<16x16xf32>
    %c0_27 = arith.constant 0 : index
    %c109 = arith.constant 109 : index
    %58 = vector.load %arg10[%c0_27, %c109] : memref<16x652xf32, #tpu.memory_space<vmem>>, vector<16x16xf32>
    tpu.vector_store %arg10[%c0_27, %c109], %57 {strides = array<i32>} : memref<16x652xf32, #tpu.memory_space<vmem>>, vector<16x16xf32>,
    %59 = vector.extract_strided_slice %44 {offsets = [0, 96], sizes = [16, 16], strides = [1, 1]} : vector<16x512xf32> to vector<16x16xf32>
    %c0_28 = arith.constant 0 : index
    %c127 = arith.constant 127 : index
    %60 = vector.load %arg10[%c0_28, %c127] : memref<16x652xf32, #tpu.memory_space<vmem>>, vector<16x16xf32>
    tpu.vector_store %arg10[%c0_28, %c127], %59 {strides = array<i32>} : memref<16x652xf32, #tpu.memory_space<vmem>>, vector<16x16xf32>,
    %61 = vector.extract_strided_slice %44 {offsets = [0, 112], sizes = [16, 16], strides = [1, 1]} : vector<16x512xf32> to vector<16x16xf32>
    %c0_29 = arith.constant 0 : index
    %c145 = arith.constant 145 : index
    %62 = vector.load %arg10[%c0_29, %c145] : memref<16x652xf32, #tpu.memory_space<vmem>>, vector<16x16xf32>
    tpu.vector_store %arg10[%c0_29, %c145], %61 {strides = array<i32>} : memref<16x652xf32, #tpu.memory_space<vmem>>, vector<16x16xf32>,
    %63 = vector.extract_strided_slice %44 {offsets = [0, 128], sizes = [16, 16], strides = [1, 1]} : vector<16x512xf32> to vector<16x16xf32>
    %c0_30 = arith.constant 0 : index
    %c163 = arith.constant 163 : index
    %64 = vector.load %arg10[%c0_30, %c163] : memref<16x652xf32, #tpu.memory_space<vmem>>, vector<16x16xf32>
    tpu.vector_store %arg10[%c0_30, %c163], %63 {strides = array<i32>} : memref<16x652xf32, #tpu.memory_space<vmem>>, vector<16x16xf32>,
    %65 = vector.extract_strided_slice %44 {offsets = [0, 144], sizes = [16, 16], strides = [1, 1]} : vector<16x512xf32> to vector<16x16xf32>
    %c0_31 = arith.constant 0 : index
    %c181 = arith.constant 181 : index
    %66 = vector.load %arg10[%c0_31, %c181] : memref<16x652xf32, #tpu.memory_space<vmem>>, vector<16x16xf32>
    tpu.vector_store %arg10[%c0_31, %c181], %65 {strides = array<i32>} : memref<16x652xf32, #tpu.memory_space<vmem>>, vector<16x16xf32>,
    %67 = vector.extract_strided_slice %44 {offsets = [0, 160], sizes = [16, 16], strides = [1, 1]} : vector<16x512xf32> to vector<16x16xf32>
    %c0_32 = arith.constant 0 : index
    %c199 = arith.constant 199 : index
    %68 = vector.load %arg10[%c0_32, %c199] : memref<16x652xf32, #tpu.memory_space<vmem>>, vector<16x16xf32>
    tpu.vector_store %arg10[%c0_32, %c199], %67 {strides = array<i32>} : memref<16x652xf32, #tpu.memory_space<vmem>>, vector<16x16xf32>,
    %69 = vector.extract_strided_slice %44 {offsets = [0, 176], sizes = [16, 16], strides = [1, 1]} : vector<16x512xf32> to vector<16x16xf32>
    %c0_33 = arith.constant 0 : index
    %c217 = arith.constant 217 : index
    %70 = vector.load %arg10[%c0_33, %c217] : memref<16x652xf32, #tpu.memory_space<vmem>>, vector<16x16xf32>
    tpu.vector_store %arg10[%c0_33, %c217], %69 {strides = array<i32>} : memref<16x652xf32, #tpu.memory_space<vmem>>, vector<16x16xf32>,
    %71 = vector.extract_strided_slice %44 {offsets = [0, 192], sizes = [16, 16], strides = [1, 1]} : vector<16x512xf32> to vector<16x16xf32>
    %c0_34 = arith.constant 0 : index
    %c235 = arith.constant 235 : index
    %72 = vector.load %arg10[%c0_34, %c235] : memref<16x652xf32, #tpu.memory_space<vmem>>, vector<16x16xf32>
    tpu.vector_store %arg10[%c0_34, %c235], %71 {strides = array<i32>} : memref<16x652xf32, #tpu.memory_space<vmem>>, vector<16x16xf32>,
    %73 = vector.extract_strided_slice %44 {offsets = [0, 208], sizes = [16, 16], strides = [1, 1]} : vector<16x512xf32> to vector<16x16xf32>
    %c0_35 = arith.constant 0 : index
    %c253 = arith.constant 253 : index
    %74 = vector.load %arg10[%c0_35, %c253] : memref<16x652xf32, #tpu.memory_space<vmem>>, vector<16x16xf32>
    tpu.vector_store %arg10[%c0_35, %c253], %73 {strides = array<i32>} : memref<16x652xf32, #tpu.memory_space<vmem>>, vector<16x16xf32>,
    %75 = vector.extract_strided_slice %44 {offsets = [0, 224], sizes = [16, 16], strides = [1, 1]} : vector<16x512xf32> to vector<16x16xf32>
    %c0_36 = arith.constant 0 : index
    %c271 = arith.constant 271 : index
    %76 = vector.load %arg10[%c0_36, %c271] : memref<16x652xf32, #tpu.memory_space<vmem>>, vector<16x16xf32>
    tpu.vector_store %arg10[%c0_36, %c271], %75 {strides = array<i32>} : memref<16x652xf32, #tpu.memory_space<vmem>>, vector<16x16xf32>,
    %77 = vector.extract_strided_slice %44 {offsets = [0, 240], sizes = [16, 16], strides = [1, 1]} : vector<16x512xf32> to vector<16x16xf32>
    %c0_37 = arith.constant 0 : index
    %c289 = arith.constant 289 : index
    %78 = vector.load %arg10[%c0_37, %c289] : memref<16x652xf32, #tpu.memory_space<vmem>>, vector<16x16xf32>
    tpu.vector_store %arg10[%c0_37, %c289], %77 {strides = array<i32>} : memref<16x652xf32, #tpu.memory_space<vmem>>, vector<16x16xf32>,
    %79 = vector.extract_strided_slice %44 {offsets = [0, 256], sizes = [16, 16], strides = [1, 1]} : vector<16x512xf32> to vector<16x16xf32>
    %c0_38 = arith.constant 0 : index
    %c345 = arith.constant 345 : index
    %80 = vector.load %arg10[%c0_38, %c345] : memref<16x652xf32, #tpu.memory_space<vmem>>, vector<16x16xf32>
    tpu.vector_store %arg10[%c0_38, %c345], %79 {strides = array<i32>} : memref<16x652xf32, #tpu.memory_space<vmem>>, vector<16x16xf32>,
    %81 = vector.extract_strided_slice %44 {offsets = [0, 272], sizes = [16, 16], strides = [1, 1]} : vector<16x512xf32> to vector<16x16xf32>
    %c0_39 = arith.constant 0 : index
    %c363 = arith.constant 363 : index
    %82 = vector.load %arg10[%c0_39, %c363] : memref<16x652xf32, #tpu.memory_space<vmem>>, vector<16x16xf32>
    tpu.vector_store %arg10[%c0_39, %c363], %81 {strides = array<i32>} : memref<16x652xf32, #tpu.memory_space<vmem>>, vector<16x16xf32>,
    %83 = vector.extract_strided_slice %44 {offsets = [0, 288], sizes = [16, 16], strides = [1, 1]} : vector<16x512xf32> to vector<16x16xf32>
    %c0_40 = arith.constant 0 : index
    %c381 = arith.constant 381 : index
    %84 = vector.load %arg10[%c0_40, %c381] : memref<16x652xf32, #tpu.memory_space<vmem>>, vector<16x16xf32>
    tpu.vector_store %arg10[%c0_40, %c381], %83 {strides = array<i32>} : memref<16x652xf32, #tpu.memory_space<vmem>>, vector<16x16xf32>,
    %85 = vector.extract_strided_slice %44 {offsets = [0, 304], sizes = [16, 16], strides = [1, 1]} : vector<16x512xf32> to vector<16x16xf32>
    %c0_41 = arith.constant 0 : index
    %c399 = arith.constant 399 : index
    %86 = vector.load %arg10[%c0_41, %c399] : memref<16x652xf32, #tpu.memory_space<vmem>>, vector<16x16xf32>
    tpu.vector_store %arg10[%c0_41, %c399], %85 {strides = array<i32>} : memref<16x652xf32, #tpu.memory_space<vmem>>, vector<16x16xf32>,
    %87 = vector.extract_strided_slice %44 {offsets = [0, 320], sizes = [16, 16], strides = [1, 1]} : vector<16x512xf32> to vector<16x16xf32>
    %c0_42 = arith.constant 0 : index
    %c417 = arith.constant 417 : index
    %88 = vector.load %arg10[%c0_42, %c417] : memref<16x652xf32, #tpu.memory_space<vmem>>, vector<16x16xf32>
    tpu.vector_store %arg10[%c0_42, %c417], %87 {strides = array<i32>} : memref<16x652xf32, #tpu.memory_space<vmem>>, vector<16x16xf32>,
    %89 = vector.extract_strided_slice %44 {offsets = [0, 336], sizes = [16, 16], strides = [1, 1]} : vector<16x512xf32> to vector<16x16xf32>
    %c0_43 = arith.constant 0 : index
    %c435 = arith.constant 435 : index
    %90 = vector.load %arg10[%c0_43, %c435] : memref<16x652xf32, #tpu.memory_space<vmem>>, vector<16x16xf32>
    tpu.vector_store %arg10[%c0_43, %c435], %89 {strides = array<i32>} : memref<16x652xf32, #tpu.memory_space<vmem>>, vector<16x16xf32>,
    %91 = vector.extract_strided_slice %44 {offsets = [0, 352], sizes = [16, 16], strides = [1, 1]} : vector<16x512xf32> to vector<16x16xf32>
    %c0_44 = arith.constant 0 : index
    %c453 = arith.constant 453 : index
    %92 = vector.load %arg10[%c0_44, %c453] : memref<16x652xf32, #tpu.memory_space<vmem>>, vector<16x16xf32>
    tpu.vector_store %arg10[%c0_44, %c453], %91 {strides = array<i32>} : memref<16x652xf32, #tpu.memory_space<vmem>>, vector<16x16xf32>,
    %93 = vector.extract_strided_slice %44 {offsets = [0, 368], sizes = [16, 16], strides = [1, 1]} : vector<16x512xf32> to vector<16x16xf32>
    %c0_45 = arith.constant 0 : index
    %c471 = arith.constant 471 : index
    %94 = vector.load %arg10[%c0_45, %c471] : memref<16x652xf32, #tpu.memory_space<vmem>>, vector<16x16xf32>
    tpu.vector_store %arg10[%c0_45, %c471], %93 {strides = array<i32>} : memref<16x652xf32, #tpu.memory_space<vmem>>, vector<16x16xf32>,
    %95 = vector.extract_strided_slice %44 {offsets = [0, 384], sizes = [16, 16], strides = [1, 1]} : vector<16x512xf32> to vector<16x16xf32>
    %c0_46 = arith.constant 0 : index
    %c489 = arith.constant 489 : index
    %96 = vector.load %arg10[%c0_46, %c489] : memref<16x652xf32, #tpu.memory_space<vmem>>, vector<16x16xf32>
    tpu.vector_store %arg10[%c0_46, %c489], %95 {strides = array<i32>} : memref<16x652xf32, #tpu.memory_space<vmem>>, vector<16x16xf32>,
    %97 = vector.extract_strided_slice %44 {offsets = [0, 400], sizes = [16, 16], strides = [1, 1]} : vector<16x512xf32> to vector<16x16xf32>
    %c0_47 = arith.constant 0 : index
    %c507 = arith.constant 507 : index
    %98 = vector.load %arg10[%c0_47, %c507] : memref<16x652xf32, #tpu.memory_space<vmem>>, vector<16x16xf32>
    tpu.vector_store %arg10[%c0_47, %c507], %97 {strides = array<i32>} : memref<16x652xf32, #tpu.memory_space<vmem>>, vector<16x16xf32>,
    %99 = vector.extract_strided_slice %44 {offsets = [0, 416], sizes = [16, 16], strides = [1, 1]} : vector<16x512xf32> to vector<16x16xf32>
    %c0_48 = arith.constant 0 : index
    %c525 = arith.constant 525 : index
    %100 = vector.load %arg10[%c0_48, %c525] : memref<16x652xf32, #tpu.memory_space<vmem>>, vector<16x16xf32>
    tpu.vector_store %arg10[%c0_48, %c525], %99 {strides = array<i32>} : memref<16x652xf32, #tpu.memory_space<vmem>>, vector<16x16xf32>,
    %101 = vector.extract_strided_slice %44 {offsets = [0, 432], sizes = [16, 16], strides = [1, 1]} : vector<16x512xf32> to vector<16x16xf32>
    %c0_49 = arith.constant 0 : index
    %c543 = arith.constant 543 : index
    %102 = vector.load %arg10[%c0_49, %c543] : memref<16x652xf32, #tpu.memory_space<vmem>>, vector<16x16xf32>
    tpu.vector_store %arg10[%c0_49, %c543], %101 {strides = array<i32>} : memref<16x652xf32, #tpu.memory_space<vmem>>, vector<16x16xf32>,
    %103 = vector.extract_strided_slice %44 {offsets = [0, 448], sizes = [16, 16], strides = [1, 1]} : vector<16x512xf32> to vector<16x16xf32>
    %c0_50 = arith.constant 0 : index
    %c561 = arith.constant 561 : index
    %104 = vector.load %arg10[%c0_50, %c561] : memref<16x652xf32, #tpu.memory_space<vmem>>, vector<16x16xf32>
    tpu.vector_store %arg10[%c0_50, %c561], %103 {strides = array<i32>} : memref<16x652xf32, #tpu.memory_space<vmem>>, vector<16x16xf32>,
    %105 = vector.extract_strided_slice %44 {offsets = [0, 464], sizes = [16, 16], strides = [1, 1]} : vector<16x512xf32> to vector<16x16xf32>
    %c0_51 = arith.constant 0 : index
    %c579 = arith.constant 579 : index
    %106 = vector.load %arg10[%c0_51, %c579] : memref<16x652xf32, #tpu.memory_space<vmem>>, vector<16x16xf32>
    tpu.vector_store %arg10[%c0_51, %c579], %105 {strides = array<i32>} : memref<16x652xf32, #tpu.memory_space<vmem>>, vector<16x16xf32>,
    %107 = vector.extract_strided_slice %44 {offsets = [0, 480], sizes = [16, 16], strides = [1, 1]} : vector<16x512xf32> to vector<16x16xf32>
    %c0_52 = arith.constant 0 : index
    %c597 = arith.constant 597 : index
    %108 = vector.load %arg10[%c0_52, %c597] : memref<16x652xf32, #tpu.memory_space<vmem>>, vector<16x16xf32>
    tpu.vector_store %arg10[%c0_52, %c597], %107 {strides = array<i32>} : memref<16x652xf32, #tpu.memory_space<vmem>>, vector<16x16xf32>,
    %109 = vector.extract_strided_slice %44 {offsets = [0, 496], sizes = [16, 16], strides = [1, 1]} : vector<16x512xf32> to vector<16x16xf32>
    %c0_53 = arith.constant 0 : index
    %c615 = arith.constant 615 : index
    %110 = vector.load %arg10[%c0_53, %c615] : memref<16x652xf32, #tpu.memory_space<vmem>>, vector<16x16xf32>
    tpu.vector_store %arg10[%c0_53, %c615], %109 {strides = array<i32>} : memref<16x652xf32, #tpu.memory_space<vmem>>, vector<16x16xf32>,
    %c0_54 = arith.constant 0 : index
    %c0_55 = arith.constant 0 : index
    %111 = vector.load %arg3[%c0_54, %c0_55] : memref<16x9xf32, #tpu.memory_space<vmem>>, vector<16x9xf32>
    %cst_56 = arith.constant 0.000000e+00 : f32
    %112 = vector.broadcast %cst_56 : f32 to vector<16x614xf32>
    %c0_57 = arith.constant 0 : index
    %c0_58 = arith.constant 0 : index
    %113 = vector.load %arg10[%c0_57, %c0_58] : memref<16x652xf32, #tpu.memory_space<vmem>>, vector<16x614xf32>
    %114 = vector.extract_strided_slice %111 {offsets = [0, 0], sizes = [16, 1], strides = [1, 1]} : vector<16x9xf32> to vector<16x1xf32>
    %115 = vector.broadcast %114 : vector<16x1xf32> to vector<16x614xf32>
    %116 = arith.mulf %113, %115 : vector<16x614xf32>
    %117 = arith.addf %112, %116 : vector<16x614xf32>
    %c0_59 = arith.constant 0 : index
    %c1_60 = arith.constant 1 : index
    %118 = vector.load %arg10[%c0_59, %c1_60] : memref<16x652xf32, #tpu.memory_space<vmem>>, vector<16x614xf32>
    %119 = vector.extract_strided_slice %111 {offsets = [0, 1], sizes = [16, 1], strides = [1, 1]} : vector<16x9xf32> to vector<16x1xf32>
    %120 = vector.broadcast %119 : vector<16x1xf32> to vector<16x614xf32>
    %121 = arith.mulf %118, %120 : vector<16x614xf32>
    %122 = arith.addf %117, %121 : vector<16x614xf32>
    %c0_61 = arith.constant 0 : index
    %c2 = arith.constant 2 : index
    %123 = vector.load %arg10[%c0_61, %c2] : memref<16x652xf32, #tpu.memory_space<vmem>>, vector<16x614xf32>
    %124 = vector.extract_strided_slice %111 {offsets = [0, 2], sizes = [16, 1], strides = [1, 1]} : vector<16x9xf32> to vector<16x1xf32>
    %125 = vector.broadcast %124 : vector<16x1xf32> to vector<16x614xf32>
    %126 = arith.mulf %123, %125 : vector<16x614xf32>
    %127 = arith.addf %122, %126 : vector<16x614xf32>
    %c0_62 = arith.constant 0 : index
    %c18 = arith.constant 18 : index
    %128 = vector.load %arg10[%c0_62, %c18] : memref<16x652xf32, #tpu.memory_space<vmem>>, vector<16x614xf32>
    %129 = vector.extract_strided_slice %111 {offsets = [0, 3], sizes = [16, 1], strides = [1, 1]} : vector<16x9xf32> to vector<16x1xf32>
    %130 = vector.broadcast %129 : vector<16x1xf32> to vector<16x614xf32>
    %131 = arith.mulf %128, %130 : vector<16x614xf32>
    %132 = arith.addf %127, %131 : vector<16x614xf32>
    %c0_63 = arith.constant 0 : index
    %c19_64 = arith.constant 19 : index
    %133 = vector.load %arg10[%c0_63, %c19_64] : memref<16x652xf32, #tpu.memory_space<vmem>>, vector<16x614xf32>
    %134 = vector.extract_strided_slice %111 {offsets = [0, 4], sizes = [16, 1], strides = [1, 1]} : vector<16x9xf32> to vector<16x1xf32>
    %135 = vector.broadcast %134 : vector<16x1xf32> to vector<16x614xf32>
    %136 = arith.mulf %133, %135 : vector<16x614xf32>
    %137 = arith.addf %132, %136 : vector<16x614xf32>
    %c0_65 = arith.constant 0 : index
    %c20 = arith.constant 20 : index
    %138 = vector.load %arg10[%c0_65, %c20] : memref<16x652xf32, #tpu.memory_space<vmem>>, vector<16x614xf32>
    %139 = vector.extract_strided_slice %111 {offsets = [0, 5], sizes = [16, 1], strides = [1, 1]} : vector<16x9xf32> to vector<16x1xf32>
    %140 = vector.broadcast %139 : vector<16x1xf32> to vector<16x614xf32>
    %141 = arith.mulf %138, %140 : vector<16x614xf32>
    %142 = arith.addf %137, %141 : vector<16x614xf32>
    %c0_66 = arith.constant 0 : index
    %c36 = arith.constant 36 : index
    %143 = vector.load %arg10[%c0_66, %c36] : memref<16x652xf32, #tpu.memory_space<vmem>>, vector<16x614xf32>
    %144 = vector.extract_strided_slice %111 {offsets = [0, 6], sizes = [16, 1], strides = [1, 1]} : vector<16x9xf32> to vector<16x1xf32>
    %145 = vector.broadcast %144 : vector<16x1xf32> to vector<16x614xf32>
    %146 = arith.mulf %143, %145 : vector<16x614xf32>
    %147 = arith.addf %142, %146 : vector<16x614xf32>
    %c0_67 = arith.constant 0 : index
    %c37_68 = arith.constant 37 : index
    %148 = vector.load %arg10[%c0_67, %c37_68] : memref<16x652xf32, #tpu.memory_space<vmem>>, vector<16x614xf32>
    %149 = vector.extract_strided_slice %111 {offsets = [0, 7], sizes = [16, 1], strides = [1, 1]} : vector<16x9xf32> to vector<16x1xf32>
    %150 = vector.broadcast %149 : vector<16x1xf32> to vector<16x614xf32>
    %151 = arith.mulf %148, %150 : vector<16x614xf32>
    %152 = arith.addf %147, %151 : vector<16x614xf32>
    %c0_69 = arith.constant 0 : index
    %c38 = arith.constant 38 : index
    %153 = vector.load %arg10[%c0_69, %c38] : memref<16x652xf32, #tpu.memory_space<vmem>>, vector<16x614xf32>
    %154 = vector.extract_strided_slice %111 {offsets = [0, 8], sizes = [16, 1], strides = [1, 1]} : vector<16x9xf32> to vector<16x1xf32>
    %155 = vector.broadcast %154 : vector<16x1xf32> to vector<16x614xf32>
    %156 = arith.mulf %153, %155 : vector<16x614xf32>
    %157 = arith.addf %152, %156 : vector<16x614xf32>
    %158 = vector.extract_strided_slice %157 {offsets = [0, 0], sizes = [16, 16], strides = [1, 1]} : vector<16x614xf32> to vector<16x16xf32>
    %c0_70 = arith.constant 0 : index
    %c0_71 = arith.constant 0 : index
    %159 = vector.load %arg11[%c0_70, %c0_71] : memref<16x512xf32, #tpu.memory_space<vmem>>, vector<16x16xf32>
    tpu.vector_store %arg11[%c0_70, %c0_71], %158 {strides = array<i32>} : memref<16x512xf32, #tpu.memory_space<vmem>>, vector<16x16xf32>,
    %160 = vector.extract_strided_slice %157 {offsets = [0, 18], sizes = [16, 16], strides = [1, 1]} : vector<16x614xf32> to vector<16x16xf32>
    %c0_72 = arith.constant 0 : index
    %c16 = arith.constant 16 : index
    %161 = vector.load %arg11[%c0_72, %c16] : memref<16x512xf32, #tpu.memory_space<vmem>>, vector<16x16xf32>
    tpu.vector_store %arg11[%c0_72, %c16], %160 {strides = array<i32>} : memref<16x512xf32, #tpu.memory_space<vmem>>, vector<16x16xf32>,
    %162 = vector.extract_strided_slice %157 {offsets = [0, 36], sizes = [16, 16], strides = [1, 1]} : vector<16x614xf32> to vector<16x16xf32>
    %c0_73 = arith.constant 0 : index
    %c32 = arith.constant 32 : index
    %163 = vector.load %arg11[%c0_73, %c32] : memref<16x512xf32, #tpu.memory_space<vmem>>, vector<16x16xf32>
    tpu.vector_store %arg11[%c0_73, %c32], %162 {strides = array<i32>} : memref<16x512xf32, #tpu.memory_space<vmem>>, vector<16x16xf32>,
    %164 = vector.extract_strided_slice %157 {offsets = [0, 54], sizes = [16, 16], strides = [1, 1]} : vector<16x614xf32> to vector<16x16xf32>
    %c0_74 = arith.constant 0 : index
    %c48 = arith.constant 48 : index
    %165 = vector.load %arg11[%c0_74, %c48] : memref<16x512xf32, #tpu.memory_space<vmem>>, vector<16x16xf32>
    tpu.vector_store %arg11[%c0_74, %c48], %164 {strides = array<i32>} : memref<16x512xf32, #tpu.memory_space<vmem>>, vector<16x16xf32>,
    %166 = vector.extract_strided_slice %157 {offsets = [0, 72], sizes = [16, 16], strides = [1, 1]} : vector<16x614xf32> to vector<16x16xf32>
    %c0_75 = arith.constant 0 : index
    %c64 = arith.constant 64 : index
    %167 = vector.load %arg11[%c0_75, %c64] : memref<16x512xf32, #tpu.memory_space<vmem>>, vector<16x16xf32>
    tpu.vector_store %arg11[%c0_75, %c64], %166 {strides = array<i32>} : memref<16x512xf32, #tpu.memory_space<vmem>>, vector<16x16xf32>,
    %168 = vector.extract_strided_slice %157 {offsets = [0, 90], sizes = [16, 16], strides = [1, 1]} : vector<16x614xf32> to vector<16x16xf32>
    %c0_76 = arith.constant 0 : index
    %c80 = arith.constant 80 : index
    %169 = vector.load %arg11[%c0_76, %c80] : memref<16x512xf32, #tpu.memory_space<vmem>>, vector<16x16xf32>
    tpu.vector_store %arg11[%c0_76, %c80], %168 {strides = array<i32>} : memref<16x512xf32, #tpu.memory_space<vmem>>, vector<16x16xf32>,
    %170 = vector.extract_strided_slice %157 {offsets = [0, 108], sizes = [16, 16], strides = [1, 1]} : vector<16x614xf32> to vector<16x16xf32>
    %c0_77 = arith.constant 0 : index
    %c96 = arith.constant 96 : index
    %171 = vector.load %arg11[%c0_77, %c96] : memref<16x512xf32, #tpu.memory_space<vmem>>, vector<16x16xf32>
    tpu.vector_store %arg11[%c0_77, %c96], %170 {strides = array<i32>} : memref<16x512xf32, #tpu.memory_space<vmem>>, vector<16x16xf32>,
    %172 = vector.extract_strided_slice %157 {offsets = [0, 126], sizes = [16, 16], strides = [1, 1]} : vector<16x614xf32> to vector<16x16xf32>
    %c0_78 = arith.constant 0 : index
    %c112 = arith.constant 112 : index
    %173 = vector.load %arg11[%c0_78, %c112] : memref<16x512xf32, #tpu.memory_space<vmem>>, vector<16x16xf32>
    tpu.vector_store %arg11[%c0_78, %c112], %172 {strides = array<i32>} : memref<16x512xf32, #tpu.memory_space<vmem>>, vector<16x16xf32>,
    %174 = vector.extract_strided_slice %157 {offsets = [0, 144], sizes = [16, 16], strides = [1, 1]} : vector<16x614xf32> to vector<16x16xf32>
    %c0_79 = arith.constant 0 : index
    %c128 = arith.constant 128 : index
    %175 = vector.load %arg11[%c0_79, %c128] : memref<16x512xf32, #tpu.memory_space<vmem>>, vector<16x16xf32>
    tpu.vector_store %arg11[%c0_79, %c128], %174 {strides = array<i32>} : memref<16x512xf32, #tpu.memory_space<vmem>>, vector<16x16xf32>,
    %176 = vector.extract_strided_slice %157 {offsets = [0, 162], sizes = [16, 16], strides = [1, 1]} : vector<16x614xf32> to vector<16x16xf32>
    %c0_80 = arith.constant 0 : index
    %c144 = arith.constant 144 : index
    %177 = vector.load %arg11[%c0_80, %c144] : memref<16x512xf32, #tpu.memory_space<vmem>>, vector<16x16xf32>
    tpu.vector_store %arg11[%c0_80, %c144], %176 {strides = array<i32>} : memref<16x512xf32, #tpu.memory_space<vmem>>, vector<16x16xf32>,
    %178 = vector.extract_strided_slice %157 {offsets = [0, 180], sizes = [16, 16], strides = [1, 1]} : vector<16x614xf32> to vector<16x16xf32>
    %c0_81 = arith.constant 0 : index
    %c160 = arith.constant 160 : index
    %179 = vector.load %arg11[%c0_81, %c160] : memref<16x512xf32, #tpu.memory_space<vmem>>, vector<16x16xf32>
    tpu.vector_store %arg11[%c0_81, %c160], %178 {strides = array<i32>} : memref<16x512xf32, #tpu.memory_space<vmem>>, vector<16x16xf32>,
    %180 = vector.extract_strided_slice %157 {offsets = [0, 198], sizes = [16, 16], strides = [1, 1]} : vector<16x614xf32> to vector<16x16xf32>
    %c0_82 = arith.constant 0 : index
    %c176 = arith.constant 176 : index
    %181 = vector.load %arg11[%c0_82, %c176] : memref<16x512xf32, #tpu.memory_space<vmem>>, vector<16x16xf32>
    tpu.vector_store %arg11[%c0_82, %c176], %180 {strides = array<i32>} : memref<16x512xf32, #tpu.memory_space<vmem>>, vector<16x16xf32>,
    %182 = vector.extract_strided_slice %157 {offsets = [0, 216], sizes = [16, 16], strides = [1, 1]} : vector<16x614xf32> to vector<16x16xf32>
    %c0_83 = arith.constant 0 : index
    %c192 = arith.constant 192 : index
    %183 = vector.load %arg11[%c0_83, %c192] : memref<16x512xf32, #tpu.memory_space<vmem>>, vector<16x16xf32>
    tpu.vector_store %arg11[%c0_83, %c192], %182 {strides = array<i32>} : memref<16x512xf32, #tpu.memory_space<vmem>>, vector<16x16xf32>,
    %184 = vector.extract_strided_slice %157 {offsets = [0, 234], sizes = [16, 16], strides = [1, 1]} : vector<16x614xf32> to vector<16x16xf32>
    %c0_84 = arith.constant 0 : index
    %c208 = arith.constant 208 : index
    %185 = vector.load %arg11[%c0_84, %c208] : memref<16x512xf32, #tpu.memory_space<vmem>>, vector<16x16xf32>
    tpu.vector_store %arg11[%c0_84, %c208], %184 {strides = array<i32>} : memref<16x512xf32, #tpu.memory_space<vmem>>, vector<16x16xf32>,
    %186 = vector.extract_strided_slice %157 {offsets = [0, 252], sizes = [16, 16], strides = [1, 1]} : vector<16x614xf32> to vector<16x16xf32>
    %c0_85 = arith.constant 0 : index
    %c224 = arith.constant 224 : index
    %187 = vector.load %arg11[%c0_85, %c224] : memref<16x512xf32, #tpu.memory_space<vmem>>, vector<16x16xf32>
    tpu.vector_store %arg11[%c0_85, %c224], %186 {strides = array<i32>} : memref<16x512xf32, #tpu.memory_space<vmem>>, vector<16x16xf32>,
    %188 = vector.extract_strided_slice %157 {offsets = [0, 270], sizes = [16, 16], strides = [1, 1]} : vector<16x614xf32> to vector<16x16xf32>
    %c0_86 = arith.constant 0 : index
    %c240 = arith.constant 240 : index
    %189 = vector.load %arg11[%c0_86, %c240] : memref<16x512xf32, #tpu.memory_space<vmem>>, vector<16x16xf32>
    tpu.vector_store %arg11[%c0_86, %c240], %188 {strides = array<i32>} : memref<16x512xf32, #tpu.memory_space<vmem>>, vector<16x16xf32>,
    %190 = vector.extract_strided_slice %157 {offsets = [0, 326], sizes = [16, 16], strides = [1, 1]} : vector<16x614xf32> to vector<16x16xf32>
    %c0_87 = arith.constant 0 : index
    %c256 = arith.constant 256 : index
    %191 = vector.load %arg11[%c0_87, %c256] : memref<16x512xf32, #tpu.memory_space<vmem>>, vector<16x16xf32>
    tpu.vector_store %arg11[%c0_87, %c256], %190 {strides = array<i32>} : memref<16x512xf32, #tpu.memory_space<vmem>>, vector<16x16xf32>,
    %192 = vector.extract_strided_slice %157 {offsets = [0, 344], sizes = [16, 16], strides = [1, 1]} : vector<16x614xf32> to vector<16x16xf32>
    %c0_88 = arith.constant 0 : index
    %c272 = arith.constant 272 : index
    %193 = vector.load %arg11[%c0_88, %c272] : memref<16x512xf32, #tpu.memory_space<vmem>>, vector<16x16xf32>
    tpu.vector_store %arg11[%c0_88, %c272], %192 {strides = array<i32>} : memref<16x512xf32, #tpu.memory_space<vmem>>, vector<16x16xf32>,
    %194 = vector.extract_strided_slice %157 {offsets = [0, 362], sizes = [16, 16], strides = [1, 1]} : vector<16x614xf32> to vector<16x16xf32>
    %c0_89 = arith.constant 0 : index
    %c288 = arith.constant 288 : index
    %195 = vector.load %arg11[%c0_89, %c288] : memref<16x512xf32, #tpu.memory_space<vmem>>, vector<16x16xf32>
    tpu.vector_store %arg11[%c0_89, %c288], %194 {strides = array<i32>} : memref<16x512xf32, #tpu.memory_space<vmem>>, vector<16x16xf32>,
    %196 = vector.extract_strided_slice %157 {offsets = [0, 380], sizes = [16, 16], strides = [1, 1]} : vector<16x614xf32> to vector<16x16xf32>
    %c0_90 = arith.constant 0 : index
    %c304 = arith.constant 304 : index
    %197 = vector.load %arg11[%c0_90, %c304] : memref<16x512xf32, #tpu.memory_space<vmem>>, vector<16x16xf32>
    tpu.vector_store %arg11[%c0_90, %c304], %196 {strides = array<i32>} : memref<16x512xf32, #tpu.memory_space<vmem>>, vector<16x16xf32>,
    %198 = vector.extract_strided_slice %157 {offsets = [0, 398], sizes = [16, 16], strides = [1, 1]} : vector<16x614xf32> to vector<16x16xf32>
    %c0_91 = arith.constant 0 : index
    %c320 = arith.constant 320 : index
    %199 = vector.load %arg11[%c0_91, %c320] : memref<16x512xf32, #tpu.memory_space<vmem>>, vector<16x16xf32>
    tpu.vector_store %arg11[%c0_91, %c320], %198 {strides = array<i32>} : memref<16x512xf32, #tpu.memory_space<vmem>>, vector<16x16xf32>,
    %200 = vector.extract_strided_slice %157 {offsets = [0, 416], sizes = [16, 16], strides = [1, 1]} : vector<16x614xf32> to vector<16x16xf32>
    %c0_92 = arith.constant 0 : index
    %c336 = arith.constant 336 : index
    %201 = vector.load %arg11[%c0_92, %c336] : memref<16x512xf32, #tpu.memory_space<vmem>>, vector<16x16xf32>
    tpu.vector_store %arg11[%c0_92, %c336], %200 {strides = array<i32>} : memref<16x512xf32, #tpu.memory_space<vmem>>, vector<16x16xf32>,
    %202 = vector.extract_strided_slice %157 {offsets = [0, 434], sizes = [16, 16], strides = [1, 1]} : vector<16x614xf32> to vector<16x16xf32>
    %c0_93 = arith.constant 0 : index
    %c352 = arith.constant 352 : index
    %203 = vector.load %arg11[%c0_93, %c352] : memref<16x512xf32, #tpu.memory_space<vmem>>, vector<16x16xf32>
    tpu.vector_store %arg11[%c0_93, %c352], %202 {strides = array<i32>} : memref<16x512xf32, #tpu.memory_space<vmem>>, vector<16x16xf32>,
    %204 = vector.extract_strided_slice %157 {offsets = [0, 452], sizes = [16, 16], strides = [1, 1]} : vector<16x614xf32> to vector<16x16xf32>
    %c0_94 = arith.constant 0 : index
    %c368 = arith.constant 368 : index
    %205 = vector.load %arg11[%c0_94, %c368] : memref<16x512xf32, #tpu.memory_space<vmem>>, vector<16x16xf32>
    tpu.vector_store %arg11[%c0_94, %c368], %204 {strides = array<i32>} : memref<16x512xf32, #tpu.memory_space<vmem>>, vector<16x16xf32>,
    %206 = vector.extract_strided_slice %157 {offsets = [0, 470], sizes = [16, 16], strides = [1, 1]} : vector<16x614xf32> to vector<16x16xf32>
    %c0_95 = arith.constant 0 : index
    %c384 = arith.constant 384 : index
    %207 = vector.load %arg11[%c0_95, %c384] : memref<16x512xf32, #tpu.memory_space<vmem>>, vector<16x16xf32>
    tpu.vector_store %arg11[%c0_95, %c384], %206 {strides = array<i32>} : memref<16x512xf32, #tpu.memory_space<vmem>>, vector<16x16xf32>,
    %208 = vector.extract_strided_slice %157 {offsets = [0, 488], sizes = [16, 16], strides = [1, 1]} : vector<16x614xf32> to vector<16x16xf32>
    %c0_96 = arith.constant 0 : index
    %c400 = arith.constant 400 : index
    %209 = vector.load %arg11[%c0_96, %c400] : memref<16x512xf32, #tpu.memory_space<vmem>>, vector<16x16xf32>
    tpu.vector_store %arg11[%c0_96, %c400], %208 {strides = array<i32>} : memref<16x512xf32, #tpu.memory_space<vmem>>, vector<16x16xf32>,
    %210 = vector.extract_strided_slice %157 {offsets = [0, 506], sizes = [16, 16], strides = [1, 1]} : vector<16x614xf32> to vector<16x16xf32>
    %c0_97 = arith.constant 0 : index
    %c416 = arith.constant 416 : index
    %211 = vector.load %arg11[%c0_97, %c416] : memref<16x512xf32, #tpu.memory_space<vmem>>, vector<16x16xf32>
    tpu.vector_store %arg11[%c0_97, %c416], %210 {strides = array<i32>} : memref<16x512xf32, #tpu.memory_space<vmem>>, vector<16x16xf32>,
    %212 = vector.extract_strided_slice %157 {offsets = [0, 524], sizes = [16, 16], strides = [1, 1]} : vector<16x614xf32> to vector<16x16xf32>
    %c0_98 = arith.constant 0 : index
    %c432 = arith.constant 432 : index
    %213 = vector.load %arg11[%c0_98, %c432] : memref<16x512xf32, #tpu.memory_space<vmem>>, vector<16x16xf32>
    tpu.vector_store %arg11[%c0_98, %c432], %212 {strides = array<i32>} : memref<16x512xf32, #tpu.memory_space<vmem>>, vector<16x16xf32>,
    %214 = vector.extract_strided_slice %157 {offsets = [0, 542], sizes = [16, 16], strides = [1, 1]} : vector<16x614xf32> to vector<16x16xf32>
    %c0_99 = arith.constant 0 : index
    %c448 = arith.constant 448 : index
    %215 = vector.load %arg11[%c0_99, %c448] : memref<16x512xf32, #tpu.memory_space<vmem>>, vector<16x16xf32>
    tpu.vector_store %arg11[%c0_99, %c448], %214 {strides = array<i32>} : memref<16x512xf32, #tpu.memory_space<vmem>>, vector<16x16xf32>,
    %216 = vector.extract_strided_slice %157 {offsets = [0, 560], sizes = [16, 16], strides = [1, 1]} : vector<16x614xf32> to vector<16x16xf32>
    %c0_100 = arith.constant 0 : index
    %c464 = arith.constant 464 : index
    %217 = vector.load %arg11[%c0_100, %c464] : memref<16x512xf32, #tpu.memory_space<vmem>>, vector<16x16xf32>
    tpu.vector_store %arg11[%c0_100, %c464], %216 {strides = array<i32>} : memref<16x512xf32, #tpu.memory_space<vmem>>, vector<16x16xf32>,
    %218 = vector.extract_strided_slice %157 {offsets = [0, 578], sizes = [16, 16], strides = [1, 1]} : vector<16x614xf32> to vector<16x16xf32>
    %c0_101 = arith.constant 0 : index
    %c480 = arith.constant 480 : index
    %219 = vector.load %arg11[%c0_101, %c480] : memref<16x512xf32, #tpu.memory_space<vmem>>, vector<16x16xf32>
    tpu.vector_store %arg11[%c0_101, %c480], %218 {strides = array<i32>} : memref<16x512xf32, #tpu.memory_space<vmem>>, vector<16x16xf32>,
    %220 = vector.extract_strided_slice %157 {offsets = [0, 596], sizes = [16, 16], strides = [1, 1]} : vector<16x614xf32> to vector<16x16xf32>
    %c0_102 = arith.constant 0 : index
    %c496 = arith.constant 496 : index
    %221 = vector.load %arg11[%c0_102, %c496] : memref<16x512xf32, #tpu.memory_space<vmem>>, vector<16x16xf32>
    tpu.vector_store %arg11[%c0_102, %c496], %220 {strides = array<i32>} : memref<16x512xf32, #tpu.memory_space<vmem>>, vector<16x16xf32>,
    %c0_103 = arith.constant 0 : index
    %c0_104 = arith.constant 0 : index
    %222 = vector.load %arg11[%c0_103, %c0_104] : memref<16x512xf32, #tpu.memory_space<vmem>>, vector<16x512xf32>
    %c0_105 = arith.constant 0 : index
    %c0_106 = arith.constant 0 : index
    %223 = vector.load %arg4[%c0_105, %c0_106] : memref<16x3xf32, #tpu.memory_space<vmem>>, vector<16x1xf32>
    %224 = vector.broadcast %223 : vector<16x1xf32> to vector<16x512xf32>
    %225 = arith.addf %222, %224 : vector<16x512xf32>
    %c0_107 = arith.constant 0 : index
    %c1_108 = arith.constant 1 : index
    %226 = vector.load %arg4[%c0_107, %c1_108] : memref<16x3xf32, #tpu.memory_space<vmem>>, vector<16x1xf32>
    %c0_109 = arith.constant 0 : index
    %c2_110 = arith.constant 2 : index
    %227 = vector.load %arg4[%c0_109, %c2_110] : memref<16x3xf32, #tpu.memory_space<vmem>>, vector<16x1xf32>
    %cst_111 = arith.constant dense<0.000000e+00> : vector<16xf32>
    %228 = vector.multi_reduction <add>, %225, %cst_111 [1] : vector<16x512xf32> to vector<16xf32>
    %229 = vector.shape_cast %228 : vector<16xf32> to vector<16x1xf32>
    %230 = arith.mulf %225, %225 : vector<16x512xf32>
    %cst_112 = arith.constant dense<0.000000e+00> : vector<16xf32>
    %231 = vector.multi_reduction <add>, %230, %cst_112 [1] : vector<16x512xf32> to vector<16xf32>
    %232 = vector.shape_cast %231 : vector<16xf32> to vector<16x1xf32>
    %cst_113 = arith.constant 0.001953125 : f32
    %233 = vector.broadcast %cst_113 : f32 to vector<16x1xf32>
    %234 = arith.mulf %229, %233 : vector<16x1xf32>
    %cst_114 = arith.constant 0.001953125 : f32
    %235 = vector.broadcast %cst_114 : f32 to vector<16x1xf32>
    %236 = arith.mulf %232, %235 : vector<16x1xf32>
    %237 = arith.mulf %234, %234 : vector<16x1xf32>
    %238 = arith.subf %236, %237 : vector<16x1xf32>
    %cst_115 = arith.constant 0.000000e+00 : f32
    %239 = vector.broadcast %cst_115 : f32 to vector<16x1xf32>
    %240 = arith.maximumf %238, %239 : vector<16x1xf32>
    %241 = vector.broadcast %234 : vector<16x1xf32> to vector<16x512xf32>
    %242 = arith.subf %225, %241 : vector<16x512xf32>
    %cst_116 = arith.constant 9.99999974E-6 : f32
    %243 = vector.broadcast %cst_116 : f32 to vector<16x1xf32>
    %244 = arith.addf %240, %243 : vector<16x1xf32>
    %245 = math.rsqrt %244 : vector<16x1xf32>
    %246 = arith.mulf %245, %226 : vector<16x1xf32>
    %247 = vector.broadcast %246 : vector<16x1xf32> to vector<16x512xf32>
    %248 = arith.mulf %242, %247 : vector<16x512xf32>
    %249 = vector.broadcast %227 : vector<16x1xf32> to vector<16x512xf32>
    %250 = arith.addf %248, %249 : vector<16x512xf32>
    %251 = math.absf %250 : vector<16x512xf32>
    %cst_117 = arith.constant 0.000000e+00 : f32
    %252 = vector.broadcast %cst_117 : f32 to vector<16x512xf32>
    %253 = arith.subf %252, %251 : vector<16x512xf32>
    %254 = math.exp %253 : vector<16x512xf32>
    %cst_118 = arith.constant 1.000000e+00 : f32
    %255 = vector.broadcast %cst_118 : f32 to vector<16x512xf32>
    %256 = arith.addf %255, %254 : vector<16x512xf32>
    %257 = tpu.reciprocal %256 {approx = true} : vector<16x512xf32> -> vector<16x512xf32>
    %cst_119 = arith.constant 0.000000e+00 : f32
    %258 = vector.broadcast %cst_119 : f32 to vector<16x512xf32>
    %259 = arith.cmpf oge, %250, %258 : vector<16x512xf32>
    %260 = arith.mulf %254, %257 : vector<16x512xf32>
    %261 = arith.select %259, %257, %260 : vector<16x512xi1>, vector<16x512xf32>
    %262 = arith.mulf %250, %261 : vector<16x512xf32>
    %263 = vector.extract_strided_slice %262 {offsets = [0, 0], sizes = [16, 256], strides = [1, 1]} : vector<16x512xf32> to vector<16x256xf32>
    %cst_120 = arith.constant dense<0.000000e+00> : vector<16xf32>
    %264 = vector.multi_reduction <add>, %263, %cst_120 [1] : vector<16x256xf32> to vector<16xf32>
    %265 = vector.shape_cast %264 : vector<16xf32> to vector<16x1xf32>
    %266 = vector.extract_strided_slice %262 {offsets = [0, 256], sizes = [16, 256], strides = [1, 1]} : vector<16x512xf32> to vector<16x256xf32>
    %cst_121 = arith.constant dense<0.000000e+00> : vector<16xf32>
    %267 = vector.multi_reduction <add>, %266, %cst_121 [1] : vector<16x256xf32> to vector<16xf32>
    %268 = vector.shape_cast %267 : vector<16xf32> to vector<16x1xf32>
    %269 = tpu.concatenate %265, %268 in 1 : vector<16x1xf32>, vector<16x1xf32> -> vector<16x2xf32>
    %cst_122 = arith.constant 3.906250e-03 : f32
    %270 = vector.broadcast %cst_122 : f32 to vector<16x2xf32>
    %271 = arith.mulf %269, %270 : vector<16x2xf32>
    %c0_123 = arith.constant 0 : index
    %c0_124 = arith.constant 0 : index
    %272 = vector.load %arg5[%c0_123, %c0_124] : memref<16x1xf32, #tpu.memory_space<vmem>>, vector<16x1xf32>
    %c0_125 = arith.constant 0 : index
    %c0_126 = arith.constant 0 : index
    %273 = vector.load %arg6[%c0_125, %c0_126] : memref<16x1xf32, #tpu.memory_space<vmem>>, vector<16x1xf32>
    %274 = vector.broadcast %272 : vector<16x1xf32> to vector<16x2xf32>
    %275 = arith.mulf %274, %271 : vector<16x2xf32>
    %cst_127 = arith.constant dense<0.000000e+00> : vector<2xf32>
    %276 = vector.multi_reduction <add>, %275, %cst_127 [0] : vector<16x2xf32> to vector<2xf32>
    %277 = vector.shape_cast %276 : vector<2xf32> to vector<1x2xf32>
    %278 = math.absf %277 : vector<1x2xf32>
    %cst_128 = arith.constant 0.000000e+00 : f32
    %279 = vector.broadcast %cst_128 : f32 to vector<1x2xf32>
    %280 = arith.subf %279, %278 : vector<1x2xf32>
    %281 = math.exp %280 : vector<1x2xf32>
    %cst_129 = arith.constant 1.000000e+00 : f32
    %282 = vector.broadcast %cst_129 : f32 to vector<1x2xf32>
    %283 = arith.addf %282, %281 : vector<1x2xf32>
    %284 = tpu.reciprocal %283 {approx = true} : vector<1x2xf32> -> vector<1x2xf32>
    %cst_130 = arith.constant 0.000000e+00 : f32
    %285 = vector.broadcast %cst_130 : f32 to vector<1x2xf32>
    %286 = arith.cmpf oge, %277, %285 : vector<1x2xf32>
    %287 = arith.mulf %281, %284 : vector<1x2xf32>
    %288 = arith.select %286, %284, %287 : vector<1x2xi1>, vector<1x2xf32>
    %289 = arith.mulf %277, %288 : vector<1x2xf32>
    %cst_131 = arith.constant 0.000000e+00 : f32
    %290 = vector.broadcast %cst_131 : f32 to vector<16x2xf32>
    %291 = vector.broadcast %273 : vector<16x1xf32> to vector<16x2xf32>
    %292 = vector.broadcast %289 : vector<1x2xf32> to vector<16x2xf32>
    %293 = arith.mulf %291, %292 : vector<16x2xf32>
    %294 = arith.addf %290, %293 : vector<16x2xf32>
    %295 = math.absf %294 : vector<16x2xf32>
    %cst_132 = arith.constant 0.000000e+00 : f32
    %296 = vector.broadcast %cst_132 : f32 to vector<16x2xf32>
    %297 = arith.subf %296, %295 : vector<16x2xf32>
    %298 = math.exp %297 : vector<16x2xf32>
    %cst_133 = arith.constant 1.000000e+00 : f32
    %299 = vector.broadcast %cst_133 : f32 to vector<16x2xf32>
    %300 = arith.addf %299, %298 : vector<16x2xf32>
    %301 = tpu.reciprocal %300 {approx = true} : vector<16x2xf32> -> vector<16x2xf32>
    %cst_134 = arith.constant 0.000000e+00 : f32
    %302 = vector.broadcast %cst_134 : f32 to vector<16x2xf32>
    %303 = arith.cmpf oge, %294, %302 : vector<16x2xf32>
    %304 = arith.mulf %298, %301 : vector<16x2xf32>
    %305 = arith.select %303, %301, %304 : vector<16x2xi1>, vector<16x2xf32>
    %306 = vector.extract_strided_slice %262 {offsets = [0, 0], sizes = [16, 256], strides = [1, 1]} : vector<16x512xf32> to vector<16x256xf32>
    %307 = vector.extract_strided_slice %305 {offsets = [0, 0], sizes = [16, 1], strides = [1, 1]} : vector<16x2xf32> to vector<16x1xf32>
    %308 = vector.broadcast %307 : vector<16x1xf32> to vector<16x256xf32>
    %309 = arith.mulf %306, %308 : vector<16x256xf32>
    %310 = vector.extract_strided_slice %262 {offsets = [0, 256], sizes = [16, 256], strides = [1, 1]} : vector<16x512xf32> to vector<16x256xf32>
    %311 = vector.extract_strided_slice %305 {offsets = [0, 1], sizes = [16, 1], strides = [1, 1]} : vector<16x2xf32> to vector<16x1xf32>
    %312 = vector.broadcast %311 : vector<16x1xf32> to vector<16x256xf32>
    %313 = arith.mulf %310, %312 : vector<16x256xf32>
    %314 = tpu.concatenate %309, %313 in 1 : vector<16x256xf32>, vector<16x256xf32> -> vector<16x512xf32>
    %c0_135 = arith.constant 0 : index
    %c0_136 = arith.constant 0 : index
    %315 = vector.load %arg7[%c0_135, %c0_136] : memref<8x16xbf16, #tpu.memory_space<vmem>>, vector<8x16xbf16>
    %316 = arith.truncf %314 : vector<16x512xf32> to vector<16x512xbf16>
    %cst_137 = arith.constant dense<0.000000e+00> : vector<8x512xf32>
    %317 = tpu.matmul %315, %316, %cst_137 {dimension_numbers = #tpu.dot_dimension_numbers<[1], [0], [0], [1], [0, 0, 1, 1], [], []>} : vector<8x16xbf16>, vector<16x512xbf16>, vector<8x512xf32> -> vector<8x512xf32>
    %c0_138 = arith.constant 0 : index
    %c0_139 = arith.constant 0 : index
    %318 = vector.load %arg8[%c0_138, %c0_139] : memref<8x2xf32, #tpu.memory_space<vmem>>, vector<8x1xf32>
    %c0_140 = arith.constant 0 : index
    %c1_141 = arith.constant 1 : index
    %319 = vector.load %arg8[%c0_140, %c1_141] : memref<8x2xf32, #tpu.memory_space<vmem>>, vector<8x1xf32>
    %cst_142 = arith.constant dense<0.000000e+00> : vector<8xf32>
    %320 = vector.multi_reduction <add>, %317, %cst_142 [1] : vector<8x512xf32> to vector<8xf32>
    %321 = vector.shape_cast %320 : vector<8xf32> to vector<8x1xf32>
    %322 = arith.mulf %317, %317 : vector<8x512xf32>
    %cst_143 = arith.constant dense<0.000000e+00> : vector<8xf32>
    %323 = vector.multi_reduction <add>, %322, %cst_143 [1] : vector<8x512xf32> to vector<8xf32>
    %324 = vector.shape_cast %323 : vector<8xf32> to vector<8x1xf32>
    %cst_144 = arith.constant 0.001953125 : f32
    %325 = vector.broadcast %cst_144 : f32 to vector<8x1xf32>
    %326 = arith.mulf %321, %325 : vector<8x1xf32>
    %cst_145 = arith.constant 0.001953125 : f32
    %327 = vector.broadcast %cst_145 : f32 to vector<8x1xf32>
    %328 = arith.mulf %324, %327 : vector<8x1xf32>
    %329 = arith.mulf %326, %326 : vector<8x1xf32>
    %330 = arith.subf %328, %329 : vector<8x1xf32>
    %cst_146 = arith.constant 0.000000e+00 : f32
    %331 = vector.broadcast %cst_146 : f32 to vector<8x1xf32>
    %332 = arith.maximumf %330, %331 : vector<8x1xf32>
    %333 = vector.broadcast %326 : vector<8x1xf32> to vector<8x512xf32>
    %334 = arith.subf %317, %333 : vector<8x512xf32>
    %cst_147 = arith.constant 9.99999974E-6 : f32
    %335 = vector.broadcast %cst_147 : f32 to vector<8x1xf32>
    %336 = arith.addf %332, %335 : vector<8x1xf32>
    %337 = math.rsqrt %336 : vector<8x1xf32>
    %338 = arith.mulf %337, %318 : vector<8x1xf32>
    %339 = vector.broadcast %338 : vector<8x1xf32> to vector<8x512xf32>
    %340 = arith.mulf %334, %339 : vector<8x512xf32>
    %341 = vector.broadcast %319 : vector<8x1xf32> to vector<8x512xf32>
    %342 = arith.addf %340, %341 : vector<8x512xf32>
    %343 = math.absf %342 : vector<8x512xf32>
    %cst_148 = arith.constant 0.000000e+00 : f32
    %344 = vector.broadcast %cst_148 : f32 to vector<8x512xf32>
    %345 = arith.subf %344, %343 : vector<8x512xf32>
    %346 = math.exp %345 : vector<8x512xf32>
    %cst_149 = arith.constant 1.000000e+00 : f32
    %347 = vector.broadcast %cst_149 : f32 to vector<8x512xf32>
    %348 = arith.addf %347, %346 : vector<8x512xf32>
    %349 = tpu.reciprocal %348 {approx = true} : vector<8x512xf32> -> vector<8x512xf32>
    %cst_150 = arith.constant 0.000000e+00 : f32
    %350 = vector.broadcast %cst_150 : f32 to vector<8x512xf32>
    %351 = arith.cmpf oge, %342, %350 : vector<8x512xf32>
    %352 = arith.mulf %346, %349 : vector<8x512xf32>
    %353 = arith.select %351, %349, %352 : vector<8x512xi1>, vector<8x512xf32>
    %354 = arith.mulf %342, %353 : vector<8x512xf32>
    %355 = vector.extract_strided_slice %354 {offsets = [0, 0], sizes = [8, 256], strides = [1, 1]} : vector<8x512xf32> to vector<8x256xf32>
    %c0_151 = arith.constant 0 : index
    %c0_152 = arith.constant 0 : index
    %c0_153 = arith.constant 0 : index
    %356 = vector.load %arg9[%c0_151, %c0_152, %c0_153] : memref<2x8x256xf32, #tpu.memory_space<vmem>>, vector<1x8x256xf32>
    %357 = vector.shape_cast %356 : vector<1x8x256xf32> to vector<8x256xf32>
    %358 = vector.shape_cast %355 : vector<8x256xf32> to vector<1x8x256xf32>
    tpu.vector_store %arg9[%c0_151, %c0_152, %c0_153], %358 {strides = array<i32>} : memref<2x8x256xf32, #tpu.memory_space<vmem>>, vector<1x8x256xf32>,
    %359 = vector.extract_strided_slice %354 {offsets = [0, 256], sizes = [8, 256], strides = [1, 1]} : vector<8x512xf32> to vector<8x256xf32>
    %c1_154 = arith.constant 1 : index
    %c0_155 = arith.constant 0 : index
    %c0_156 = arith.constant 0 : index
    %360 = vector.load %arg9[%c1_154, %c0_155, %c0_156] : memref<2x8x256xf32, #tpu.memory_space<vmem>>, vector<1x8x256xf32>
    %361 = vector.shape_cast %360 : vector<1x8x256xf32> to vector<8x256xf32>
    %362 = vector.shape_cast %359 : vector<8x256xf32> to vector<1x8x256xf32>
    tpu.vector_store %arg9[%c1_154, %c0_155, %c0_156], %362 {strides = array<i32>} : memref<2x8x256xf32, #tpu.memory_space<vmem>>, vector<1x8x256xf32>,
    return
  }
}

</mosaic_0001>

<bundles_post_ra>
// kernel: tpu_custom_call.1
= control target key start
LH: loop header
LB: loop body
LE: loop exit
PB: predicated region body
PF: predicated region fallthrough
CT: control target
= control target key end

     0   :  { %vm58_vm0 = vcmask 1041408   ;;  %v3917_v3 = vmov 1   ;;  %v3919_v8 = vmov 0   ;;  %s3907_s0 = inlined_call_operand.vmem [shape: f32[2,4,256], index: 0, kind: input, shape index: {}]   ;;  %s3908_s1 = inlined_call_operand.vmem [shape: bf16[16,4], index: 1, kind: input, shape index: {}]   ;;  %s3909_s2 = inlined_call_operand.vmem [shape: f32[16,2], index: 2, kind: input, shape index: {}]   ;;  %s3910_s3 = inlined_call_operand.vmem [shape: f32[16,9], index: 3, kind: input, shape index: {}]   ;;  %s3911_s4 = inlined_call_operand.vmem [shape: f32[16,3], index: 4, kind: input, shape index: {}]   ;;  %s3912_s5 = inlined_call_operand.vmem [shape: f32[16,1], index: 5, kind: input, shape index: {}]   ;;  %s3913_s6 = inlined_call_operand.vmem [shape: f32[16,1], index: 6, kind: input, shape index: {}]   ;;  %s3914_s7 = inlined_call_operand.vmem [shape: bf16[8,16], index: 7, kind: input, shape index: {}]   ;;  %s3915_s8 = inlined_call_operand.vmem [shape: f32[8,2], index: 8, kind: input, shape index: {}]   ;;  %s3916_s9 = inlined_call_operand.hbm [shape: f32[2,8,256], index: 9, kind: output, shape index: {}]  }
   0x1   :  { %v2513_v0 = vld [vmem:[%s3909_s2] sm:$0xff]  ;;  %v2139_v2 = vld [vmem:[%s3907_s0 + $0x8] sm:$0xff]  ;;  %2226 = vset.pattern.permute.xlu1 %v3917_v3  ;;  %103 = vmatprep.mubr.bf16.mxu0 %v3919_v8 }
   0x2   :  { %v34_v1 = vld [vmem:[%s3907_s0] sm:$0xff]  ;;  %v41_v5 = vcombine.high %v2139_v2, %v2139_v2  ;;  %v45_v7 = vpack.c.bf16 %v2139_v2, %v2139_v2  ;;  %231 = vperm.xlu1 %2226, %v2513_v0   ;;  %146 = vmatprep.mubr.bf16.mxu1 %v3919_v8  ;;  %v2530_v13 = vld [vmem:[%s3910_s3 + $0x8] sm:$0xff] }
   0x3   :  { %v38_v4 = vcombine.high %v34_v1, %v34_v1  ;;  %v43_v6 = vpack.c.bf16 %v34_v1, %v34_v1  ;;  %2227 = vset.pattern.permute.xlu0 %v3917_v3 }
   0x4   :  { %v46_v10 = vpack.c.bf16 %v41_v5, %v41_v5  ;;  %v66_v12 = vsel %vm58_vm0, %v45_v7, 0 }
   0x5   :  { %v44_v9 = vpack.c.bf16 %v38_v4, %v38_v4  ;;  %v60_v11 = vsel %vm58_vm0, %v43_v6, 0 }
   0x6   :  { %14 = vsyncpa [#allocation5], 0  ;;  %v2536_v14 = vld [vmem:[%s3909_s2 + $0x8] sm:$0xff]  ;;  %689 = vperm.xlu0 %2227, %v2530_v13   ;;  %2143 = vmatprep.subr.msk.bf16.mxu1 %vm58_vm0, %v46_v10  ;;  %v2252_v15 = vld [vmem:[%s3908_s1] sm:$0xff]   ;;  %vm54_vm1 = vcmask 31744   ;;  %v3921_v17 = vmov 2  }
   0x7   :  { %2141 = vmatprep.subr.msk.bf16.mxu0 %vm58_vm0, %v44_v9  ;;  %115 = vmatpush1.bf16.msra.mxu1 %v66_v12  ;;  %v642_v16 = vld [vmem:[%s3910_s3] sm:$0xff]  ;;  %v2384_v18 = vmov 3   ;;  %v2385_v19 = vmov 5   ;;  %v2386_v20 = vmov 6   ;;  %v2387_v21 = vmov 4   ;;  %v1647_v26 = vld [vmem:[%s3911_s4 + $0x8] sm:$0xff] }
   0x8   :  { %72 = vmatpush1.bf16.msra.mxu0 %v60_v11  ;;  %236 = vperm.xlu1 %2226, %v2536_v14   ;;  %v2388_v22 = vmov 8   ;;  %v1646_v23 = vld [vmem:[%s3911_s4] sm:$0xff]  ;;  %vm332_vm2 = vcmask 97280   ;;  %v2389_v24 = vmov 0.0   ;;  %v2390_v25 = vmov 7   ;;  %s2391_s23 = smov 92  }
   0x9   :  { %333 = vst.msk [vmem:[#allocation2 + $0x28] sm:$0xff] %vm332_vm2, %v2389_v24  ;;  %327 = vst [vmem:[#allocation2] sm:$0xff] %v2389_v24  ;;  %s2392_s24 = smov 91   ;;  %s2393_s25 = smov 90   ;;  %vm404_vm11 = vcmask 121856   ;;  %vm414_vm12 = vcmask 269448  }
   0xa   :  { %2228 = vset.pattern.permute.xlu0 %v3921_v17  ;;  %2144 = vmatmul.mubr.msk.bf16.vlgmr.msra.gmra.mrb[0].mxu1 %vm54_vm1, %v2252_v15  ;;  %328 = vst [vmem:[#allocation2 + $0x8] sm:$0xff] %v2389_v24  ;;  %329 = vst [vmem:[#allocation2 + $0x10] sm:$0xff] %v2389_v24  ;;  %s2394_s26 = smov 31   ;;  %s2395_s27 = smov 117   ;;  %vm348_vm13 = vcmask 285848   ;;  %vm425_vm14 = vcmask 417048  }
   0xb   :  { %2142 = vmatmul.mubr.msk.bf16.vlgmr.msra.gmra.mrb[0].mxu0 %vm54_vm1, %v2252_v15  ;;  %762 = vperm.xlu0 %2228, %v642_v16   ;;  %330 = vst [vmem:[#allocation2 + $0x18] sm:$0xff] %v2389_v24  ;;  %331 = vst [vmem:[#allocation2 + $0x20] sm:$0xff] %v2389_v24  ;;  %s2396_s28 = smov 33   ;;  %s2397_s29 = smov 19   ;;  %vm472_vm15 = vcmask 105472   ;;  %vm357_vm0 = vcmask 433448  }
   0xc   :  { %1983 = vmatprep.mubr.bf16.mxu0 %v3919_v8  ;;  %685 = vperm.xlu1 %2226, %v642_v16   ;;  %334 = vst [vmem:[#allocation2 + $0x30] sm:$0xff] %v2389_v24  ;;  %335 = vst [vmem:[#allocation2 + $0x38] sm:$0xff] %v2389_v24  ;;  %s2398_s30 = smov 35   ;;  %s2399_s10 = smov 45   ;;  %vm434_vm1 = vcmask 564648  }
   0xd   :  { %2024 = vmatprep.mubr.bf16.mxu1 %v3919_v8  ;;  %336 = vst [vmem:[#allocation2 + $0x40] sm:$0xff] %v2389_v24  ;;  %337 = vst [vmem:[#allocation2 + $0x48] sm:$0xff] %v2389_v24  ;;  %s2400_s11 = smov 93   ;;  %s2401_s12 = smov 21  }
   0xe   :  { %338 = vst [vmem:[#allocation2 + $0x50] sm:$0xff] %v2389_v24  ;;  %339 = vst.msk [vmem:[#allocation2 + $0x58] sm:$0xff] %vm332_vm2, %v2389_v24  ;;  %s2402_s13 = smov 37   ;;  %s2403_s14 = smov 47   ;;  %vm482_vm2 = vcmask 253048  }
   0xf   :  { %2231 = vset.pattern.permute.xlu0 %v2384_v18  ;;  %s2404_s0 = smov 95   ;;  %s2405_s15 = smov 23  }
  0x10   :  { %2229 = vset.pattern.permute.xlu1 %v3921_v17  ;;  %843 = vperm.xlu0 %2231, %v2530_v13   ;;  %v1074_v42 = vld [vmem:[#allocation2 + $0x28] sm:$0xff]  ;;  %s2406_s16 = smov 39   ;;  %s2407_s17 = smov 49  }
  0x11   :  { %766 = vperm.xlu1 %2229, %v2530_v13   ;;  %s2408_s18 = smov 97   ;;  %s2409_s19 = smov 25  }
  0x12   :  { %s2410_s20 = smov 41   ;;  %s2411_s21 = smov 89  }
  0x13   :  { %s2412_s1 = smov 99   ;;  %s2413_s2 = smov 107  }
  0x14   :  { %2233 = vset.pattern.permute.xlu0 %v2385_v19  ;;  %s2414_s3 = smov 27   ;;  %s2415_s22 = smov 43  }
  0x15   :  { %2230 = vset.pattern.permute.xlu1 %v2384_v18  ;;  %993 = vperm.xlu0 %2233, %v642_v16   ;;  %v1080_v36 = vld [vmem:[#allocation2 + $0x58] sm:$0xff] }
  0x16   :  { %839 = vperm.xlu1 %2230, %v642_v16  }
  0x19   :  { %2236 = vset.pattern.permute.xlu0 %v2386_v20 }
  0x1a   :  { %2232 = vset.pattern.permute.xlu1 %v2387_v21  ;;  %1086 = vperm.xlu0 %2236, %v2530_v13  }
  0x1b   :  { %916 = vperm.xlu1 %2232, %v642_v16  }
  0x1e   :  { %2238 = vset.pattern.permute.xlu0 %v2388_v22 }
  0x1f   :  { %920 = vperm.xlu1 %2232, %v2530_v13   ;;  %1256 = vperm.xlu0 %2238, %v642_v16  }
  0x23   :  { %2234 = vset.pattern.permute.xlu1 %v2385_v19  ;;  %2241 = vset.pattern.permute.xlu0 %v3919_v8 }
  0x24   :  { %997 = vperm.xlu1 %2234, %v2530_v13   ;;  %661 = vperm.xlu0 %2241, %v2530_v13  }
  0x28   :  { %2235 = vset.pattern.permute.xlu1 %v2386_v20  ;;  %1650 = vperm.xlu0 %2241, %v1646_v23  }
  0x29   :  { %1082 = vperm.xlu1 %2235, %v642_v16  }
  0x2d   :  { %2237 = vset.pattern.permute.xlu1 %v2390_v25 }
  0x2e   :  { %1169 = vperm.xlu1 %2237, %v642_v16  }
  0x32   :  { %1173 = vperm.xlu1 %2237, %v2530_v13  }
  0x36   :  { %2239 = vset.pattern.permute.xlu1 %v2388_v22 }
  0x37   :  { %1260 = vperm.xlu1 %2239, %v2530_v13  }
  0x3b   :  { %2240 = vset.pattern.permute.xlu1 %v3919_v8 }
  0x3c   :  { %656 = vperm.xlu1 %2240, %v642_v16  }
  0x40   :  { %1655 = vperm.xlu1 %2240, %v1647_v26  }
  0x81   :  { %v2568_v27 = vpop.permute.xlu1 %231 }
  0x85   :  { %v2570_v28 = vpop.permute.xlu0 %689 }
  0x87   :  { %v2572_v29 = vpop.permute.xlu1 %236 }
  0x8a   :  { %v2574_v30 = vpop.permute.xlu0 %762 }
  0x8b   :  { %v2576_v31 = vpop.permute.xlu1 %685 }
  0x8f   :  { %v2578_v32 = vpop.permute.xlu0 %843 }
  0x90   :  { %v2580_v33 = vpop.permute.xlu1 %766 }
  0x94   :  { %v2582_v34 = vpop.permute.xlu0 %993 }
  0x95   :  { %v2584_v35 = vpop.permute.xlu1 %839 }
  0x99   :  { %v2586_v37 = vpop.permute.xlu0 %1086 }
  0x9a   :  { %v2588_v38 = vpop.permute.xlu1 %916  ;;  %v1100_v39 = vmul.f32 %v2586_v37, %v1080_v36 }
  0x9c   :  { %1135 = vrot.lane.b32.xlu1 %v1100_v39, %s2391_s23 }
  0x9e   :  { %v2592_v40 = vpop.permute.xlu1 %920  ;;  %v2602_v46 = vpop.permute.xlu0 %1256 }
  0x9f   :  { %v1268_v48 = vmul.f32 %v2602_v46, %v1074_v42 }
  0xa3   :  { %v2594_v41 = vpop.permute.xlu1 %997  ;;  %v2656_v22 = vpop.permute.xlu0 %661 }
  0xa4   :  { %3938 = vst [vmem:[#allocation7_spill] sm:$0xff] %v2656_v22 }
  0xa7   :  { %v2660_v24 = vpop.permute.xlu0 %1650 }
  0xa8   :  { %v2596_v43 = vpop.permute.xlu1 %1082  ;;  %3939 = vst [vmem:[#allocation8_spill] sm:$0xff] %v2660_v24 }
  0xa9   :  { %v1094_v44 = vmul.f32 %v2596_v43, %v1074_v42 }
  0xab   :  { %1123 = vrot.lane.b32.xlu0 %v1094_v44, %s2391_s23 }
  0xad   :  { %v2600_v45 = vpop.permute.xlu1 %1169 }
  0xae   :  { %v1181_v47 = vmul.f32 %v2600_v45, %v1074_v42 }
  0xb0   :  { %1210 = vrot.lane.b32.xlu0 %v1181_v47, %s2392_s24 }
  0xb1   :  { %v2607_v49 = vpop.permute.xlu1 %1173 }
  0xb2   :  { %v1187_v50 = vmul.f32 %v2607_v49, %v1080_v36 }
  0xb4   :  { %1222 = vrot.lane.b32.xlu1 %v1187_v50, %s2392_s24  ;;  %1297 = vrot.lane.b32.xlu0 %v1268_v48, %s2393_s25 }
  0xb6   :  { %v2612_v51 = vpop.permute.xlu1 %1260 }
  0xb7   :  { %v1274_v52 = vmul.f32 %v2612_v51, %v1080_v36 }
  0xb9   :  { %1309 = vrot.lane.b32.xlu1 %v1274_v52, %s2393_s25 }
  0xbb   :  { %v2658_v23 = vpop.permute.xlu1 %656 }
  0xbf   :  { %v2662_v25 = vpop.permute.xlu1 %1655 }
  0xc0   :  { %3940 = vst [vmem:[#allocation9_spill] sm:$0xff] %v2662_v25 }
  0xdd   :  { %v2618_v54 = vpop.f32.mrb[0].mxu1 }
  0xde   :  { %v2616_v53 = vpop.f32.mrb[0].mxu0  ;;  %v2624_v57 = vpop.f32.mrb[1].mxu1  ;;  %v171_v58 = vmul.f32 %v2618_v54, %v2618_v54 }
  0xdf   :  { %v169_v55 = vmul.f32 %v2616_v53, %v2616_v53  ;;  %v2622_v56 = vpop.f32.mrb[1].mxu0  ;;  %v2634_v62 = vpop.f32.mrb[2].mxu1  ;;  %v172_v10 = vmul.f32 %v2624_v57, %v2624_v57 }
  0xe0   :  { %v159_v59 = vadd.f32 %v2622_v56, %v2616_v53  ;;  %v170_v60 = vmul.f32 %v2622_v56, %v2622_v56  ;;  %v2632_v61 = vpop.f32.mrb[2].mxu0  ;;  %v2640_v2 = vpop.f32.mrb[3].mxu1  ;;  %v175_v9 = vmul.f32 %v2634_v62, %v2634_v62 }
  0xe1   :  { %v173_v63 = vmul.f32 %v2632_v61, %v2632_v61  ;;  %v2638_v1 = vpop.f32.mrb[3].mxu0  ;;  %v176_v19 = vmul.f32 %v2640_v2, %v2640_v2 }
  0xe2   :  { %v164_v4 = vadd.f32 %v2638_v1, %v2632_v61  ;;  %v174_v5 = vmul.f32 %v2638_v1, %v2638_v1  ;;  %v160_v6 = vadd.f32 %v159_v59, %v2618_v54  ;;  %v177_v7 = vadd.f32 %v170_v60, %v169_v55 }
  0xe4   :  { %v161_v11 = vadd.f32 %v160_v6, %v2624_v57  ;;  %v178_v12 = vadd.f32 %v177_v7, %v171_v58  ;;  %v165_v13 = vadd.f32 %v164_v4, %v2634_v62  ;;  %v182_v15 = vadd.f32 %v174_v5, %v173_v63 }
  0xe6   :  { %162 = vadd.xlane.f32.xlu0 %v161_v11  ;;  %v179_v16 = vadd.f32 %v178_v12, %v172_v10  ;;  %v166_v18 = vadd.f32 %v165_v13, %v2640_v2  ;;  %v183_v20 = vadd.f32 %v182_v15, %v175_v9 }
  0xe8   :  { %180 = vadd.xlane.f32.xlu1 %v179_v16  ;;  %v184_v21 = vadd.f32 %v183_v20, %v176_v19 }
  0xea   :  { %167 = vadd.xlane.f32.xlu0 %v166_v18 }
  0xec   :  { %185 = vadd.xlane.f32.xlu1 %v184_v21 }
 0x10e   :  { %v2666_v36 = vpop.permute.xlu1 %1135 }
 0x11d   :  { %v2664_v26 = vpop.permute.xlu0 %1123 }
 0x122   :  { %v2668_v39 = vpop.permute.xlu0 %1210 }
 0x126   :  { %v2670_v42 = vpop.permute.xlu1 %1222  ;;  %v2672_v44 = vpop.permute.xlu0 %1297 }
 0x12b   :  { %v2674_v47 = vpop.permute.xlu1 %1309 }
 0x173   :  { %v163_v48 = vpop.xlane.xlu0 %162 }
 0x174   :  { %v187_v50 = vmul.f32 0.001953125, %v163_v48 }
 0x175   :  { %v181_v52 = vpop.xlane.xlu1 %180 }
 0x176   :  { %v189_v55 = vmul.f32 0.001953125, %v181_v52  ;;  %v191_v58 = vmul.f32 %v187_v50, %v187_v50  ;;  %v197_v59 = vsub.f32 %v2616_v53, %v187_v50  ;;  %v198_v60 = vsub.f32 %v2622_v56, %v187_v50 }
 0x177   :  { %v168_v63 = vpop.xlane.xlu0 %167  ;;  %v199_v4 = vsub.f32 %v2618_v54, %v187_v50  ;;  %v200_v5 = vsub.f32 %v2624_v57, %v187_v50 }
 0x178   :  { %v193_v6 = vsub.f32 %v189_v55, %v191_v58  ;;  %v2680_v7 = vmul.f32 0.001953125, %v168_v63 }
 0x179   :  { %v186_v9 = vpop.xlane.xlu1 %185 }
 0x17a   :  { %v195_v10 = vmax.f32 %v193_v6, 0.0  ;;  %v190_v11 = vmul.f32 0.001953125, %v186_v9  ;;  %v192_v12 = vmul.f32 %v2680_v7, %v2680_v7  ;;  %v201_v13 = vsub.f32 %v2632_v61, %v2680_v7 }
 0x17b   :  { %v202_v53 = vsub.f32 %v2638_v1, %v2680_v7  ;;  %v203_v54 = vsub.f32 %v2634_v62, %v2680_v7  ;;  %v204_v56 = vsub.f32 %v2640_v2, %v2680_v7 }
 0x17c   :  { %v205_v57 = vadd.f32 1e-05, %v195_v10  ;;  %v194_v15 = vsub.f32 %v190_v11, %v192_v12 }
 0x17e   :  { %2253 = vrsqrt.f32 %v205_v57  ;;  %v196_v16 = vmax.f32 %v194_v15, 0.0 }
 0x180   :  { %v206_v18 = vadd.f32 1e-05, %v196_v16 }
 0x182   :  { %2255 = vrsqrt.f32 %v206_v18 }
 0x188   :  { %v2254_v19 = vpop.eup %2253 }
 0x189   :  { %v209_v20 = vmul.f32 %v2254_v19, %v2513_v0 }
 0x18b   :  { %213 = vperm.xlu0 %2241, %v209_v20  }
 0x18c   :  { %v2256_v61 = vpop.eup %2255 }
 0x18d   :  { %v210_v21 = vmul.f32 %v2256_v61, %v2536_v14 }
 0x18f   :  { %218 = vperm.xlu1 %2240, %v210_v21   ;;  %2243 = vset.pattern.permute.xlu0 %v3917_v3 }
 0x193   :  { %2242 = vset.pattern.permute.xlu1 %v3917_v3 }
 0x20a   :  { %v214_v62 = vpop.permute.xlu0 %213 }
 0x20b   :  { %v221_v1 = vmul.f32 %v214_v62, %v197_v59  ;;  %v222_v48 = vmul.f32 %v214_v62, %v198_v60  ;;  %v223_v50 = vmul.f32 %v214_v62, %v199_v4  ;;  %v224_v52 = vmul.f32 %v214_v62, %v200_v5 }
 0x20d   :  { %v2697_v55 = vadd.f32 %v2568_v27, %v221_v1  ;;  %v2700_v58 = vadd.f32 %v2568_v27, %v222_v48  ;;  %v2703_v0 = vadd.f32 %v2568_v27, %v224_v52  ;;  %v2708_v63 = vadd.f32 %v2568_v27, %v223_v50 }
 0x20e   :  { %v2705_v14 = vpop.permute.xlu1 %218 }
 0x20f   :  { %v247_v6 = vand.u32 2147483647, %v2697_v55  ;;  %v248_v59 = vand.u32 2147483647, %v2700_v58  ;;  %v225_v60 = vmul.f32 %v2705_v14, %v201_v13  ;;  %v250_v4 = vand.u32 2147483647, %v2703_v0 }
 0x210   :  { %v226_v11 = vmul.f32 %v2705_v14, %v202_v53  ;;  %v227_v12 = vmul.f32 %v2705_v14, %v203_v54  ;;  %v249_v57 = vand.u32 2147483647, %v2708_v63  ;;  %vm295_vm3 = vcmp.ge.f32.partialorder %v2697_v55, 0.0 }
 0x211   :  { %v255_v5 = vsub.f32 0.0, %v247_v6  ;;  %v256_v9 = vsub.f32 0.0, %v248_v59  ;;  %v258_v10 = vsub.f32 0.0, %v250_v4  ;;  %v2718_v16 = vadd.f32 %v2572_v29, %v225_v60 }
 0x212   :  { %v2721_v19 = vadd.f32 %v2572_v29, %v226_v11  ;;  %v2724_v13 = vadd.f32 %v2572_v29, %v227_v12  ;;  %v257_v61 = vsub.f32 0.0, %v249_v57  ;;  %vm298_vm4 = vcmp.ge.f32.partialorder %v2703_v0, 0.0 }
 0x213   :  { %v263_v15 = vmul.f32 1.442695, %v255_v5  ;;  %v265_v27 = vmul.f32 1.442695, %v256_v9  ;;  %v269_v18 = vmul.f32 1.442695, %v258_v10 }
 0x214   :  { %v251_v20 = vand.u32 2147483647, %v2718_v16  ;;  %v252_v53 = vand.u32 2147483647, %v2721_v19  ;;  %v253_v54 = vand.u32 2147483647, %v2724_v13 }
 0x215   :  { %2257 = vpow2.f32 %v263_v15  ;;  %v267_v6 = vmul.f32 1.442695, %v257_v61  ;;  %vm299_vm5 = vcmp.ge.f32.partialorder %v2718_v16, 0.0  ;;  %vm300_vm6 = vcmp.ge.f32.partialorder %v2721_v19, 0.0 }
 0x216   :  { %2259 = vpow2.f32 %v265_v27  ;;  %v259_v21 = vsub.f32 0.0, %v251_v20  ;;  %v260_v62 = vsub.f32 0.0, %v252_v53  ;;  %v261_v1 = vsub.f32 0.0, %v253_v54 }
 0x217   :  { %2261 = vpow2.f32 %v269_v18  ;;  %vm296_vm7 = vcmp.ge.f32.partialorder %v2700_v58, 0.0  ;;  %vm301_vm8 = vcmp.ge.f32.partialorder %v2724_v13, 0.0  ;;  %vm297_vm9 = vcmp.ge.f32.partialorder %v2708_v63, 0.0 }
 0x218   :  { %v271_v48 = vmul.f32 1.442695, %v259_v21  ;;  %v273_v50 = vmul.f32 1.442695, %v260_v62  ;;  %v275_v52 = vmul.f32 1.442695, %v261_v1 }
 0x21a   :  { %2263 = vpow2.f32 %v271_v48 }
 0x21b   :  { %2265 = vpow2.f32 %v273_v50 }
 0x21c   :  { %2267 = vpow2.f32 %v275_v52 }
 0x21d   :  { %2269 = vpow2.f32 %v267_v6 }
 0x21f   :  { %v2258_v59 = vpop.eup %2257 }
 0x220   :  { %v2260_v60 = vpop.eup %2259  ;;  %v279_v4 = vadd.f32 1.0, %v2258_v59 }
 0x221   :  { %v2262_v5 = vpop.eup %2261  ;;  %v280_v9 = vadd.f32 1.0, %v2260_v60 }
 0x222   :  { %2271 = vrcp.f32 %v279_v4  ;;  %v282_v10 = vadd.f32 1.0, %v2262_v5 }
 0x224   :  { %v2264_v11 = vpop.eup %2263  ;;  %2273 = vrcp.f32 %v282_v10 }
 0x225   :  { %v2266_v12 = vpop.eup %2265  ;;  %v283_v57 = vadd.f32 1.0, %v2264_v11  ;;  %2275 = vrcp.f32 %v280_v9 }
 0x226   :  { %v284_v15 = vadd.f32 1.0, %v2266_v12  ;;  %v2268_v27 = vpop.eup %2267 }
 0x227   :  { %2277 = vrcp.f32 %v283_v57  ;;  %v2270_v18 = vpop.eup %2269  ;;  %v285_v20 = vadd.f32 1.0, %v2268_v27 }
 0x228   :  { %2279 = vrcp.f32 %v284_v15  ;;  %v281_v54 = vadd.f32 1.0, %v2270_v18 }
 0x229   :  { %2281 = vrcp.f32 %v285_v20 }
 0x22a   :  { %2283 = vrcp.f32 %v281_v54  ;;  %v228_v54 = vmul.f32 %v2705_v14, %v204_v56 }
 0x22c   :  { %v2272_v53 = vpop.eup %2271 }
 0x22d   :  { %v303_v61 = vmul.f32 %v2272_v53, %v2258_v59 }
 0x22e   :  { %v2274_v21 = vpop.eup %2273 }
 0x22f   :  { %v311_v62 = vsel %vm295_vm3, %v2272_v53, %v303_v61  ;;  %v306_v1 = vmul.f32 %v2274_v21, %v2262_v5  ;;  %v2276_v50 = vpop.eup %2275  ;;  %vm366_vm3 = vcmask 581048  }
 0x230   :  { %v2731_v48 = vmul.f32 %v311_v62, %v2697_v55  ;;  %v304_v10 = vmul.f32 %v2276_v50, %v2260_v60 }
 0x231   :  { %v2278_v52 = vpop.eup %2277  ;;  %v314_v6 = vsel %vm298_vm4, %v2274_v21, %v306_v1  ;;  %vm443_vm4 = vcmask 712248  }
 0x232   :  { %396 = vrot.lane.b32.xlu1 %v2731_v48, %s2394_s26  ;;  %v2280_v59 = vpop.eup %2279  ;;  %v2737_v4 = vmul.f32 %v314_v6, %v2703_v0  ;;  %v307_v9 = vmul.f32 %v2278_v52, %v2264_v11 }
 0x233   :  { %v308_v5 = vmul.f32 %v2280_v59, %v2266_v12  ;;  %v2282_v11 = vpop.eup %2281  ;;  %v312_v12 = vsel %vm296_vm7, %v2276_v50, %v304_v10  ;;  %vm452_vm7 = vcmask 859848  }
 0x234   :  { %v315_v55 = vsel %vm299_vm5, %v2278_v52, %v307_v9  ;;  %624 = vrot.lane.b32.xlu0 %v2737_v4, %s2395_s27  ;;  %v2284_v60 = vpop.eup %2283  ;;  %v2755_v15 = vmul.f32 %v312_v12, %v2700_v58  ;;  %v309_v20 = vmul.f32 %v2282_v11, %v2268_v27  ;;  %v246_v58 = vadd.f32 %v2572_v29, %v228_v54 }
 0x235   :  { %v2743_v57 = vmul.f32 %v315_v55, %v2718_v16  ;;  %v316_v0 = vsel %vm300_vm6, %v2280_v59, %v308_v5  ;;  %v305_v53 = vmul.f32 %v2284_v60, %v2270_v18  ;;  %vm491_vm5 = vcmask 400648  }
 0x236   :  { %408 = vrot.lane.b32.xlu1 %v2731_v48, %s2396_s28  ;;  %v2752_v16 = vmul.f32 %v316_v0, %v2721_v19  ;;  %v317_v19 = vsel %vm301_vm8, %v2282_v11, %v309_v20  ;;  %v254_v7 = vand.u32 2147483647, %v246_v58  ;;  %vm302_vm10 = vcmp.ge.f32.partialorder %v246_v58, 0.0 }
 0x237   :  { %v313_v61 = vsel %vm297_vm9, %v2284_v60, %v305_v53  ;;  %v2769_v27 = vmul.f32 %v317_v19, %v2724_v13  ;;  %vm375_vm6 = vcmask 728648   ;;  %vm544_vm8 = vcmask 548248  }
 0x238   :  { %344 = vrot.lane.b32.xlu0 %v2743_v57, %s2397_s29  ;;  %v2772_v2 = vmul.f32 %v313_v61, %v2708_v63  ;;  %v262_v56 = vsub.f32 0.0, %v254_v7  ;;  %vm584_vm9 = vcmask 89088  }
 0x23a   :  { %342 = vrot.lane.b32.xlu1 %v2731_v48, %s2397_s29  ;;  %v277_v29 = vmul.f32 1.442695, %v262_v56  ;;  %s2416_s29 = smov 101  }
 0x23c   :  { %421 = vrot.lane.b32.xlu0 %v2752_v16, %s2398_s30  ;;  %2285 = vpow2.f32 %v277_v29 }
 0x23e   :  { %419 = vrot.lane.b32.xlu1 %v2755_v15, %s2398_s30  ;;  %s2417_s30 = smov 109  }
 0x240   :  { %466 = vrot.lane.b32.xlu0 %v2752_v16, %s2399_s10 }
 0x242   :  { %464 = vrot.lane.b32.xlu1 %v2755_v15, %s2399_s10  ;;  %s2418_s10 = smov 29  }
 0x244   :  { %514 = vrot.lane.b32.xlu0 %v2769_v27, %s2400_s11 }
 0x246   :  { %512 = vrot.lane.b32.xlu1 %v2772_v2, %s2400_s11  ;;  %v2286_v14 = vpop.eup %2285  ;;  %s2419_s11 = smov 103  }
 0x247   :  { %v286_v63 = vadd.f32 1.0, %v2286_v14 }
 0x248   :  { %353 = vrot.lane.b32.xlu0 %v2743_v57, %s2401_s12 }
 0x249   :  { %2287 = vrcp.f32 %v286_v63 }
 0x24a   :  { %351 = vrot.lane.b32.xlu1 %v2731_v48, %s2401_s12  ;;  %s2420_s12 = smov 111  }
 0x24c   :  { %430 = vrot.lane.b32.xlu0 %v2752_v16, %s2402_s13 }
 0x24e   :  { %428 = vrot.lane.b32.xlu1 %v2755_v15, %s2402_s13  ;;  %s2421_s13 = smov 105  }
 0x250   :  { %478 = vrot.lane.b32.xlu0 %v2752_v16, %s2403_s14 }
 0x252   :  { %476 = vrot.lane.b32.xlu1 %v2755_v15, %s2403_s14  ;;  %s2422_s14 = smov 113  }
 0x253   :  { %v2288_v13 = vpop.eup %2287 }
 0x254   :  { %524 = vrot.lane.b32.xlu0 %v2769_v27, %s2404_s0  ;;  %v310_v18 = vmul.f32 %v2288_v13, %v2286_v14 }
 0x256   :  { %522 = vrot.lane.b32.xlu1 %v2772_v2, %s2404_s0  ;;  %v318_v21 = vsel %vm302_vm10, %v2288_v13, %v310_v18  ;;  %s2423_s0 = smov 119   ;;  %vm384_vm10 = vcmask 876248  }
 0x257   :  { %v2800_v62 = vmul.f32 %v318_v21, %v246_v58 }
 0x258   :  { %362 = vrot.lane.b32.xlu0 %v2743_v57, %s2405_s15 }
 0x25a   :  { %360 = vrot.lane.b32.xlu1 %v2731_v48, %s2405_s15  ;;  %s2424_s15 = smov 115  }
 0x25c   :  { %439 = vrot.lane.b32.xlu0 %v2752_v16, %s2406_s16 }
 0x25e   :  { %437 = vrot.lane.b32.xlu1 %v2755_v15, %s2406_s16  ;;  %s2428_s16 = smov 108  }
 0x260   :  { %487 = vrot.lane.b32.xlu0 %v2752_v16, %s2407_s17 }
 0x262   :  { %485 = vrot.lane.b32.xlu1 %v2755_v15, %s2407_s17  ;;  %s2432_s17 = smov 32  }
 0x264   :  { %532 = vrot.lane.b32.xlu0 %v2769_v27, %s2408_s18 }
 0x266   :  { %530 = vrot.lane.b32.xlu1 %v2772_v2, %s2408_s18  ;;  %s2433_s18 = smov 112  }
 0x268   :  { %371 = vrot.lane.b32.xlu0 %v2743_v57, %s2409_s19 }
 0x26a   :  { %369 = vrot.lane.b32.xlu1 %v2731_v48, %s2409_s19  ;;  %s2434_s19 = smov 52  }
 0x26c   :  { %448 = vrot.lane.b32.xlu0 %v2752_v16, %s2410_s20 }
 0x26e   :  { %446 = vrot.lane.b32.xlu1 %v2755_v15, %s2410_s20  ;;  %s2435_s20 = smov 100  }
 0x270   :  { %498 = vrot.lane.b32.xlu0 %v2769_v27, %s2411_s21 }
 0x272   :  { %496 = vrot.lane.b32.xlu1 %v2772_v2, %s2411_s21  ;;  %s2436_s21 = smov 124  }
 0x274   :  { %540 = vrot.lane.b32.xlu0 %v2769_v27, %s2412_s1 }
 0x276   :  { %538 = vrot.lane.b32.xlu1 %v2772_v2, %s2412_s1  ;;  %s2437_s1 = smov 114  }
 0x278   :  { %578 = vrot.lane.b32.xlu0 %v2800_v62, %s2413_s2 }
 0x27a   :  { %576 = vrot.lane.b32.xlu1 %v2737_v4, %s2413_s2  ;;  %s2438_s2 = smov 58  }
 0x27c   :  { %380 = vrot.lane.b32.xlu0 %v2743_v57, %s2414_s3 }
 0x27e   :  { %378 = vrot.lane.b32.xlu1 %v2731_v48, %s2414_s3  ;;  %s2439_s3 = smov 122  }
 0x280   :  { %457 = vrot.lane.b32.xlu0 %v2752_v16, %s2415_s22 }
 0x282   :  { %455 = vrot.lane.b32.xlu1 %v2755_v15, %s2415_s22  ;;  %s2440_s22 = smov 106  }
 0x284   :  { %506 = vrot.lane.b32.xlu0 %v2769_v27, %s2392_s24 }
 0x286   :  { %504 = vrot.lane.b32.xlu1 %v2772_v2, %s2392_s24 }
 0x288   :  { %549 = vrot.lane.b32.xlu0 %v2769_v27, %s2416_s29 }
 0x28a   :  { %547 = vrot.lane.b32.xlu1 %v2772_v2, %s2416_s29  ;;  %s2441_s29 = smov 56  }
 0x28c   :  { %590 = vrot.lane.b32.xlu0 %v2800_v62, %s2417_s30 }
 0x28e   :  { %588 = vrot.lane.b32.xlu1 %v2737_v4, %s2417_s30 }
 0x290   :  { %389 = vrot.lane.b32.xlu0 %v2743_v57, %s2418_s10 }
 0x292   :  { %387 = vrot.lane.b32.xlu1 %v2731_v48, %s2418_s10  ;;  %s2443_s10 = smov 104  }
 0x294   :  { %558 = vrot.lane.b32.xlu0 %v2769_v27, %s2419_s11 }
 0x296   :  { %556 = vrot.lane.b32.xlu1 %v2772_v2, %s2419_s11  ;;  %s2444_s11 = smov 54  }
 0x298   :  { %599 = vrot.lane.b32.xlu0 %v2800_v62, %s2420_s12 }
 0x29a   :  { %597 = vrot.lane.b32.xlu1 %v2737_v4, %s2420_s12  ;;  %s2445_s12 = smov 42  }
 0x29c   :  { %569 = vrot.lane.b32.xlu0 %v2800_v62, %s2421_s13 }
 0x29e   :  { %567 = vrot.lane.b32.xlu1 %v2737_v4, %s2421_s13  ;;  %s2446_s13 = smov 118  }
 0x2a0   :  { %608 = vrot.lane.b32.xlu0 %v2800_v62, %s2422_s14 }
 0x2a2   :  { %606 = vrot.lane.b32.xlu1 %v2737_v4, %s2422_s14  ;;  %s2447_s14 = smov 102  }
 0x2a4   :  { %v2828_v1 = vpop.permute.xlu1 %396  ;;  %635 = vrot.lane.b32.xlu0 %v2800_v62, %s2423_s0 }
 0x2a5   :  { %405 = vst.msk [vmem:[#allocation2 + $0x8] sm:$0xff] %vm404_vm11, %v2828_v1 }
 0x2a6   :  { %615 = vrot.lane.b32.xlu1 %v2737_v4, %s2424_s15  ;;  %v2834_v48 = vpop.permute.xlu0 %624 }
 0x2a8   :  { %v409_v50 = vpop.permute.xlu1 %408 }
 0x2a9   :  { %415 = vst.msk [vmem:[#allocation2 + $0x8] sm:$0xff] %vm414_vm12, %v409_v50 }
 0x2aa   :  { %633 = vrot.lane.b32.xlu1 %v2737_v4, %s2423_s0  ;;  %v345_v52 = vpop.permute.xlu0 %344  ;;  %s2448_s0 = smov 40  }
 0x2ab   :  { %350 = vst.msk [vmem:[#allocation2 + $0x30] sm:$0xff] %vm348_vm13, %v345_v52 }
 0x2ac   :  { %v343_v6 = vpop.permute.xlu1 %342 }
 0x2ad   :  { %349 = vst.msk [vmem:[#allocation2] sm:$0xff] %vm348_vm13, %v343_v6  ;;  %vm461_vm13 = vcmask 1007448  }
 0x2ae   :  { %398 = vrot.lane.b32.xlu1 %v2743_v57, %s2394_s26  ;;  %v2840_v59 = vpop.permute.xlu0 %421  ;;  %s2425_s26 = smov 127  }
 0x2b0   :  { %v420_v9 = vpop.permute.xlu1 %419 }
 0x2b1   :  { %426 = vst.msk [vmem:[#allocation2 + $0x8] sm:$0xff] %vm425_vm14, %v420_v9 }
 0x2b2   :  { %410 = vrot.lane.b32.xlu1 %v2743_v57, %s2396_s28  ;;  %v2845_v5 = vpop.permute.xlu0 %466  ;;  %s2427_s28 = smov 110  }
 0x2b3   :  { %475 = vst.msk [vmem:[#allocation2 + $0x40] sm:$0xff] %vm472_vm15, %v2845_v5 }
 0x2b4   :  { %v2848_v4 = vpop.permute.xlu1 %464 }
 0x2b5   :  { %473 = vst.msk [vmem:[#allocation2 + $0x10] sm:$0xff] %vm472_vm15, %v2848_v4 }
 0x2b6   :  { %617 = vrot.lane.b32.xlu1 %v2800_v62, %s2424_s15  ;;  %v2852_v10 = vpop.permute.xlu0 %514  ;;  %s2449_s15 = smov 116  }
 0x2b7   :  { %521 = vst.msk [vmem:[#allocation2 + $0x48] sm:$0xff] %vm472_vm15, %v2852_v10 }
 0x2b8   :  { %v2855_v55 = vpop.permute.xlu1 %512 }
 0x2b9   :  { %519 = vst.msk [vmem:[#allocation2 + $0x18] sm:$0xff] %vm472_vm15, %v2855_v55  ;;  %vm470_vm15 = vcmask 1048552  }
 0x2ba   :  { %626 = vrot.lane.b32.xlu1 %v2800_v62, %s2395_s27  ;;  %v354_v57 = vpop.permute.xlu0 %353  ;;  %s2426_s27 = smov 126  }
 0x2bb   :  { %359 = vst.msk [vmem:[#allocation2 + $0x30] sm:$0xff] %vm357_vm0, %v354_v57 }
 0x2bc   :  { %v352_v0 = vpop.permute.xlu1 %351 }
 0x2bd   :  { %358 = vst.msk [vmem:[#allocation2] sm:$0xff] %vm357_vm0, %v352_v0  ;;  %vm553_vm0 = vcmask 695848  }
 0x2be   :  { %v2860_v11 = vpop.permute.xlu0 %430 }
 0x2c0   :  { %v429_v12 = vpop.permute.xlu1 %428 }
 0x2c1   :  { %435 = vst.msk [vmem:[#allocation2 + $0x8] sm:$0xff] %vm434_vm1, %v429_v12 }
 0x2c2   :  { %v479_v60 = vpop.permute.xlu0 %478 }
 0x2c3   :  { %484 = vst.msk [vmem:[#allocation2 + $0x40] sm:$0xff] %vm482_vm2, %v479_v60 }
 0x2c4   :  { %v477_v16 = vpop.permute.xlu1 %476 }
 0x2c5   :  { %483 = vst.msk [vmem:[#allocation2 + $0x10] sm:$0xff] %vm482_vm2, %v477_v16 }
 0x2c6   :  { %v525_v15 = vpop.permute.xlu0 %524 }
 0x2c7   :  { %529 = vst.msk [vmem:[#allocation2 + $0x48] sm:$0xff] %vm482_vm2, %v525_v15 }
 0x2c8   :  { %v523_v20 = vpop.permute.xlu1 %522 }
 0x2c9   :  { %528 = vst.msk [vmem:[#allocation2 + $0x18] sm:$0xff] %vm482_vm2, %v523_v20  ;;  %vm594_vm2 = vcmask 236648  }
 0x2ca   :  { %v363_v53 = vpop.permute.xlu0 %362 }
 0x2cb   :  { %368 = vst.msk [vmem:[#allocation2 + $0x30] sm:$0xff] %vm366_vm3, %v363_v53 }
 0x2cc   :  { %v361_v54 = vpop.permute.xlu1 %360 }
 0x2cd   :  { %367 = vst.msk [vmem:[#allocation2] sm:$0xff] %vm366_vm3, %v361_v54  ;;  %vm393_vm3 = vcmask 1023848  }
 0x2ce   :  { %v2863_v19 = vpop.permute.xlu0 %439 }
 0x2d0   :  { %v438_v61 = vpop.permute.xlu1 %437 }
 0x2d1   :  { %444 = vst.msk [vmem:[#allocation2 + $0x8] sm:$0xff] %vm443_vm4, %v438_v61 }
 0x2d2   :  { %v488_v58 = vpop.permute.xlu0 %487 }
 0x2d3   :  { %493 = vst.msk [vmem:[#allocation2 + $0x40] sm:$0xff] %vm491_vm5, %v488_v58 }
 0x2d4   :  { %v486_v27 = vpop.permute.xlu1 %485 }
 0x2d5   :  { %492 = vst.msk [vmem:[#allocation2 + $0x10] sm:$0xff] %vm491_vm5, %v486_v27 }
 0x2d6   :  { %v533_v2 = vpop.permute.xlu0 %532 }
 0x2d7   :  { %537 = vst.msk [vmem:[#allocation2 + $0x48] sm:$0xff] %vm491_vm5, %v533_v2 }
 0x2d8   :  { %v531_v7 = vpop.permute.xlu1 %530 }
 0x2d9   :  { %536 = vst.msk [vmem:[#allocation2 + $0x18] sm:$0xff] %vm491_vm5, %v531_v7  ;;  %vm402_vm5 = vcmask 1048568  }
 0x2da   :  { %v372_v56 = vpop.permute.xlu0 %371 }
 0x2db   :  { %377 = vst.msk [vmem:[#allocation2 + $0x30] sm:$0xff] %vm375_vm6, %v372_v56 }
 0x2dc   :  { %v370_v29 = vpop.permute.xlu1 %369 }
 0x2dd   :  { %376 = vst.msk [vmem:[#allocation2] sm:$0xff] %vm375_vm6, %v370_v29  ;;  %vm562_vm6 = vcmask 843448  }
 0x2de   :  { %v2866_v14 = vpop.permute.xlu0 %448 }
 0x2e0   :  { %v447_v63 = vpop.permute.xlu1 %446 }
 0x2e1   :  { %453 = vst.msk [vmem:[#allocation2 + $0x8] sm:$0xff] %vm452_vm7, %v447_v63 }
 0x2e2   :  { %v499_v13 = vpop.permute.xlu0 %498 }
 0x2e3   :  { %503 = vst.msk [vmem:[#allocation2 + $0x40] sm:$0xff] %vm452_vm7, %v499_v13 }
 0x2e4   :  { %v497_v18 = vpop.permute.xlu1 %496 }
 0x2e5   :  { %502 = vst.msk [vmem:[#allocation2 + $0x10] sm:$0xff] %vm452_vm7, %v497_v18 }
 0x2e6   :  { %v541_v21 = vpop.permute.xlu0 %540 }
 0x2e7   :  { %546 = vst.msk [vmem:[#allocation2 + $0x48] sm:$0xff] %vm544_vm8, %v541_v21 }
 0x2e8   :  { %v539_v62 = vpop.permute.xlu1 %538 }
 0x2e9   :  { %545 = vst.msk [vmem:[#allocation2 + $0x18] sm:$0xff] %vm544_vm8, %v539_v62  ;;  %vm603_vm8 = vcmask 384248  }
 0x2ea   :  { %v2871_v50 = vpop.permute.xlu0 %578 }
 0x2eb   :  { %587 = vst.msk [vmem:[#allocation2 + $0x50] sm:$0xff] %vm584_vm9, %v2871_v50 }
 0x2ec   :  { %v2874_v52 = vpop.permute.xlu1 %576 }
 0x2ed   :  { %585 = vst.msk [vmem:[#allocation2 + $0x20] sm:$0xff] %vm584_vm9, %v2874_v52  ;;  %vm573_vm9 = vcmask 991048  }
 0x2ee   :  { %v381_v6 = vpop.permute.xlu0 %380 }
 0x2ef   :  { %386 = vst.msk [vmem:[#allocation2 + $0x30] sm:$0xff] %vm384_vm10, %v381_v6 }
 0x2f0   :  { %v379_v9 = vpop.permute.xlu1 %378 }
 0x2f1   :  { %385 = vst.msk [vmem:[#allocation2] sm:$0xff] %vm384_vm10, %v379_v9  ;;  %vm582_vm10 = vcmask 1048536  }
 0x2f2   :  { %v2877_v57 = vpop.permute.xlu0 %457 }
 0x2f4   :  { %v456_v0 = vpop.permute.xlu1 %455 }
 0x2f5   :  { %462 = vst.msk [vmem:[#allocation2 + $0x8] sm:$0xff] %vm461_vm13, %v456_v0 }
 0x2f6   :  { %471 = vst.msk [vmem:[#allocation2 + $0x8] sm:$0xff] %vm470_vm15, %v2848_v4  ;;  %v507_v12 = vpop.permute.xlu0 %506 }
 0x2f7   :  { %511 = vst.msk [vmem:[#allocation2 + $0x40] sm:$0xff] %vm461_vm13, %v507_v12 }
 0x2f8   :  { %v505_v60 = vpop.permute.xlu1 %504  ;;  %520 = vst.msk [vmem:[#allocation2 + $0x40] sm:$0xff] %vm470_vm15, %v2852_v10 }
 0x2f9   :  { %510 = vst.msk [vmem:[#allocation2 + $0x10] sm:$0xff] %vm461_vm13, %v505_v60 }
 0x2fa   :  { %518 = vst.msk [vmem:[#allocation2 + $0x10] sm:$0xff] %vm470_vm15, %v2855_v55  ;;  %v550_v16 = vpop.permute.xlu0 %549 }
 0x2fb   :  { %555 = vst.msk [vmem:[#allocation2 + $0x48] sm:$0xff] %vm553_vm0, %v550_v16 }
 0x2fc   :  { %v548_v15 = vpop.permute.xlu1 %547 }
 0x2fd   :  { %554 = vst.msk [vmem:[#allocation2 + $0x18] sm:$0xff] %vm553_vm0, %v548_v15  ;;  %vm612_vm0 = vcmask 531848   ;;  %v2929_v16 = vld [vmem:[#allocation2 + $0x8] sm:$0xff] }
 0x2fe   :  { %v591_v20 = vpop.permute.xlu0 %590 }
 0x2ff   :  { %596 = vst.msk [vmem:[#allocation2 + $0x50] sm:$0xff] %vm594_vm2, %v591_v20  ;;  %v2936_v20 = vld [vmem:[#allocation2 + $0x40] sm:$0xff] }
 0x300   :  { %v589_v4 = vpop.permute.xlu1 %588  ;;  %3941 = vst [vmem:[#allocation10_spill] sm:$0xff] %v2936_v20 }
 0x301   :  { %595 = vst.msk [vmem:[#allocation2 + $0x20] sm:$0xff] %vm594_vm2, %v589_v4  ;;  %v2888_v53 = vld [vmem:[#allocation2 + $0x10] sm:$0xff]  ;;  %vm621_vm2 = vcmask 679448  }
 0x302   :  { %v694_v10 = vmul.f32 %v2576_v31, %v2888_v53  ;;  %v390_v54 = vpop.permute.xlu0 %389  ;;  %v771_v61 = vmul.f32 %v2574_v30, %v2888_v53  ;;  %v848_v2 = vmul.f32 %v2584_v35, %v2888_v53  ;;  %v925_v29 = vmul.f32 %v2588_v38, %v2888_v53 }
 0x303   :  { %395 = vst.msk [vmem:[#allocation2 + $0x30] sm:$0xff] %vm393_vm3, %v390_v54  ;;  %v1002_v21 = vmul.f32 %v2582_v34, %v2888_v53  ;;  %v1178_v0 = vmul.f32 %v2600_v45, %v2888_v53  ;;  %v1265_v60 = vmul.f32 %v2602_v46, %v2888_v53 }
 0x304   :  { %716 = vrot.lane.b32.xlu1 %v694_v10, %s2425_s26  ;;  %v388_v55 = vpop.permute.xlu1 %387 }
 0x305   :  { %394 = vst.msk [vmem:[#allocation2] sm:$0xff] %vm393_vm3, %v388_v55  ;;  %vm630_vm3 = vcmask 827048   ;;  %v699_v55 = vmul.f32 %v2570_v28, %v2936_v20 }
 0x306   :  { %403 = vst.msk [vmem:[#allocation2] sm:$0xff] %vm402_vm5, %v2828_v1  ;;  %v559_v58 = vpop.permute.xlu0 %558 }
 0x307   :  { %564 = vst.msk [vmem:[#allocation2 + $0x48] sm:$0xff] %vm562_vm6, %v559_v58 }
 0x308   :  { %793 = vrot.lane.b32.xlu1 %v771_v61, %s2426_s27  ;;  %v557_v27 = vpop.permute.xlu1 %556 }
 0x309   :  { %563 = vst.msk [vmem:[#allocation2 + $0x18] sm:$0xff] %vm562_vm6, %v557_v27  ;;  %vm639_vm6 = vcmask 974648   ;;  %v930_v27 = vmul.f32 %v2592_v40, %v2936_v20 }
 0x30a   :  { %v600_v7 = vpop.permute.xlu0 %599 }
 0x30b   :  { %605 = vst.msk [vmem:[#allocation2 + $0x50] sm:$0xff] %vm603_vm8, %v600_v7  ;;  %v1007_v7 = vmul.f32 %v2594_v41, %v2936_v20 }
 0x30c   :  { %870 = vrot.lane.b32.xlu1 %v848_v2, %s2427_s28  ;;  %v598_v1 = vpop.permute.xlu1 %597 }
 0x30d   :  { %604 = vst.msk [vmem:[#allocation2 + $0x20] sm:$0xff] %vm603_vm8, %v598_v1  ;;  %v2901_v56 = vld [vmem:[#allocation2] sm:$0xff]  ;;  %vm1353_vm8 = vcmask 261248  }
 0x30e   :  { %v692_v63 = vmul.f32 %v2576_v31, %v2901_v56  ;;  %v570_v13 = vpop.permute.xlu0 %569  ;;  %v769_v62 = vmul.f32 %v2574_v30, %v2901_v56  ;;  %v1000_v1 = vmul.f32 %v2582_v34, %v2901_v56 }
 0x30f   :  { %575 = vst.msk [vmem:[#allocation2 + $0x48] sm:$0xff] %vm573_vm9, %v570_v13  ;;  %v1184_v13 = vmul.f32 %v2607_v49, %v2936_v20 }
 0x310   :  { %947 = vrot.lane.b32.xlu1 %v925_v29, %s2417_s30  ;;  %712 = vrot.lane.b32.xlu0 %v692_v63, %s2425_s26  ;;  %v568_v18 = vpop.permute.xlu1 %567  ;;  %586 = vst.msk [vmem:[#allocation2 + $0x48] sm:$0xff] %vm582_vm10, %v2871_v50  ;;  %v1091_v50 = vmul.f32 %v2596_v43, %v2888_v53  ;;  %v1097_v29 = vmul.f32 %v2586_v37, %v2936_v20 }
 0x311   :  { %574 = vst.msk [vmem:[#allocation2 + $0x18] sm:$0xff] %vm573_vm9, %v568_v18  ;;  %v1089_v18 = vmul.f32 %v2596_v43, %v2901_v56  ;;  %vm1362_vm9 = vcmask 392448  }
 0x312   :  { %583 = vst.msk [vmem:[#allocation2 + $0x18] sm:$0xff] %vm582_vm10, %v2874_v52  ;;  %v609_v6 = vpop.permute.xlu0 %608  ;;  %vm1371_vm10 = vcmask 523648  }
 0x313   :  { %614 = vst.msk [vmem:[#allocation2 + $0x50] sm:$0xff] %vm612_vm0, %v609_v6 }
 0x314   :  { %1024 = vrot.lane.b32.xlu1 %v1002_v21, %s2428_s16  ;;  %789 = vrot.lane.b32.xlu0 %v769_v62, %s2426_s27  ;;  %v607_v9 = vpop.permute.xlu1 %606  ;;  %v1271_v21 = vmul.f32 %v2612_v51, %v2936_v20 }
 0x315   :  { %613 = vst.msk [vmem:[#allocation2 + $0x20] sm:$0xff] %vm612_vm0, %v607_v9  ;;  %vm1380_vm0 = vcmask 654848  }
 0x318   :  { %1117 = vrot.lane.b32.xlu1 %v1091_v50, %s2391_s23  ;;  %v616_v52 = vpop.permute.xlu1 %615  ;;  %v1176_v50 = vmul.f32 %v2600_v45, %v2901_v56 }
 0x319   :  { %622 = vst.msk [vmem:[#allocation2 + $0x20] sm:$0xff] %vm621_vm2, %v616_v52 }
 0x31a   :  { %631 = vst.msk [vmem:[#allocation2 + $0x20] sm:$0xff] %vm630_vm3, %v2834_v48  ;;  %v693_v48 = vmul.f32 %v2576_v31, %v2929_v16 }
 0x31c   :  { %1204 = vrot.lane.b32.xlu1 %v1178_v0, %s2392_s24  ;;  %v634_v12 = vpop.permute.xlu1 %633 }
 0x31d   :  { %640 = vst.msk [vmem:[#allocation2 + $0x20] sm:$0xff] %vm639_vm6, %v634_v12 }
 0x320   :  { %1291 = vrot.lane.b32.xlu1 %v1265_v60, %s2393_s25  ;;  %v399_v15 = vpop.permute.xlu1 %398 }
 0x321   :  { %406 = vst.msk [vmem:[#allocation2 + $0x30] sm:$0xff] %vm402_vm5, %v399_v15  ;;  %vm1342_vm5 = vcmask 130048  }
 0x322   :  { %407 = vst.msk [vmem:[#allocation2 + $0x38] sm:$0xff] %vm404_vm11, %v399_v15  ;;  %v1263_v15 = vmul.f32 %v2602_v46, %v2901_v56  ;;  %vm1137_vm11 = vcmask 752640  }
 0x324   :  { %714 = vrot.lane.b32.xlu1 %v693_v48, %s2425_s26  ;;  %v411_v4 = vpop.permute.xlu1 %410  ;;  %v2939_v10 = vld [vmem:[#allocation2 + $0x20] sm:$0xff] }
 0x325   :  { %416 = vst.msk [vmem:[#allocation2 + $0x38] sm:$0xff] %vm414_vm12, %v411_v4  ;;  %v696_v54 = vmul.f32 %v2576_v31, %v2939_v10  ;;  %v773_v58 = vmul.f32 %v2574_v30, %v2939_v10  ;;  %v850_v2 = vmul.f32 %v2584_v35, %v2939_v10  ;;  %v927_v63 = vmul.f32 %v2588_v38, %v2939_v10 }
 0x326   :  { %427 = vst.msk [vmem:[#allocation2 + $0x38] sm:$0xff] %vm425_vm14, %v2840_v59  ;;  %v846_v59 = vmul.f32 %v2584_v35, %v2901_v56  ;;  %v1004_v6 = vmul.f32 %v2582_v34, %v2939_v10  ;;  %v1093_v12 = vmul.f32 %v2596_v43, %v2939_v10  ;;  %v1180_v4 = vmul.f32 %v2600_v45, %v2939_v10 }
 0x327   :  { %436 = vst.msk [vmem:[#allocation2 + $0x38] sm:$0xff] %vm434_vm1, %v2860_v11  ;;  %720 = vrot.lane.b32.xlu0 %v696_v54, %s2425_s26  ;;  %v776_v11 = vmul.f32 %v2580_v33, %v2936_v20  ;;  %vm1224_vm12 = vcmask 744448   ;;  %vm1311_vm14 = vcmask 736256   ;;  %vm732_vm1 = vcmask 1039360  }
 0x328   :  { %445 = vst.msk [vmem:[#allocation2 + $0x38] sm:$0xff] %vm443_vm4, %v2863_v19  ;;  %726 = vrot.lane.b32.xlu1 %v699_v55, %s2425_s26  ;;  %v618_v61 = vpop.permute.xlu1 %617  ;;  %v3004_v62 = vld [vmem:[#allocation2 + $0x30] sm:$0xff]  ;;  %v1267_v55 = vmul.f32 %v2602_v46, %v2939_v10  ;;  %vm809_vm4 = vcmask 1031168  }
 0x329   :  { %454 = vst.msk [vmem:[#allocation2 + $0x38] sm:$0xff] %vm452_vm7, %v2866_v14  ;;  %v636_v14 = vpop.permute.xlu0 %635  ;;  %3942 = vst [vmem:[#allocation11_spill] sm:$0xff] %v3004_v62  ;;  %v697_v9 = vmul.f32 %v2570_v28, %v3004_v62  ;;  %v774_v52 = vmul.f32 %v2580_v33, %v3004_v62  ;;  %v851_v48 = vmul.f32 %v2578_v32, %v3004_v62  ;;  %vm886_vm7 = vcmask 900096  }
 0x32a   :  { %623 = vst.msk [vmem:[#allocation2 + $0x50] sm:$0xff] %vm621_vm2, %v618_v61  ;;  %v928_v61 = vmul.f32 %v2592_v40, %v3004_v62  ;;  %vm1526_vm2 = vcmask 424960  }
 0x32b   :  { %463 = vst.msk [vmem:[#allocation2 + $0x38] sm:$0xff] %vm461_vm13, %v2877_v57  ;;  %866 = vrot.lane.b32.xlu0 %v846_v59, %s2427_s28  ;;  %v853_v57 = vmul.f32 %v2578_v32, %v2936_v20  ;;  %v3043_v59 = vld [vmem:[#allocation2 + $0x18] sm:$0xff]  ;;  %vm963_vm13 = vcmask 891904  }
 0x32c   :  { %474 = vst.msk [vmem:[#allocation2 + $0x38] sm:$0xff] %vm470_vm15, %v2845_v5  ;;  %803 = vrot.lane.b32.xlu1 %v776_v11, %s2426_s27  ;;  %v627_v19 = vpop.permute.xlu1 %626  ;;  %v923_v5 = vmul.f32 %v2588_v38, %v2901_v56  ;;  %v695_v11 = vmul.f32 %v2576_v31, %v3043_v59  ;;  %v772_v31 = vmul.f32 %v2574_v30, %v3043_v59  ;;  %vm1040_vm15 = vcmask 883712  }
 0x32d   :  { %632 = vst.msk [vmem:[#allocation2 + $0x50] sm:$0xff] %vm630_vm3, %v627_v19  ;;  %vm1389_vm3 = vcmask 786048  }
 0x32e   :  { %641 = vst.msk [vmem:[#allocation2 + $0x50] sm:$0xff] %vm639_vm6, %v636_v14  ;;  %v770_v14 = vmul.f32 %v2574_v30, %v2929_v16  ;;  %v849_v30 = vmul.f32 %v2584_v35, %v3043_v59  ;;  %vm1477_vm6 = vcmask 818176  }
 0x32f   :  { %797 = vrot.lane.b32.xlu0 %v773_v58, %s2426_s27  ;;  %v1005_v58 = vmul.f32 %v2594_v41, %v3004_v62 }
 0x330   :  { %880 = vrot.lane.b32.xlu1 %v853_v57, %s2427_s28 }
 0x333   :  { %943 = vrot.lane.b32.xlu0 %v923_v5, %s2417_s30  ;;  %v847_v5 = vmul.f32 %v2584_v35, %v2929_v16  ;;  %v926_v35 = vmul.f32 %v2588_v38, %v3043_v59 }
 0x334   :  { %957 = vrot.lane.b32.xlu1 %v930_v27, %s2417_s30  ;;  %v1095_v27 = vmul.f32 %v2586_v37, %v3004_v62 }
 0x335   :  { %v3018_v0 = vld [vmem:[#allocation2 + $0x50] sm:$0xff] }
 0x336   :  { %v701_v60 = vmul.f32 %v2570_v28, %v3018_v0  ;;  %v778_v54 = vmul.f32 %v2580_v33, %v3018_v0  ;;  %v855_v19 = vmul.f32 %v2578_v32, %v3018_v0  ;;  %v932_v57 = vmul.f32 %v2592_v40, %v3018_v0 }
 0x337   :  { %874 = vrot.lane.b32.xlu0 %v850_v2, %s2427_s28  ;;  %v1009_v2 = vmul.f32 %v2594_v41, %v3018_v0 }
 0x338   :  { %1034 = vrot.lane.b32.xlu1 %v1007_v7, %s2428_s16  ;;  %v924_v7 = vmul.f32 %v2588_v38, %v2929_v16  ;;  %v1003_v38 = vmul.f32 %v2582_v34, %v3043_v59 }
 0x33b   :  { %1020 = vrot.lane.b32.xlu0 %v1000_v1, %s2428_s16  ;;  %v1182_v1 = vmul.f32 %v2607_v49, %v3004_v62 }
 0x33c   :  { %1129 = vrot.lane.b32.xlu1 %v1097_v29, %s2391_s23 }
 0x33f   :  { %951 = vrot.lane.b32.xlu0 %v927_v63, %s2417_s30  ;;  %v1099_v63 = vmul.f32 %v2586_v37, %v3018_v0 }
 0x340   :  { %1216 = vrot.lane.b32.xlu1 %v1184_v13, %s2392_s24  ;;  %v1001_v13 = vmul.f32 %v2582_v34, %v2929_v16  ;;  %v3114_v34 = vld [vmem:[#allocation2 + $0x48] sm:$0xff] }
 0x343   :  { %1113 = vrot.lane.b32.xlu0 %v1089_v18, %s2391_s23 }
 0x344   :  { %1303 = vrot.lane.b32.xlu1 %v1271_v21, %s2393_s25  ;;  %v1269_v21 = vmul.f32 %v2612_v51, %v3004_v62 }
 0x347   :  { %1028 = vrot.lane.b32.xlu0 %v1004_v6, %s2428_s16 }
 0x348   :  { %722 = vrot.lane.b32.xlu1 %v697_v9, %s2425_s26  ;;  %v1186_v9 = vmul.f32 %v2607_v49, %v3018_v0 }
 0x34b   :  { %1200 = vrot.lane.b32.xlu0 %v1176_v50, %s2392_s24  ;;  %v1090_v50 = vmul.f32 %v2596_v43, %v2929_v16 }
 0x34c   :  { %799 = vrot.lane.b32.xlu1 %v774_v52, %s2426_s27 }
 0x34f   :  { %1121 = vrot.lane.b32.xlu0 %v1093_v12, %s2391_s23  ;;  %v1273_v12 = vmul.f32 %v2612_v51, %v3018_v0 }
 0x350   :  { %730 = vrot.lane.b32.xlu1 %v701_v60, %s2425_s26  ;;  %v1092_v60 = vmul.f32 %v2596_v43, %v3043_v59  ;;  %v1179_v43 = vmul.f32 %v2600_v45, %v3043_v59 }
 0x353   :  { %1287 = vrot.lane.b32.xlu0 %v1263_v15, %s2393_s25 }
 0x354   :  { %876 = vrot.lane.b32.xlu1 %v851_v48, %s2427_s28  ;;  %v700_v48 = vmul.f32 %v2570_v28, %v3114_v34 }
 0x357   :  { %1208 = vrot.lane.b32.xlu0 %v1180_v4, %s2392_s24  ;;  %v1177_v4 = vmul.f32 %v2600_v45, %v2929_v16 }
 0x358   :  { %807 = vrot.lane.b32.xlu1 %v778_v54, %s2426_s27 }
 0x35b   :  { %1295 = vrot.lane.b32.xlu0 %v1267_v55, %s2393_s25  ;;  %v777_v55 = vmul.f32 %v2580_v33, %v3114_v34 }
 0x35c   :  { %953 = vrot.lane.b32.xlu1 %v928_v61, %s2417_s30 }
 0x35f   :  { %718 = vrot.lane.b32.xlu0 %v695_v11, %s2425_s26  ;;  %v854_v11 = vmul.f32 %v2578_v32, %v3114_v34 }
 0x360   :  { %884 = vrot.lane.b32.xlu1 %v855_v19, %s2427_s28 }
 0x363   :  { %791 = vrot.lane.b32.xlu0 %v770_v14, %s2426_s27  ;;  %v1264_v14 = vmul.f32 %v2602_v46, %v2929_v16 }
 0x364   :  { %1030 = vrot.lane.b32.xlu1 %v1005_v58, %s2428_s16 }
 0x367   :  { %795 = vrot.lane.b32.xlu0 %v772_v31, %s2426_s27  ;;  %v931_v31 = vmul.f32 %v2592_v40, %v3114_v34 }
 0x368   :  { %961 = vrot.lane.b32.xlu1 %v932_v57, %s2417_s30  ;;  %v1266_v57 = vmul.f32 %v2602_v46, %v3043_v59  ;;  %v1098_v46 = vmul.f32 %v2586_v37, %v3114_v34 }
 0x36b   :  { %868 = vrot.lane.b32.xlu0 %v847_v5, %s2427_s28 }
 0x36c   :  { %1125 = vrot.lane.b32.xlu1 %v1095_v27, %s2391_s23  ;;  %v1008_v27 = vmul.f32 %v2594_v41, %v3114_v34 }
 0x36f   :  { %872 = vrot.lane.b32.xlu0 %v849_v30, %s2427_s28  ;;  %v3159_v30 = vld [vmem:[#allocation2 + $0x38] sm:$0xff] }
 0x370   :  { %1038 = vrot.lane.b32.xlu1 %v1009_v2, %s2428_s16  ;;  %3943 = vst [vmem:[#allocation12_spill] sm:$0xff] %v3159_v30 }
 0x373   :  { %945 = vrot.lane.b32.xlu0 %v924_v7, %s2417_s30  ;;  %v698_v7 = vmul.f32 %v2570_v28, %v3159_v30 }
 0x374   :  { %1212 = vrot.lane.b32.xlu1 %v1182_v1, %s2392_s24 }
 0x376   :  { %v3085_v29 = vpop.permute.xlu1 %716 }
 0x377   :  { %949 = vrot.lane.b32.xlu0 %v926_v35, %s2417_s30 }
 0x378   :  { %1133 = vrot.lane.b32.xlu1 %v1099_v63, %s2391_s23  ;;  %v775_v63 = vmul.f32 %v2580_v33, %v3159_v30 }
 0x37a   :  { %v3093_v18 = vpop.permute.xlu1 %793 }
 0x37b   :  { %1022 = vrot.lane.b32.xlu0 %v1001_v13, %s2428_s16 }
 0x37c   :  { %1299 = vrot.lane.b32.xlu1 %v1269_v21, %s2393_s25  ;;  %v1185_v21 = vmul.f32 %v2607_v49, %v3114_v34 }
 0x37e   :  { %v3101_v6 = vpop.permute.xlu1 %870 }
 0x37f   :  { %1026 = vrot.lane.b32.xlu0 %v1003_v38, %s2428_s16  ;;  %v852_v38 = vmul.f32 %v2578_v32, %v3159_v30  ;;  %v1006_v32 = vmul.f32 %v2594_v41, %v3159_v30 }
 0x380   :  { %1220 = vrot.lane.b32.xlu1 %v1186_v9, %s2392_s24 }
 0x382   :  { %v3109_v52 = vpop.permute.xlu1 %947  ;;  %v3139_v19 = vpop.permute.xlu0 %712 }
 0x383   :  { %1115 = vrot.lane.b32.xlu0 %v1090_v50, %s2391_s23  ;;  %v1272_v50 = vmul.f32 %v2612_v51, %v3114_v34 }
 0x384   :  { %1307 = vrot.lane.b32.xlu1 %v1273_v12, %s2393_s25  ;;  %v929_v12 = vmul.f32 %v2592_v40, %v3159_v30 }
 0x386   :  { %v3119_v15 = vpop.permute.xlu1 %1024  ;;  %v3151_v45 = vpop.permute.xlu0 %789 }
 0x387   :  { %1119 = vrot.lane.b32.xlu0 %v1092_v60, %s2391_s23 }
 0x388   :  { %728 = vrot.lane.b32.xlu1 %v700_v48, %s2425_s26 }
 0x38a   :  { %v3127_v54 = vpop.permute.xlu1 %1117 }
 0x38b   :  { %1202 = vrot.lane.b32.xlu0 %v1177_v4, %s2392_s24 }
 0x38c   :  { %805 = vrot.lane.b32.xlu1 %v777_v55, %s2426_s27 }
 0x38e   :  { %v3135_v61 = vpop.permute.xlu1 %1204 }
 0x38f   :  { %1206 = vrot.lane.b32.xlu0 %v1179_v43, %s2392_s24  ;;  %v1096_v43 = vmul.f32 %v2586_v37, %v3159_v30 }
 0x390   :  { %882 = vrot.lane.b32.xlu1 %v854_v11, %s2427_s28 }
 0x392   :  { %v3145_v58 = vpop.permute.xlu1 %1291 }
 0x393   :  { %1289 = vrot.lane.b32.xlu0 %v1264_v14, %s2393_s25  ;;  %v1183_v14 = vmul.f32 %v2607_v49, %v3159_v30 }
 0x394   :  { %959 = vrot.lane.b32.xlu1 %v931_v31, %s2417_s30 }
 0x396   :  { %v3155_v5 = vpop.permute.xlu1 %714 }
 0x397   :  { %1293 = vrot.lane.b32.xlu0 %v1266_v57, %s2393_s25  ;;  %v1270_v57 = vmul.f32 %v2612_v51, %v3159_v30 }
 0x398   :  { %1036 = vrot.lane.b32.xlu1 %v1008_v27, %s2428_s16 }
 0x399   :  { %v3163_v2 = vpop.permute.xlu0 %720 }
 0x39a   :  { %v3167_v1 = vpop.permute.xlu1 %726 }
 0x39b   :  { %724 = vrot.lane.b32.xlu0 %v698_v7, %s2425_s26  ;;  %s2450_s26 = smov 50  }
 0x39c   :  { %1131 = vrot.lane.b32.xlu1 %v1098_v46, %s2391_s23 }
 0x39d   :  { %v3173_v35 = vpop.permute.xlu0 %866 }
 0x39e   :  { %v3177_v13 = vpop.permute.xlu1 %803 }
 0x39f   :  { %3944 = vst [vmem:[#allocation13_spill] sm:$0xff] %v3177_v13  ;;  %801 = vrot.lane.b32.xlu0 %v775_v63, %s2426_s27  ;;  %v668_v63 = vmul.f32 %v2658_v23, %v2939_v10 }
 0x3a0   :  { %1218 = vrot.lane.b32.xlu1 %v1185_v21, %s2392_s24 }
 0x3a1   :  { %v3183_v28 = vpop.permute.xlu0 %797  ;;  %v755_v21 = vadd.f32 %v3163_v2, %v668_v63 }
 0x3a2   :  { %v3187_v9 = vpop.permute.xlu1 %880 }
 0x3a3   :  { %3945 = vst [vmem:[#allocation14_spill] sm:$0xff] %v3187_v9  ;;  %878 = vrot.lane.b32.xlu0 %v852_v38, %s2427_s28  ;;  %v733_v9 = vsel %vm732_vm1, %v3139_v19, %v3155_v5 }
 0x3a4   :  { %1305 = vrot.lane.b32.xlu1 %v1272_v50, %s2393_s25  ;;  %v832_v50 = vadd.f32 %v3183_v28, %v755_v21 }
 0x3a5   :  { %v3193_v33 = vpop.permute.xlu0 %943 }
 0x3a6   :  { %v3197_v60 = vpop.permute.xlu1 %957 }
 0x3a7   :  { %3946 = vst [vmem:[#allocation15_spill] sm:$0xff] %v3197_v60  ;;  %955 = vrot.lane.b32.xlu0 %v929_v12, %s2417_s30  ;;  %s2442_s30 = smov 120  }
 0x3a9   :  { %v3200_v48 = vpop.permute.xlu0 %874 }
 0x3aa   :  { %v3204_v4 = vpop.permute.xlu1 %1034  ;;  %v909_v12 = vadd.f32 %v3200_v48, %v832_v50 }
 0x3ab   :  { %3947 = vst [vmem:[#allocation16_spill] sm:$0xff] %v3204_v4  ;;  %1032 = vrot.lane.b32.xlu0 %v1006_v32, %s2428_s16 }
 0x3ad   :  { %v3207_v55 = vpop.permute.xlu0 %1020 }
 0x3ae   :  { %v3211_v11 = vpop.permute.xlu1 %1129 }
 0x3af   :  { %3948 = vst [vmem:[#allocation17_spill] sm:$0xff] %v3211_v11  ;;  %1127 = vrot.lane.b32.xlu0 %v1096_v43, %s2391_s23  ;;  %s2429_s23 = smov 36  }
 0x3b1   :  { %v3214_v40 = vpop.permute.xlu0 %951 }
 0x3b2   :  { %v3218_v31 = vpop.permute.xlu1 %1216 }
 0x3b3   :  { %3949 = vst [vmem:[#allocation18_spill] sm:$0xff] %v3218_v31  ;;  %1214 = vrot.lane.b32.xlu0 %v1183_v14, %s2392_s24  ;;  %v986_v14 = vadd.f32 %v3214_v40, %v909_v12  ;;  %s2430_s24 = smov 38  }
 0x3b5   :  { %v3221_v41 = vpop.permute.xlu0 %1113 }
 0x3b6   :  { %v3225_v27 = vpop.permute.xlu1 %1303 }
 0x3b7   :  { %3950 = vst [vmem:[#allocation19_spill] sm:$0xff] %v3225_v27  ;;  %1301 = vrot.lane.b32.xlu0 %v1270_v57, %s2393_s25  ;;  %s2431_s25 = smov 34  }
 0x3b9   :  { %v3228_v37 = vpop.permute.xlu0 %1028 }
 0x3ba   :  { %v3230_v7 = vpop.permute.xlu1 %722  ;;  %v1063_v57 = vadd.f32 %v3228_v37, %v986_v14 }
 0x3bd   :  { %v3232_v46 = vpop.permute.xlu0 %1200 }
 0x3be   :  { %v3234_v49 = vpop.permute.xlu1 %799 }
 0x3bf   :  { %3951 = vst [vmem:[#allocation20_spill] sm:$0xff] %v3234_v49  ;;  %v667_v49 = vmul.f32 %v2658_v23, %v3043_v59 }
 0x3c1   :  { %v3239_v38 = vpop.permute.xlu0 %1121 }
 0x3c2   :  { %v3241_v51 = vpop.permute.xlu1 %730  ;;  %v1142_v10 = vsel %vm1137_vm11, %v3239_v38, %v2664_v26 }
 0x3c3   :  { %v1162_v3 = vadd.f32 %v1142_v10, %v1063_v57 }
 0x3c5   :  { %v3245_v32 = vpop.permute.xlu0 %1287 }
 0x3c6   :  { %v3247_v43 = vpop.permute.xlu1 %876 }
 0x3c7   :  { %3952 = vst [vmem:[#allocation21_spill] sm:$0xff] %v3247_v43  ;;  %v666_v43 = vmul.f32 %v2658_v23, %v2888_v53 }
 0x3c9   :  { %v3254_v63 = vpop.permute.xlu0 %1208 }
 0x3ca   :  { %v1229_v21 = vsel %vm1224_vm12, %v3254_v63, %v2668_v39  ;;  %v3259_v50 = vpop.permute.xlu1 %807 }
 0x3cb   :  { %v1249_v8 = vadd.f32 %v1229_v21, %v1162_v3 }
 0x3cd   :  { %v3261_v17 = vpop.permute.xlu0 %1295 }
 0x3ce   :  { %v1316_v12 = vsel %vm1311_vm14, %v3261_v17, %v2672_v44  ;;  %v3266_v26 = vpop.permute.xlu1 %953 }
 0x3cf   :  { %3953 = vst [vmem:[#allocation22_spill] sm:$0xff] %v3266_v26  ;;  %v3268_v14 = vadd.f32 %v1316_v12, %v1249_v8 }
 0x3d1   :  { %3954 = vst [vmem:[#allocation23_spill] sm:$0xff] %v3268_v14  ;;  %v719_v25 = vpop.permute.xlu0 %718  ;;  %1598 = vrot.lane.b32.xlu0 %v3268_v14, %s2429_s23  ;;  %1585 = vrot.lane.b32.xlu1 %v3268_v14, %s2430_s24 }
 0x3d2   :  { %v3274_v3 = vpop.permute.xlu1 %884  ;;  %v735_v19 = vsel %vm732_vm1, %v3085_v29, %v719_v25 }
 0x3d5   :  { %v792_v39 = vpop.permute.xlu0 %791  ;;  %1606 = vrot.lane.b32.xlu0 %v3268_v14, %s2431_s25 }
 0x3d6   :  { %v3278_v44 = vpop.permute.xlu1 %1030  ;;  %v811_v53 = vsel %vm809_vm4, %v792_v39, %v3093_v18 }
 0x3d7   :  { %3955 = vst [vmem:[#allocation24_spill] sm:$0xff] %v3278_v44 }
 0x3d9   :  { %v796_v8 = vpop.permute.xlu0 %795  ;;  %1614 = vrot.lane.b32.xlu0 %v3268_v14, %s2432_s17 }
 0x3da   :  { %v3282_v10 = vpop.permute.xlu1 %961 }
 0x3dd   :  { %v869_v57 = vpop.permute.xlu0 %868 }
 0x3de   :  { %v3284_v21 = vpop.permute.xlu1 %1125 }
 0x3df   :  { %3956 = vst [vmem:[#allocation25_spill] sm:$0xff] %v3284_v21  ;;  %v665_v21 = vmul.f32 %v2658_v23, %v2929_v16  ;;  %v673_v16 = vmul.f32 %v2656_v22, %v3018_v0  ;;  %v736_v0 = vsel %vm732_vm1, %v719_v25, %v3163_v2 }
 0x3e0   :  { %v754_v2 = vadd.f32 %v736_v0, %v667_v49 }
 0x3e1   :  { %v873_v12 = vpop.permute.xlu0 %872  ;;  %v760_v59 = vadd.f32 %v3241_v51, %v673_v16 }
 0x3e2   :  { %v3286_v24 = vpop.permute.xlu1 %1038 }
 0x3e5   :  { %v946_v20 = vpop.permute.xlu0 %945 }
 0x3e6   :  { %v3288_v27 = vpop.permute.xlu1 %1212 }
 0x3e7   :  { %3957 = vst [vmem:[#allocation26_spill] sm:$0xff] %v3288_v27  ;;  %v664_v27 = vmul.f32 %v2658_v23, %v2901_v56  ;;  %v672_v56 = vmul.f32 %v2656_v22, %v3114_v34  ;;  %v887_v34 = vsel %vm886_vm7, %v3173_v35, %v869_v57  ;;  %v965_v35 = vsel %vm963_vm13, %v946_v20, %v3109_v52 }
 0x3e9   :  { %v3290_v31 = vpop.permute.xlu0 %949  ;;  %v751_v30 = vadd.f32 %v733_v9, %v664_v27  ;;  %v753_v9 = vadd.f32 %v735_v19, %v666_v43 }
 0x3ea   :  { %v3292_v11 = vpop.permute.xlu1 %1133 }
 0x3ed   :  { %v1023_v4 = vpop.permute.xlu0 %1022 }
 0x3ee   :  { %v3294_v44 = vpop.permute.xlu1 %1299  ;;  %v1041_v49 = vsel %vm1040_vm15, %v3207_v55, %v1023_v4 }
 0x3ef   :  { %3958 = vst [vmem:[#allocation27_spill] sm:$0xff] %v3294_v44  ;;  %v734_v44 = vsel %vm732_vm1, %v3155_v5, %v3085_v29  ;;  %v810_v5 = vsel %vm809_vm4, %v3151_v45, %v792_v39  ;;  %v812_v29 = vsel %vm809_vm4, %v3093_v18, %v796_v8  ;;  %v888_v45 = vsel %vm886_vm7, %v869_v57, %v3101_v6 }
 0x3f0   :  { %v752_v62 = vadd.f32 %v734_v44, %v665_v21  ;;  %v828_v27 = vadd.f32 %v810_v5, %v751_v30  ;;  %v813_v21 = vsel %vm809_vm4, %v796_v8, %v3183_v28  ;;  %v964_v18 = vsel %vm963_vm13, %v3193_v33, %v946_v20 }
 0x3f1   :  { %v3296_v60 = vpop.permute.xlu0 %1026  ;;  %v830_v57 = vadd.f32 %v812_v29, %v753_v9  ;;  %v1042_v28 = vsel %vm1040_vm15, %v1023_v4, %v3119_v15  ;;  %v831_v20 = vadd.f32 %v813_v21, %v754_v2  ;;  %v966_v29 = vsel %vm963_vm13, %v3109_v52, %v3290_v31 }
 0x3f2   :  { %v3298_v14 = vpop.permute.xlu1 %1220  ;;  %v829_v44 = vadd.f32 %v811_v53, %v752_v62  ;;  %v905_v16 = vadd.f32 %v887_v34, %v828_v27  ;;  %v889_v62 = vsel %vm886_vm7, %v3101_v6, %v873_v12  ;;  %v837_v52 = vadd.f32 %v3259_v50, %v760_v59 }
 0x3f4   :  { %v906_v22 = vadd.f32 %v888_v45, %v829_v44  ;;  %v982_v8 = vadd.f32 %v964_v18, %v905_v16 }
 0x3f5   :  { %v1116_v26 = vpop.permute.xlu0 %1115 }
 0x3f6   :  { %v3312_v13 = vpop.permute.xlu1 %1307  ;;  %v983_v19 = vadd.f32 %v965_v35, %v906_v22  ;;  %v1138_v55 = vsel %vm1137_vm11, %v3221_v41, %v1116_v26  ;;  %v1139_v4 = vsel %vm1137_vm11, %v1116_v26, %v3127_v54  ;;  %v1059_v53 = vadd.f32 %v1041_v49, %v982_v8 }
 0x3f7   :  { %v1043_v35 = vsel %vm1040_vm15, %v3119_v15, %v3296_v60 }
 0x3f8   :  { %v1060_v0 = vadd.f32 %v1042_v28, %v983_v19  ;;  %v1158_v9 = vadd.f32 %v1138_v55, %v1059_v53 }
 0x3f9   :  { %v3328_v23 = vpop.permute.xlu0 %1119 }
 0x3fa   :  { %v3337_v39 = vpop.permute.xlu1 %728  ;;  %v1159_v27 = vadd.f32 %v1139_v4, %v1060_v0 }
 0x3fb   :  { %v740_v25 = vsel %vm732_vm1, %v3337_v39, %v3241_v51  ;;  %v890_v51 = vsel %vm886_vm7, %v873_v12, %v3200_v48  ;;  %v967_v48 = vsel %vm963_vm13, %v3290_v31, %v3214_v40  ;;  %v1044_v40 = vsel %vm1040_vm15, %v3296_v60, %v3228_v37 }
 0x3fc   :  { %v759_v33 = vadd.f32 %v740_v25, %v672_v56  ;;  %v907_v56 = vadd.f32 %v889_v62, %v830_v57  ;;  %v908_v5 = vadd.f32 %v890_v51, %v831_v20  ;;  %v1141_v31 = vsel %vm1137_vm11, %v3328_v23, %v3239_v38 }
 0x3fd   :  { %v1203_v30 = vpop.permute.xlu0 %1202  ;;  %v1140_v60 = vsel %vm1137_vm11, %v3127_v54, %v3328_v23 }
 0x3fe   :  { %v3356_v43 = vpop.permute.xlu1 %805  ;;  %v1225_v41 = vsel %vm1224_vm12, %v3232_v46, %v1203_v30  ;;  %v1226_v26 = vsel %vm1224_vm12, %v1203_v30, %v3135_v61  ;;  %v985_v45 = vadd.f32 %v967_v48, %v908_v5  ;;  %v984_v46 = vadd.f32 %v966_v29, %v907_v56  ;;  %v3960_v29 = vld [vmem:[#allocation7_spill] sm:$0xff] }
 0x3ff   :  { %v817_v6 = vsel %vm809_vm4, %v3356_v43, %v3259_v50  ;;  %v1245_v2 = vadd.f32 %v1225_v41, %v1158_v9  ;;  %v1246_v21 = vadd.f32 %v1226_v26, %v1159_v27  ;;  %v3961_v41 = vld [vmem:[#allocation12_spill] sm:$0xff]  ;;  %v3963_v27 = vld [vmem:[#allocation13_spill] sm:$0xff] }
 0x400   :  { %v836_v12 = vadd.f32 %v817_v6, %v759_v33  ;;  %v1062_v25 = vadd.f32 %v1044_v40, %v985_v45  ;;  %v1061_v51 = vadd.f32 %v1043_v35, %v984_v46  ;;  %v1147_v6 = vsel %vm1137_vm11, %v3292_v11, %v2666_v36  ;;  %v3962_v45 = vld [vmem:[#allocation20_spill] sm:$0xff]  ;;  %v3966_v35 = vld [vmem:[#allocation22_spill] sm:$0xff] }
 0x401   :  { %v1207_v22 = vpop.permute.xlu0 %1206  ;;  %v1234_v36 = vsel %vm1224_vm12, %v3298_v14, %v2670_v42  ;;  %v670_v26 = vmul.f32 %v3960_v29, %v3961_v41 }
 0x402   :  { %v3378_v34 = vpop.permute.xlu1 %882  ;;  %v1228_v57 = vsel %vm1224_vm12, %v1207_v22, %v3254_v63  ;;  %v1161_v16 = vadd.f32 %v1141_v31, %v1062_v25  ;;  %v1227_v33 = vsel %vm1224_vm12, %v3135_v61, %v1207_v22  ;;  %v1160_v23 = vadd.f32 %v1140_v60, %v1061_v51  ;;  %v3959_v22 = vld [vmem:[#allocation11_spill] sm:$0xff]  ;;  %v3965_v25 = vld [vmem:[#allocation14_spill] sm:$0xff]  ;;  %v3969_v51 = vld [vmem:[#allocation16_spill] sm:$0xff] }
 0x403   :  { %v894_v44 = vsel %vm886_vm7, %v3378_v34, %v3274_v3  ;;  %v669_v40 = vmul.f32 %v3960_v29, %v3959_v22  ;;  %v3975_v22 = vld [vmem:[#allocation19_spill] sm:$0xff] }
 0x404   :  { %v913_v37 = vadd.f32 %v894_v44, %v836_v12  ;;  %v1248_v49 = vadd.f32 %v1228_v57, %v1161_v16  ;;  %v1247_v55 = vadd.f32 %v1227_v33, %v1160_v23  ;;  %v3971_v23 = vld [vmem:[#allocation17_spill] sm:$0xff] }
 0x405   :  { %v1290_v18 = vpop.permute.xlu0 %1289 }
 0x406   :  { %v1312_v50 = vsel %vm1311_vm14, %v3245_v32, %v1290_v18  ;;  %v1313_v38 = vsel %vm1311_vm14, %v1290_v18, %v3145_v58  ;;  %v3396_v59 = vpop.permute.xlu1 %959  ;;  %v914_v32 = vadd.f32 %v3274_v3, %v837_v52 }
 0x407   :  { %v3398_v62 = vadd.f32 %v1312_v50, %v1245_v2  ;;  %v3400_v30 = vadd.f32 %v1313_v38, %v1246_v21  ;;  %v971_v15 = vsel %vm963_vm13, %v3396_v59, %v3282_v10  ;;  %v3967_v50 = vld [vmem:[#allocation15_spill] sm:$0xff] }
 0x408   :  { %v990_v63 = vadd.f32 %v971_v15, %v913_v37  ;;  %v991_v3 = vadd.f32 %v3282_v10, %v914_v32 }
 0x409   :  { %v1294_v28 = vpop.permute.xlu0 %1293  ;;  %1419 = vrot.lane.b32.xlu0 %v3400_v30, %s2433_s18  ;;  %1343 = vst.msk [vmem:[#allocation3] sm:$0xff] %vm1342_vm5, %v3398_v62 }
 0x40a   :  { %v1315_v20 = vsel %vm1311_vm14, %v1294_v28, %v3261_v17  ;;  %v3417_v54 = vpop.permute.xlu1 %1036  ;;  %v1314_v61 = vsel %vm1311_vm14, %v3145_v58, %v1294_v28  ;;  %v1068_v17 = vadd.f32 %v3286_v24, %v991_v3 }
 0x40b   :  { %v3420_v8 = vadd.f32 %v1315_v20, %v1248_v49  ;;  %v1048_v19 = vsel %vm1040_vm15, %v3417_v54, %v3286_v24  ;;  %v3440_v12 = vadd.f32 %v1314_v61, %v1247_v55  ;;  %v1321_v24 = vsel %vm1311_vm14, %v3312_v13, %v2674_v47  ;;  %v3970_v20 = vld [vmem:[#allocation25_spill] sm:$0xff]  ;;  %v3972_v55 = vld [vmem:[#allocation26_spill] sm:$0xff] }
 0x40c   :  { %v3430_v48 = vadd.f32 %v1048_v19, %v990_v63  ;;  %v1167_v4 = vadd.f32 %v1147_v6, %v1068_v17  ;;  %v3968_v63 = vld [vmem:[#allocation24_spill] sm:$0xff] }
 0x40d   :  { %v725_v10 = vpop.permute.xlu0 %724  ;;  %1520 = vrot.lane.b32.xlu1 %v3420_v8, %s2434_s19  ;;  %1347 = vrot.lane.b32.xlu0 %v3398_v62, %s2426_s27 }
 0x40e   :  { %v1254_v58 = vadd.f32 %v1234_v36, %v1167_v4  ;;  %v737_v47 = vsel %vm732_vm1, %v3230_v7, %v725_v10  ;;  %v738_v0 = vsel %vm732_vm1, %v725_v10, %v3167_v1  ;;  %v3964_v7 = vld [vmem:[#allocation21_spill] sm:$0xff]  ;;  %v3973_v36 = vld [vmem:[#allocation18_spill] sm:$0xff] }
 0x40f   :  { %v756_v52 = vadd.f32 %v737_v47, %v669_v40  ;;  %v757_v31 = vadd.f32 %v738_v0, %v670_v26  ;;  %v3974_v47 = vld [vmem:[#allocation27_spill] sm:$0xff] }
 0x410   :  { %v3449_v5 = vadd.f32 %v1321_v24, %v1254_v58 }
 0x411   :  { %v802_v56 = vpop.permute.xlu0 %801  ;;  %1471 = vrot.lane.b32.xlu1 %v3440_v12, %s2435_s20  ;;  %1427 = vrot.lane.b32.xlu0 %v3400_v30, %s2427_s28 }
 0x412   :  { %v814_v9 = vsel %vm809_vm4, %v3962_v45, %v802_v56  ;;  %v815_v44 = vsel %vm809_vm4, %v802_v56, %v3963_v27  ;;  %v1132_v45 = vpop.permute.xlu1 %1131 }
 0x413   :  { %v833_v21 = vadd.f32 %v814_v9, %v756_v52  ;;  %v834_v18 = vadd.f32 %v815_v44, %v757_v31  ;;  %v739_v9 = vsel %vm732_vm1, %v3167_v1, %v3337_v39  ;;  %v3976_v44 = vld [vmem:[#allocation10_spill] sm:$0xff]  ;;  %v816_v31 = vsel %vm809_vm4, %v3963_v27, %v3356_v43 }
 0x414   :  { %v671_v52 = vmul.f32 %v3960_v29, %v3976_v44  ;;  %v970_v29 = vsel %vm963_vm13, %v3967_v50, %v3396_v59  ;;  %v1047_v43 = vsel %vm1040_vm15, %v3969_v51, %v3417_v54  ;;  %vm1416_vm1 = vcmask 1048448  }
 0x415   :  { %v879_v53 = vpop.permute.xlu0 %878  ;;  %1356 = vrot.lane.b32.xlu0 %v3398_v62, %s2436_s21  ;;  %1589 = vrot.lane.b32.xlu1 %v3449_v5, %s2430_s24 }
 0x416   :  { %v891_v46 = vsel %vm886_vm7, %v3964_v7, %v879_v53  ;;  %v892_v2 = vsel %vm886_vm7, %v879_v53, %v3965_v25  ;;  %v893_v7 = vsel %vm886_vm7, %v3965_v25, %v3378_v34  ;;  %v1219_v39 = vpop.permute.xlu1 %1218  ;;  %v1145_v34 = vsel %vm1137_vm11, %v3971_v23, %v1132_v45 }
 0x417   :  { %v910_v16 = vadd.f32 %v891_v46, %v833_v21  ;;  %v911_v15 = vadd.f32 %v892_v2, %v834_v18  ;;  %v1232_v59 = vsel %vm1224_vm12, %v3973_v36, %v1219_v39 }
 0x419   :  { %v956_v42 = vpop.permute.xlu0 %955  ;;  %1435 = vrot.lane.b32.xlu0 %v3400_v30, %s2428_s16  ;;  %1405 = vrot.lane.b32.xlu1 %v3400_v30, %s2437_s1 }
 0x41a   :  { %v968_v57 = vsel %vm963_vm13, %v3966_v35, %v956_v42  ;;  %v969_v38 = vsel %vm963_vm13, %v956_v42, %v3967_v50  ;;  %v1306_v2 = vpop.permute.xlu1 %1305 }
 0x41b   :  { %v987_v28 = vadd.f32 %v968_v57, %v910_v16  ;;  %v988_v33 = vadd.f32 %v969_v38, %v911_v15  ;;  %v1319_v18 = vsel %vm1311_vm14, %v3975_v22, %v1306_v2  ;;  %v1146_v57 = vsel %vm1137_vm11, %v1132_v45, %v3292_v11 }
 0x41c   :  { %v1166_v50 = vadd.f32 %v1146_v57, %v3430_v48  ;;  %v1320_v38 = vsel %vm1311_vm14, %v1306_v2, %v3312_v13 }
 0x41d   :  { %v1033_v37 = vpop.permute.xlu0 %1032  ;;  %1492 = vrot.lane.b32.xlu0 %v3440_v12, %s2438_s2  ;;  %1600 = vrot.lane.b32.xlu1 %v3449_v5, %s2429_s23  ;;  %s2454_s23 = smov 44  }
 0x41e   :  { %v1045_v32 = vsel %vm1040_vm15, %v3968_v63, %v1033_v37  ;;  %v1046_v49 = vsel %vm1040_vm15, %v1033_v37, %v3969_v51  ;;  %v758_v37 = vadd.f32 %v739_v9, %v671_v52 }
 0x41f   :  { %v1064_v6 = vadd.f32 %v1045_v32, %v987_v28  ;;  %v1065_v61 = vadd.f32 %v1046_v49, %v988_v33 }
 0x420   :  { %v835_v1 = vadd.f32 %v816_v31, %v758_v37 }
 0x421   :  { %v1128_v60 = vpop.permute.xlu0 %1127  ;;  %1365 = vrot.lane.b32.xlu0 %v3398_v62, %s2439_s3  ;;  %1608 = vrot.lane.b32.xlu1 %v3449_v5, %s2431_s25  ;;  %s2455_s25 = smov 30  }
 0x422   :  { %v1143_v3 = vsel %vm1137_vm11, %v3970_v20, %v1128_v60  ;;  %v1144_v19 = vsel %vm1137_vm11, %v1128_v60, %v3971_v23  ;;  %v912_v46 = vadd.f32 %v893_v7, %v835_v1  ;;  %v3977_v60 = vld [vmem:[#allocation23_spill] sm:$0xff]  ;;  %vm1398_vm11 = vcmask 917248  }
 0x423   :  { %v1163_v24 = vadd.f32 %v1143_v3, %v1064_v6  ;;  %v1164_v58 = vadd.f32 %v1144_v19, %v1065_v61 }
 0x424   :  { %v989_v27 = vadd.f32 %v970_v29, %v912_v46 }
 0x425   :  { %v1215_v17 = vpop.permute.xlu0 %1214  ;;  %1443 = vrot.lane.b32.xlu0 %v3400_v30, %s2440_s22  ;;  %1616 = vrot.lane.b32.xlu1 %v3449_v5, %s2432_s17 }
 0x426   :  { %v1230_v10 = vsel %vm1224_vm12, %v3972_v55, %v1215_v17  ;;  %v1231_v4 = vsel %vm1224_vm12, %v1215_v17, %v3973_v36  ;;  %v1066_v25 = vadd.f32 %v1047_v43, %v989_v27 }
 0x427   :  { %v1250_v56 = vadd.f32 %v1230_v10, %v1163_v24  ;;  %v1251_v53 = vadd.f32 %v1231_v4, %v1164_v58 }
 0x428   :  { %v1165_v21 = vadd.f32 %v1145_v34, %v1066_v25 }
 0x429   :  { %v1302_v42 = vpop.permute.xlu0 %1301  ;;  %1500 = vrot.lane.b32.xlu0 %v3440_v12, %s2441_s29 }
 0x42a   :  { %v1317_v0 = vsel %vm1311_vm14, %v3974_v47, %v1302_v42  ;;  %v1318_v40 = vsel %vm1311_vm14, %v1302_v42, %v3975_v22  ;;  %v1252_v54 = vadd.f32 %v1232_v59, %v1165_v21  ;;  %vm1411_vm14 = vcmask 932864  }
 0x42b   :  { %v3509_v41 = vadd.f32 %v1317_v0, %v1250_v56  ;;  %v3511_v26 = vadd.f32 %v1318_v40, %v1251_v53 }
 0x42c   :  { %v3558_v35 = vadd.f32 %v1319_v18, %v1252_v54 }
 0x42d   :  { %1374 = vrot.lane.b32.xlu0 %v3398_v62, %s2442_s30  ;;  %1421 = vrot.lane.b32.xlu1 %v3511_v26, %s2433_s18  ;;  %1344 = vst.msk [vmem:[#allocation3 + $0x20] sm:$0xff] %vm1342_vm5, %v3509_v41 }
 0x431   :  { %1451 = vrot.lane.b32.xlu0 %v3400_v30, %s2443_s10  ;;  %1349 = vrot.lane.b32.xlu1 %v3509_v41, %s2426_s27  ;;  %s2451_s27 = smov 98  }
 0x435   :  { %1508 = vrot.lane.b32.xlu0 %v3440_v12, %s2444_s11  ;;  %1429 = vrot.lane.b32.xlu1 %v3511_v26, %s2427_s28  ;;  %s2452_s28 = smov 48  }
 0x439   :  { %1518 = vrot.lane.b32.xlu0 %v3440_v12, %s2434_s19  ;;  %1358 = vrot.lane.b32.xlu1 %v3509_v41, %s2436_s21 }
 0x43d   :  { %1565 = vrot.lane.b32.xlu0 %v3420_v8, %s2445_s12  ;;  %1437 = vrot.lane.b32.xlu1 %v3511_v26, %s2428_s16  ;;  %s2453_s16 = smov 46  }
 0x441   :  { %1383 = vrot.lane.b32.xlu0 %v3398_v62, %s2446_s13  ;;  %1494 = vrot.lane.b32.xlu1 %v3558_v35, %s2438_s2 }
 0x443   :  { %v3609_v13 = vpop.permute.xlu0 %1598 }
 0x445   :  { %1459 = vrot.lane.b32.xlu0 %v3400_v30, %s2447_s14  ;;  %1367 = vrot.lane.b32.xlu1 %v3509_v41, %s2439_s3 }
 0x449   :  { %1469 = vrot.lane.b32.xlu0 %v3400_v30, %s2435_s20  ;;  %1445 = vrot.lane.b32.xlu1 %v3511_v26, %s2440_s22  ;;  %v1233_v30 = vsel %vm1224_vm12, %v1219_v39, %v3298_v14  ;;  %v3615_v14 = vpop.permute.xlu0 %1606  ;;  %vm1591_vm12 = vcmask 310272  }
 0x44a   :  { %v1253_v16 = vadd.f32 %v1233_v30, %v1166_v50 }
 0x44c   :  { %v1340_v11 = vadd.f32 %v1320_v38, %v1253_v16 }
 0x44d   :  { %1573 = vrot.lane.b32.xlu0 %v3420_v8, %s2448_s0  ;;  %1502 = vrot.lane.b32.xlu1 %v3558_v35, %s2441_s29 }
 0x451   :  { %1583 = vrot.lane.b32.xlu0 %v3420_v8, %s2430_s24  ;;  %1376 = vrot.lane.b32.xlu1 %v3509_v41, %s2442_s30 }
 0x455   :  { %1392 = vrot.lane.b32.xlu0 %v3398_v62, %s2449_s15  ;;  %1453 = vrot.lane.b32.xlu1 %v3511_v26, %s2443_s10 }
 0x459   :  { %1403 = vrot.lane.b32.xlu0 %v3398_v62, %s2437_s1  ;;  %1510 = vrot.lane.b32.xlu1 %v3558_v35, %s2444_s11  ;;  %v3624_v62 = vpop.permute.xlu0 %1614 }
 0x45d   :  { %1533 = vrot.lane.b32.xlu0 %v3420_v8, %s2450_s26  ;;  %1524 = vrot.lane.b32.xlu1 %v1340_v11, %s2434_s19 }
 0x461   :  { %1484 = vrot.lane.b32.xlu0 %v3440_v12, %s2451_s27  ;;  %1567 = vrot.lane.b32.xlu1 %v1340_v11, %s2445_s12 }
 0x465   :  { %1541 = vrot.lane.b32.xlu0 %v3420_v8, %s2452_s28  ;;  %1385 = vrot.lane.b32.xlu1 %v3509_v41, %s2446_s13 }
 0x469   :  { %1549 = vrot.lane.b32.xlu0 %v3420_v8, %s2453_s16  ;;  %1461 = vrot.lane.b32.xlu1 %v3511_v26, %s2447_s14 }
 0x46d   :  { %1557 = vrot.lane.b32.xlu0 %v3420_v8, %s2454_s23  ;;  %1475 = vrot.lane.b32.xlu1 %v3558_v35, %s2435_s20  ;;  %v3628_v8 = vpop.permute.xlu1 %1585 }
 0x471   :  { %1522 = vrot.lane.b32.xlu0 %v3558_v35, %s2434_s19  ;;  %1575 = vrot.lane.b32.xlu1 %v1340_v11, %s2448_s0 }
 0x475   :  { %1473 = vrot.lane.b32.xlu0 %v3511_v26, %s2435_s20  ;;  %1394 = vrot.lane.b32.xlu1 %v3509_v41, %s2449_s15 }
 0x479   :  { %1587 = vrot.lane.b32.xlu0 %v1340_v11, %s2430_s24  ;;  %1624 = vrot.lane.b32.xlu1 %v3449_v5, %s2455_s25  ;;  %s2456_s24 = smov 28  }
 0x47b   :  { %v1420_v48 = vpop.permute.xlu0 %1419 }
 0x47c   :  { %1425 = vst.msk [vmem:[#allocation3 + $0x8] sm:$0xff] %vm1342_vm5, %v1420_v48 }
 0x47d   :  { %1407 = vrot.lane.b32.xlu0 %v3509_v41, %s2437_s1  ;;  %1409 = vrot.lane.b32.xlu1 %v3511_v26, %s2437_s1 }
 0x47f   :  { %v1348_v12 = vpop.permute.xlu0 %1347  ;;  %v1521_v15 = vpop.permute.xlu1 %1520 }
 0x480   :  { %1354 = vst.msk [vmem:[#allocation3] sm:$0xff] %vm1353_vm8, %v1348_v12 }
 0x481   :  { %1622 = vrot.lane.b32.xlu0 %v3977_v60, %s2455_s25  ;;  %1535 = vrot.lane.b32.xlu1 %v1340_v11, %s2450_s26 }
 0x483   :  { %v1428_v63 = vpop.permute.xlu0 %1427  ;;  %v3638_v32 = vpop.permute.xlu1 %1471 }
 0x484   :  { %1433 = vst.msk [vmem:[#allocation3 + $0x8] sm:$0xff] %vm1353_vm8, %v1428_v63 }
 0x485   :  { %1630 = vrot.lane.b32.xlu0 %v3977_v60, %s2456_s24  ;;  %1486 = vrot.lane.b32.xlu1 %v3558_v35, %s2451_s27 }
 0x487   :  { %v1357_v51 = vpop.permute.xlu0 %1356  ;;  %v3644_v49 = vpop.permute.xlu1 %1589 }
 0x488   :  { %1363 = vst.msk [vmem:[#allocation3] sm:$0xff] %vm1362_vm9, %v1357_v51 }
 0x489   :  { %1543 = vrot.lane.b32.xlu1 %v1340_v11, %s2452_s28 }
 0x48b   :  { %v1436_v28 = vpop.permute.xlu0 %1435  ;;  %v3648_v33 = vpop.permute.xlu1 %1405 }
 0x48c   :  { %1441 = vst.msk [vmem:[#allocation3 + $0x8] sm:$0xff] %vm1362_vm9, %v1436_v28 }
 0x48d   :  { %1551 = vrot.lane.b32.xlu1 %v1340_v11, %s2453_s16 }
 0x48f   :  { %v1493_v20 = vpop.permute.xlu0 %1492  ;;  %v3652_v3 = vpop.permute.xlu1 %1600 }
 0x490   :  { %1498 = vst.msk [vmem:[#allocation3 + $0x10] sm:$0xff] %vm1342_vm5, %v1493_v20  ;;  %v3978_v20 = vld [vmem:[#allocation8_spill] sm:$0xff] }
 0x491   :  { %1559 = vrot.lane.b32.xlu1 %v1340_v11, %s2454_s23 }
 0x493   :  { %v1366_v23 = vpop.permute.xlu0 %1365  ;;  %v3657_v19 = vpop.permute.xlu1 %1608 }
 0x494   :  { %1372 = vst.msk [vmem:[#allocation3] sm:$0xff] %vm1371_vm10, %v1366_v23 }
 0x495   :  { %1632 = vrot.lane.b32.xlu1 %v3449_v5, %s2456_s24 }
 0x497   :  { %v1444_v6 = vpop.permute.xlu0 %1443  ;;  %v3661_v61 = vpop.permute.xlu1 %1616 }
 0x498   :  { %1449 = vst.msk [vmem:[#allocation3 + $0x8] sm:$0xff] %vm1371_vm10, %v1444_v6 }
 0x49b   :  { %v1501_v17 = vpop.permute.xlu0 %1500 }
 0x49c   :  { %1506 = vst.msk [vmem:[#allocation3 + $0x10] sm:$0xff] %vm1353_vm8, %v1501_v17 }
 0x49f   :  { %v1375_v55 = vpop.permute.xlu0 %1374  ;;  %v1422_v10 = vpop.permute.xlu1 %1421 }
 0x4a0   :  { %1381 = vst.msk [vmem:[#allocation3] sm:$0xff] %vm1380_vm0, %v1375_v55 }
 0x4a1   :  { %1426 = vst.msk [vmem:[#allocation3 + $0x28] sm:$0xff] %vm1342_vm5, %v1422_v10 }
 0x4a3   :  { %v1452_v36 = vpop.permute.xlu0 %1451  ;;  %v1350_v4 = vpop.permute.xlu1 %1349 }
 0x4a4   :  { %1457 = vst.msk [vmem:[#allocation3 + $0x8] sm:$0xff] %vm1380_vm0, %v1452_v36 }
 0x4a5   :  { %1355 = vst.msk [vmem:[#allocation3 + $0x20] sm:$0xff] %vm1353_vm8, %v1350_v4 }
 0x4a7   :  { %v1509_v5 = vpop.permute.xlu0 %1508  ;;  %v1430_v24 = vpop.permute.xlu1 %1429 }
 0x4a8   :  { %1514 = vst.msk [vmem:[#allocation3 + $0x10] sm:$0xff] %vm1362_vm9, %v1509_v5 }
 0x4a9   :  { %1434 = vst.msk [vmem:[#allocation3 + $0x28] sm:$0xff] %vm1353_vm8, %v1430_v24 }
 0x4ab   :  { %v1519_v58 = vpop.permute.xlu0 %1518  ;;  %v1359_v56 = vpop.permute.xlu1 %1358 }
 0x4ac   :  { %v1527_v53 = vsel %vm1526_vm2, %v1519_v58, %v1521_v15  ;;  %1364 = vst.msk [vmem:[#allocation3 + $0x20] sm:$0xff] %vm1362_vm9, %v1359_v56 }
 0x4ad   :  { %1531 = vst.msk [vmem:[#allocation3 + $0x10] sm:$0xff] %vm1371_vm10, %v1527_v53 }
 0x4af   :  { %v1566_v42 = vpop.permute.xlu0 %1565  ;;  %v1438_v47 = vpop.permute.xlu1 %1437 }
 0x4b0   :  { %1571 = vst.msk [vmem:[#allocation3 + $0x18] sm:$0xff] %vm1342_vm5, %v1566_v42 }
 0x4b1   :  { %1442 = vst.msk [vmem:[#allocation3 + $0x28] sm:$0xff] %vm1362_vm9, %v1438_v47 }
 0x4b3   :  { %v1384_v0 = vpop.permute.xlu0 %1383  ;;  %v1495_v22 = vpop.permute.xlu1 %1494 }
 0x4b4   :  { %1390 = vst.msk [vmem:[#allocation3] sm:$0xff] %vm1389_vm3, %v1384_v0 }
 0x4b5   :  { %1499 = vst.msk [vmem:[#allocation3 + $0x30] sm:$0xff] %vm1342_vm5, %v1495_v22 }
 0x4b7   :  { %v1460_v40 = vpop.permute.xlu0 %1459  ;;  %v1368_v41 = vpop.permute.xlu1 %1367 }
 0x4b8   :  { %1465 = vst.msk [vmem:[#allocation3 + $0x8] sm:$0xff] %vm1389_vm3, %v1460_v40 }
 0x4b9   :  { %1373 = vst.msk [vmem:[#allocation3 + $0x20] sm:$0xff] %vm1371_vm10, %v1368_v41 }
 0x4bb   :  { %v1470_v26 = vpop.permute.xlu0 %1469  ;;  %v1446_v45 = vpop.permute.xlu1 %1445 }
 0x4bc   :  { %v1478_v9 = vsel %vm1477_vm6, %v1470_v26, %v3638_v32  ;;  %1450 = vst.msk [vmem:[#allocation3 + $0x28] sm:$0xff] %vm1371_vm10, %v1446_v45  ;;  %v3979_v26 = vld [vmem:[#allocation9_spill] sm:$0xff] }
 0x4bd   :  { %1482 = vst.msk [vmem:[#allocation3 + $0x8] sm:$0xff] %vm1398_vm11, %v1478_v9 }
 0x4bf   :  { %v1574_v44 = vpop.permute.xlu0 %1573  ;;  %v1503_v52 = vpop.permute.xlu1 %1502 }
 0x4c0   :  { %1579 = vst.msk [vmem:[#allocation3 + $0x18] sm:$0xff] %vm1353_vm8, %v1574_v44  ;;  %1507 = vst.msk [vmem:[#allocation3 + $0x30] sm:$0xff] %vm1353_vm8, %v1503_v52 }
 0x4c3   :  { %v1584_v31 = vpop.permute.xlu0 %1583  ;;  %v1377_v37 = vpop.permute.xlu1 %1376 }
 0x4c4   :  { %v1592_v7 = vsel %vm1591_vm12, %v1584_v31, %v3628_v8  ;;  %1382 = vst.msk [vmem:[#allocation3 + $0x20] sm:$0xff] %vm1380_vm0, %v1377_v37 }
 0x4c5   :  { %1596 = vst.msk [vmem:[#allocation3 + $0x18] sm:$0xff] %vm1362_vm9, %v1592_v7 }
 0x4c6   :  { %1604 = vst.msk [vmem:[#allocation3 + $0x18] sm:$0xff] %vm1371_vm10, %v3609_v13 }
 0x4c7   :  { %1612 = vst.msk [vmem:[#allocation3 + $0x18] sm:$0xff] %vm1380_vm0, %v3615_v14  ;;  %v1393_v1 = vpop.permute.xlu0 %1392  ;;  %v1454_v39 = vpop.permute.xlu1 %1453 }
 0x4c8   :  { %1620 = vst.msk [vmem:[#allocation3 + $0x18] sm:$0xff] %vm1389_vm3, %v3624_v62 }
 0x4c9   :  { %1399 = vst.msk [vmem:[#allocation3] sm:$0xff] %vm1398_vm11, %v1393_v1 }
 0x4ca   :  { %1458 = vst.msk [vmem:[#allocation3 + $0x28] sm:$0xff] %vm1380_vm0, %v1454_v39 }
 0x4cb   :  { %v1404_v29 = vpop.permute.xlu0 %1403  ;;  %v1511_v46 = vpop.permute.xlu1 %1510 }
 0x4cc   :  { %v1412_v43 = vsel %vm1411_vm14, %v1404_v29, %v3648_v33  ;;  %1515 = vst.msk [vmem:[#allocation3 + $0x30] sm:$0xff] %vm1362_vm9, %v1511_v46 }
 0x4cd   :  { %1417 = vst.msk [vmem:[#allocation3] sm:$0xff] %vm1416_vm1, %v1412_v43 }
 0x4cf   :  { %v1534_v27 = vpop.permute.xlu0 %1533  ;;  %v1525_v34 = vpop.permute.xlu1 %1524 }
 0x4d0   :  { %1539 = vst.msk [vmem:[#allocation3 + $0x10] sm:$0xff] %vm1380_vm0, %v1534_v27 }
 0x4d3   :  { %v1485_v25 = vpop.permute.xlu0 %1484  ;;  %v1568_v2 = vpop.permute.xlu1 %1567 }
 0x4d4   :  { %1490 = vst.msk [vmem:[#allocation3 + $0x8] sm:$0xff] %vm1416_vm1, %v1485_v25  ;;  %v1638_v28 = vld [vmem:[#allocation3] sm:$0xff] }
 0x4d5   :  { %1572 = vst.msk [vmem:[#allocation3 + $0x38] sm:$0xff] %vm1342_vm5, %v1568_v2 }
 0x4d7   :  { %v1542_v59 = vpop.permute.xlu0 %1541  ;;  %v1386_v21 = vpop.permute.xlu1 %1385 }
 0x4d8   :  { %1547 = vst.msk [vmem:[#allocation3 + $0x10] sm:$0xff] %vm1389_vm3, %v1542_v59  ;;  %1391 = vst.msk [vmem:[#allocation3 + $0x20] sm:$0xff] %vm1389_vm3, %v1386_v21 }
 0x4db   :  { %v1550_v18 = vpop.permute.xlu0 %1549  ;;  %v1462_v54 = vpop.permute.xlu1 %1461 }
 0x4dc   :  { %1555 = vst.msk [vmem:[#allocation3 + $0x10] sm:$0xff] %vm1398_vm11, %v1550_v18 }
 0x4dd   :  { %1466 = vst.msk [vmem:[#allocation3 + $0x28] sm:$0xff] %vm1389_vm3, %v1462_v54 }
 0x4df   :  { %v1558_v35 = vpop.permute.xlu0 %1557  ;;  %v1476_v57 = vpop.permute.xlu1 %1475 }
 0x4e0   :  { %1563 = vst.msk [vmem:[#allocation3 + $0x10] sm:$0xff] %vm1416_vm1, %v1558_v35 }
 0x4e3   :  { %v1523_v30 = vpop.permute.xlu0 %1522  ;;  %v1576_v50 = vpop.permute.xlu1 %1575 }
 0x4e4   :  { %v1528_v38 = vsel %vm1526_vm2, %v1523_v30, %v1525_v34  ;;  %1580 = vst.msk [vmem:[#allocation3 + $0x38] sm:$0xff] %vm1353_vm8, %v1576_v50  ;;  %vm1844_vm2 = vcmask 7168  }
 0x4e5   :  { %1532 = vst.msk [vmem:[#allocation3 + $0x30] sm:$0xff] %vm1371_vm10, %v1528_v38 }
 0x4e7   :  { %v1474_v16 = vpop.permute.xlu0 %1473  ;;  %v1395_v11 = vpop.permute.xlu1 %1394  ;;  %v1640_v33 = vld [vmem:[#allocation3 + $0x10] sm:$0xff] }
 0x4e8   :  { %v1479_v13 = vsel %vm1477_vm6, %v1474_v16, %v1476_v57  ;;  %1400 = vst.msk [vmem:[#allocation3 + $0x20] sm:$0xff] %vm1398_vm11, %v1395_v11  ;;  %v3739_v6 = vadd.f32 %v3978_v20, %v1640_v33 }
 0x4e9   :  { %1483 = vst.msk [vmem:[#allocation3 + $0x28] sm:$0xff] %vm1398_vm11, %v1479_v13 }
 0x4ea   :  { %v1678_v24 = vmul.f32 %v3739_v6, %v3739_v6 }
 0x4eb   :  { %v1588_v14 = vpop.permute.xlu0 %1587  ;;  %v1625_v62 = vpop.permute.xlu1 %1624 }
 0x4ec   :  { %v1593_v8 = vsel %vm1591_vm12, %v1588_v14, %v3644_v49  ;;  %v1639_v49 = vld [vmem:[#allocation3 + $0x8] sm:$0xff] }
 0x4ed   :  { %1597 = vst.msk [vmem:[#allocation3 + $0x38] sm:$0xff] %vm1362_vm9, %v1593_v8 }
 0x4ee   :  { %1605 = vst.msk [vmem:[#allocation3 + $0x38] sm:$0xff] %vm1371_vm10, %v3652_v3  ;;  %v3732_v3 = vadd.f32 %v3978_v20, %v1639_v49 }
 0x4ef   :  { %1613 = vst.msk [vmem:[#allocation3 + $0x38] sm:$0xff] %vm1380_vm0, %v3657_v19  ;;  %v1408_v48 = vpop.permute.xlu0 %1407  ;;  %v1410_v12 = vpop.permute.xlu1 %1409  ;;  %v3736_v19 = vadd.f32 %v3978_v20, %v1638_v28  ;;  %v3981_v28 = vmov 0  }
 0x4f0   :  { %1621 = vst.msk [vmem:[#allocation3 + $0x38] sm:$0xff] %vm1389_vm3, %v3661_v61  ;;  %v1413_v15 = vsel %vm1411_vm14, %v1408_v48, %v1410_v12  ;;  %v1677_v17 = vmul.f32 %v3732_v3, %v3732_v3  ;;  %v2355_v12 = vld [vmem:[%s3911_s4] sm:$0xff] }
 0x4f1   :  { %1629 = vst.msk [vmem:[#allocation3 + $0x38] sm:$0xff] %vm1398_vm11, %v1625_v62  ;;  %v1666_v61 = vadd.f32 %v3732_v3, %v3736_v19  ;;  %v1676_v5 = vmul.f32 %v3736_v19, %v3736_v19 }
 0x4f2   :  { %1418 = vst.msk [vmem:[#allocation3 + $0x20] sm:$0xff] %vm1416_vm1, %v1413_v15 }
 0x4f3   :  { %v1623_v60 = vpop.permute.xlu0 %1622  ;;  %v1536_v63 = vpop.permute.xlu1 %1535  ;;  %v1667_v4 = vadd.f32 %v1666_v61, %v3739_v6  ;;  %v1684_v53 = vadd.f32 %v1677_v17, %v1676_v5 }
 0x4f4   :  { %1628 = vst.msk [vmem:[#allocation3 + $0x18] sm:$0xff] %vm1398_vm11, %v1623_v60 }
 0x4f5   :  { %1540 = vst.msk [vmem:[#allocation3 + $0x30] sm:$0xff] %vm1380_vm0, %v1536_v63  ;;  %v1685_v47 = vadd.f32 %v1684_v53, %v1678_v24  ;;  %v3980_v63 = vmov 2  }
 0x4f7   :  { %v1631_v32 = vpop.permute.xlu0 %1630  ;;  %v1487_v51 = vpop.permute.xlu1 %1486 }
 0x4f8   :  { %1636 = vst.msk [vmem:[#allocation3 + $0x18] sm:$0xff] %vm1416_vm1, %v1631_v32  ;;  %1491 = vst.msk [vmem:[#allocation3 + $0x28] sm:$0xff] %vm1416_vm1, %v1487_v51  ;;  %v2356_v32 = vld [vmem:[%s3911_s4 + $0x8] sm:$0xff] }
 0x4f9   :  { %v1642_v41 = vld [vmem:[#allocation3 + $0x20] sm:$0xff] }
 0x4fa   :  { %v3763_v9 = vadd.f32 %v3979_v26, %v1642_v41 }
 0x4fb   :  { %v1544_v23 = vpop.permute.xlu1 %1543 }
 0x4fc   :  { %1548 = vst.msk [vmem:[#allocation3 + $0x30] sm:$0xff] %vm1389_vm3, %v1544_v23  ;;  %v1680_v7 = vmul.f32 %v3763_v9, %v3763_v9  ;;  %vm1865_vm3 = vcmask 15360  }
 0x4ff   :  { %v1552_v55 = vpop.permute.xlu1 %1551  ;;  %v1641_v10 = vld [vmem:[#allocation3 + $0x18] sm:$0xff]  ;;  %v1643_v0 = vld [vmem:[#allocation3 + $0x28] sm:$0xff] }
 0x500   :  { %1556 = vst.msk [vmem:[#allocation3 + $0x30] sm:$0xff] %vm1398_vm11, %v1552_v55  ;;  %v3747_v36 = vadd.f32 %v3978_v20, %v1641_v10  ;;  %v3760_v45 = vadd.f32 %v3979_v26, %v1643_v0 }
 0x502   :  { %v1668_v58 = vadd.f32 %v1667_v4, %v3747_v36  ;;  %v1679_v56 = vmul.f32 %v3747_v36, %v3747_v36  ;;  %v1681_v31 = vmul.f32 %v3760_v45, %v3760_v45  ;;  %v1671_v37 = vadd.f32 %v3760_v45, %v3763_v9 }
 0x503   :  { %v1560_v42 = vpop.permute.xlu1 %1559 }
 0x504   :  { %1564 = vst.msk [vmem:[#allocation3 + $0x30] sm:$0xff] %vm1416_vm1, %v1560_v42  ;;  %1669 = vadd.xlane.f32.xlu0 %v1668_v58  ;;  %v1686_v22 = vadd.f32 %v1685_v47, %v1679_v56  ;;  %v1689_v43 = vadd.f32 %v1681_v31, %v1680_v7 }
 0x507   :  { %v1633_v40 = vpop.permute.xlu1 %1632 }
 0x508   :  { %1637 = vst.msk [vmem:[#allocation3 + $0x38] sm:$0xff] %vm1416_vm1, %v1633_v40  ;;  %1687 = vadd.xlane.f32.xlu0 %v1686_v22 }
 0x50b   :  { %v1644_v44 = vld [vmem:[#allocation3 + $0x30] sm:$0xff] }
 0x50c   :  { %v3766_v52 = vadd.f32 %v3979_v26, %v1644_v44 }
 0x50e   :  { %v1682_v1 = vmul.f32 %v3766_v52, %v3766_v52  ;;  %v1672_v46 = vadd.f32 %v1671_v37, %v3766_v52 }
 0x50f   :  { %v1645_v39 = vld [vmem:[#allocation3 + $0x38] sm:$0xff] }
 0x510   :  { %v3777_v29 = vadd.f32 %v3979_v26, %v1645_v39  ;;  %v1690_v25 = vadd.f32 %v1689_v43, %v1682_v1 }
 0x512   :  { %v1673_v27 = vadd.f32 %v1672_v46, %v3777_v29  ;;  %v1683_v34 = vmul.f32 %v3777_v29, %v3777_v29 }
 0x514   :  { %1674 = vadd.xlane.f32.xlu1 %v1673_v27  ;;  %v1691_v2 = vadd.f32 %v1690_v25, %v1683_v34 }
 0x516   :  { %1692 = vadd.xlane.f32.xlu0 %v1691_v2 }
 0x591   :  { %v1670_v59 = vpop.xlane.xlu0 %1669 }
 0x592   :  { %v1694_v21 = vmul.f32 0.001953125, %v1670_v59 }
 0x594   :  { %v1698_v54 = vmul.f32 %v1694_v21, %v1694_v21  ;;  %v1704_v20 = vsub.f32 %v3736_v19, %v1694_v21  ;;  %v1705_v23 = vsub.f32 %v3732_v3, %v1694_v21  ;;  %v1706_v61 = vsub.f32 %v3739_v6, %v1694_v21 }
 0x595   :  { %v1688_v18 = vpop.xlane.xlu0 %1687  ;;  %v1707_v17 = vsub.f32 %v3747_v36, %v1694_v21 }
 0x596   :  { %v1696_v35 = vmul.f32 0.001953125, %v1688_v18 }
 0x598   :  { %v1700_v57 = vsub.f32 %v1696_v35, %v1698_v54 }
 0x59a   :  { %v1702_v30 = vmax.f32 %v1700_v57, 0.0 }
 0x59c   :  { %v1712_v50 = vadd.f32 1e-05, %v1702_v30 }
 0x59e   :  { %2289 = vrsqrt.f32 %v1712_v50 }
 0x5a1   :  { %v1675_v38 = vpop.xlane.xlu1 %1674 }
 0x5a2   :  { %v1695_v16 = vmul.f32 0.001953125, %v1675_v38 }
 0x5a3   :  { %v1693_v11 = vpop.xlane.xlu0 %1692 }
 0x5a4   :  { %v1697_v13 = vmul.f32 0.001953125, %v1693_v11  ;;  %v1699_v14 = vmul.f32 %v1695_v16, %v1695_v16  ;;  %v1708_v37 = vsub.f32 %v3763_v9, %v1695_v16  ;;  %v1709_v7 = vsub.f32 %v3760_v45, %v1695_v16 }
 0x5a5   :  { %v1710_v1 = vsub.f32 %v3766_v52, %v1695_v16  ;;  %v1711_v39 = vsub.f32 %v3777_v29, %v1695_v16 }
 0x5a6   :  { %v1701_v62 = vsub.f32 %v1697_v13, %v1699_v14 }
 0x5a8   :  { %v2290_v8 = vpop.eup %2289  ;;  %v1703_v48 = vmax.f32 %v1701_v62, 0.0 }
 0x5a9   :  { %v1716_v15 = vmul.f32 %v2355_v12, %v2290_v8 }
 0x5aa   :  { %v1713_v60 = vadd.f32 1e-05, %v1703_v48 }
 0x5ab   :  { %1720 = vperm.xlu1 %2242, %v1716_v15  }
 0x5ac   :  { %2291 = vrsqrt.f32 %v1713_v60 }
 0x5af   :  { %2244 = vset.pattern.permute.xlu1 %v3980_v63 }
 0x5b0   :  { %1737 = vperm.xlu1 %2244, %v2355_v12  }
 0x5b4   :  { %1741 = vperm.xlu1 %2244, %v2356_v32  }
 0x5b6   :  { %v2292_v51 = vpop.eup %2291 }
 0x5b7   :  { %v1717_v49 = vmul.f32 %v2356_v32, %v2292_v51 }
 0x5b8   :  { %2245 = vset.pattern.permute.xlu1 %v3981_v28 }
 0x5b9   :  { %1725 = vperm.xlu0 %2243, %v1717_v49  }
 0x5bd   :  { %2246 = vset.pattern.permute.xlu0 %v3981_v28 }
 0x62a   :  { %v1721_v33 = vpop.permute.xlu1 %1720 }
 0x62b   :  { %v1728_v55 = vmul.f32 %v1721_v33, %v1704_v20  ;;  %v1729_v10 = vmul.f32 %v1721_v33, %v1705_v23  ;;  %v1730_v4 = vmul.f32 %v1721_v33, %v1706_v61  ;;  %v1731_v5 = vmul.f32 %v1721_v33, %v1707_v17 }
 0x62f   :  { %v1738_v24 = vpop.permute.xlu1 %1737 }
 0x630   :  { %v3796_v58 = vadd.f32 %v1738_v24, %v1728_v55  ;;  %v3798_v56 = vadd.f32 %v1738_v24, %v1729_v10  ;;  %v3800_v53 = vadd.f32 %v1738_v24, %v1730_v4  ;;  %v3802_v42 = vadd.f32 %v1738_v24, %v1731_v5 }
 0x632   :  { %v1752_v19 = vand.u32 2147483647, %v3796_v58  ;;  %v1753_v3 = vand.u32 2147483647, %v3798_v56  ;;  %v1754_v6 = vand.u32 2147483647, %v3800_v53 }
 0x633   :  { %v1755_v36 = vand.u32 2147483647, %v3802_v42  ;;  %v1742_v25 = vpop.permute.xlu1 %1741  ;;  %vm1800_vm4 = vcmp.ge.f32.partialorder %v3796_v58, 0.0  ;;  %vm1801_vm7 = vcmp.ge.f32.partialorder %v3798_v56, 0.0  ;;  %vm1802_vm13 = vcmp.ge.f32.partialorder %v3800_v53, 0.0 }
 0x634   :  { %v1760_v47 = vsub.f32 0.0, %v1752_v19  ;;  %v1761_v0 = vsub.f32 0.0, %v1753_v3  ;;  %v1762_v22 = vsub.f32 0.0, %v1754_v6  ;;  %vm1803_vm15 = vcmp.ge.f32.partialorder %v3802_v42, 0.0 }
 0x635   :  { %v1763_v40 = vsub.f32 0.0, %v1755_v36 }
 0x636   :  { %v1768_v41 = vmul.f32 1.442695, %v1760_v47  ;;  %v1770_v26 = vmul.f32 1.442695, %v1761_v0  ;;  %v1772_v44 = vmul.f32 1.442695, %v1762_v22 }
 0x637   :  { %v1774_v31 = vmul.f32 1.442695, %v1763_v40 }
 0x638   :  { %2293 = vpow2.f32 %v1768_v41  ;;  %v1726_v46 = vpop.permute.xlu0 %1725 }
 0x639   :  { %2295 = vpow2.f32 %v1770_v26  ;;  %v1732_v43 = vmul.f32 %v1726_v46, %v1708_v37  ;;  %v1733_v27 = vmul.f32 %v1726_v46, %v1709_v7  ;;  %v1734_v34 = vmul.f32 %v1726_v46, %v1710_v1 }
 0x63a   :  { %2297 = vpow2.f32 %v1772_v44  ;;  %v1735_v2 = vmul.f32 %v1726_v46, %v1711_v39 }
 0x63b   :  { %2299 = vpow2.f32 %v1774_v31  ;;  %v3812_v59 = vadd.f32 %v1742_v25, %v1732_v43  ;;  %v3814_v21 = vadd.f32 %v1742_v25, %v1733_v27  ;;  %v3816_v9 = vadd.f32 %v1742_v25, %v1734_v34 }
 0x63c   :  { %v3818_v45 = vadd.f32 %v1742_v25, %v1735_v2 }
 0x63d   :  { %v1756_v52 = vand.u32 2147483647, %v3812_v59  ;;  %v1757_v29 = vand.u32 2147483647, %v3814_v21  ;;  %v1758_v18 = vand.u32 2147483647, %v3816_v9 }
 0x63e   :  { %v1759_v54 = vand.u32 2147483647, %v3818_v45  ;;  %vm1804_vm8 = vcmp.ge.f32.partialorder %v3812_v59, 0.0  ;;  %vm1805_vm9 = vcmp.ge.f32.partialorder %v3814_v21, 0.0  ;;  %vm1806_vm10 = vcmp.ge.f32.partialorder %v3816_v9, 0.0 }
 0x63f   :  { %v1764_v35 = vsub.f32 0.0, %v1756_v52  ;;  %v1765_v57 = vsub.f32 0.0, %v1757_v29  ;;  %v1766_v30 = vsub.f32 0.0, %v1758_v18  ;;  %vm1807_vm0 = vcmp.ge.f32.partialorder %v3818_v45, 0.0 }
 0x640   :  { %v1767_v50 = vsub.f32 0.0, %v1759_v54 }
 0x641   :  { %v1776_v38 = vmul.f32 1.442695, %v1764_v35  ;;  %v1778_v16 = vmul.f32 1.442695, %v1765_v57  ;;  %v1780_v11 = vmul.f32 1.442695, %v1766_v30 }
 0x642   :  { %v2294_v13 = vpop.eup %2293  ;;  %v1782_v14 = vmul.f32 1.442695, %v1767_v50  ;;  %v1852_v35 = vld [vmem:[%s3913_s6 + $0x8] sm:$0xff]  ;;  %v3982_v57 = vmov 1  }
 0x643   :  { %v2296_v62 = vpop.eup %2295  ;;  %v1784_v8 = vadd.f32 1.0, %v2294_v13  ;;  %2301 = vpow2.f32 %v1776_v38 }
 0x644   :  { %v2298_v48 = vpop.eup %2297  ;;  %v1785_v12 = vadd.f32 1.0, %v2296_v62  ;;  %2303 = vpow2.f32 %v1778_v16 }
 0x645   :  { %v2300_v15 = vpop.eup %2299  ;;  %v1786_v60 = vadd.f32 1.0, %v2298_v48  ;;  %2305 = vpow2.f32 %v1780_v11 }
 0x646   :  { %v1787_v63 = vadd.f32 1.0, %v2300_v15  ;;  %2307 = vpow2.f32 %v1782_v14 }
 0x647   :  { %2309 = vrcp.f32 %v1784_v8 }
 0x648   :  { %2311 = vrcp.f32 %v1785_v12 }
 0x649   :  { %2313 = vrcp.f32 %v1786_v60 }
 0x64a   :  { %2315 = vrcp.f32 %v1787_v63 }
 0x64d   :  { %v2302_v32 = vpop.eup %2301 }
 0x64e   :  { %v2304_v51 = vpop.eup %2303  ;;  %v1788_v49 = vadd.f32 1.0, %v2302_v32 }
 0x64f   :  { %v2306_v33 = vpop.eup %2305  ;;  %v1789_v20 = vadd.f32 1.0, %v2304_v51 }
 0x650   :  { %v2308_v23 = vpop.eup %2307  ;;  %v1790_v61 = vadd.f32 1.0, %v2306_v33  ;;  %2317 = vrcp.f32 %v1788_v49 }
 0x651   :  { %v2310_v17 = vpop.eup %2309  ;;  %v1791_v55 = vadd.f32 1.0, %v2308_v23  ;;  %2319 = vrcp.f32 %v1789_v20 }
 0x652   :  { %v2312_v10 = vpop.eup %2311  ;;  %v1808_v4 = vmul.f32 %v2310_v17, %v2294_v13  ;;  %2321 = vrcp.f32 %v1790_v61 }
 0x653   :  { %v2314_v5 = vpop.eup %2313  ;;  %v1809_v24 = vmul.f32 %v2312_v10, %v2296_v62  ;;  %2323 = vrcp.f32 %v1791_v55 }
 0x654   :  { %v2316_v19 = vpop.eup %2315  ;;  %v1816_v3 = vsel %vm1800_vm4, %v2310_v17, %v1808_v4  ;;  %v1810_v6 = vmul.f32 %v2314_v5, %v2298_v48 }
 0x655   :  { %v1817_v36 = vsel %vm1801_vm7, %v2312_v10, %v1809_v24  ;;  %v3827_v47 = vmul.f32 %v1816_v3, %v3796_v58  ;;  %v1811_v0 = vmul.f32 %v2316_v19, %v2300_v15 }
 0x656   :  { %v3831_v22 = vmul.f32 %v1817_v36, %v3798_v56  ;;  %v1818_v40 = vsel %vm1802_vm13, %v2314_v5, %v1810_v6 }
 0x657   :  { %v1819_v41 = vsel %vm1803_vm15, %v2316_v19, %v1811_v0  ;;  %v3837_v44 = vmul.f32 %v1818_v40, %v3800_v53 }
 0x658   :  { %v1832_v26 = vadd.f32 %v3831_v22, %v3827_v47  ;;  %v3840_v31 = vmul.f32 %v1819_v41, %v3802_v42 }
 0x65a   :  { %v2318_v58 = vpop.eup %2317  ;;  %1833 = vadd.xlane.f32.xlu1 %v1832_v26  ;;  %v1838_v56 = vadd.f32 %v3840_v31, %v3837_v44 }
 0x65b   :  { %v2320_v37 = vpop.eup %2319  ;;  %v1812_v7 = vmul.f32 %v2318_v58, %v2302_v32 }
 0x65c   :  { %v2322_v1 = vpop.eup %2321  ;;  %v1813_v39 = vmul.f32 %v2320_v37, %v2304_v51 }
 0x65d   :  { %v2324_v46 = vpop.eup %2323  ;;  %v1814_v43 = vmul.f32 %v2322_v1, %v2306_v33  ;;  %v1820_v53 = vsel %vm1804_vm8, %v2318_v58, %v1812_v7 }
 0x65e   :  { %1839 = vadd.xlane.f32.xlu1 %v1838_v56  ;;  %v1815_v42 = vmul.f32 %v2324_v46, %v2308_v23  ;;  %v1821_v27 = vsel %vm1805_vm9, %v2320_v37, %v1813_v39  ;;  %v3848_v34 = vmul.f32 %v1820_v53, %v3812_v59 }
 0x65f   :  { %v1822_v25 = vsel %vm1806_vm10, %v2322_v1, %v1814_v43  ;;  %v3852_v2 = vmul.f32 %v1821_v27, %v3814_v21  ;;  %v1849_v21 = vld [vmem:[%s3912_s5] sm:$0xff] }
 0x660   :  { %v1823_v52 = vsel %vm1807_vm0, %v2324_v46, %v1815_v42  ;;  %v3855_v29 = vmul.f32 %v1822_v25, %v3816_v9  ;;  %v1850_v9 = vld [vmem:[%s3912_s5 + $0x8] sm:$0xff] }
 0x661   :  { %v3858_v18 = vmul.f32 %v1823_v52, %v3818_v45  ;;  %v1835_v54 = vadd.f32 %v3852_v2, %v3848_v34  ;;  %v1851_v45 = vld [vmem:[%s3913_s6] sm:$0xff] }
 0x663   :  { %v1841_v59 = vadd.f32 %v3858_v18, %v3855_v29  ;;  %1836 = vadd.xlane.f32.xlu0 %v1835_v54 }
 0x665   :  { %1842 = vadd.xlane.f32.xlu1 %v1841_v59 }
 0x676   :  { %1855 = vperm.xlu1 %2245, %v1849_v21  }
 0x679   :  { %1860 = vperm.xlu0 %2246, %v1850_v9  }
 0x67a   :  { %1887 = vperm.xlu1 %2245, %v1851_v45  }
 0x67d   :  { %2249 = vset.pattern.permute.xlu0 %v3982_v57 }
 0x67e   :  { %1892 = vperm.xlu1 %2245, %v1852_v35  }
 0x6e7   :  { %v1834_v30 = vpop.xlane.xlu1 %1833 }
 0x6eb   :  { %v1840_v50 = vpop.xlane.xlu1 %1839 }
 0x6ec   :  { %v1845_v16 = vsel %vm1844_vm2, %v1834_v30, %v1840_v50 }
 0x6ed   :  { %v1847_v14 = vmul.f32 0.00390625, %v1845_v16 }
 0x6f0   :  { %v1837_v38 = vpop.xlane.xlu0 %1836 }
 0x6f2   :  { %v1843_v11 = vpop.xlane.xlu1 %1842 }
 0x6f3   :  { %v1846_v13 = vsel %vm1844_vm2, %v1837_v38, %v1843_v11 }
 0x6f4   :  { %v1848_v8 = vmul.f32 0.00390625, %v1846_v13 }
 0x6f6   :  { %v1856_v62 = vpop.permute.xlu1 %1855 }
 0x6f7   :  { %v1863_v48 = vmul.f32 %v1856_v62, %v1847_v14 }
 0x6f8   :  { %v1861_v12 = vpop.permute.xlu0 %1860 }
 0x6f9   :  { %v1864_v15 = vmul.f32 %v1861_v12, %v1848_v8  ;;  %v1866_v60 = vsel %vm1865_vm3, %v1863_v48, 0.0 }
 0x6fa   :  { %v1888_v24 = vpop.permute.xlu1 %1887 }
 0x6fb   :  { %v1867_v63 = vsel %vm1865_vm3, %v1864_v15, 0.0 }
 0x6fc   :  { %v1868_v32 = vadd.f32 %v1867_v63, %v1866_v60 }
 0x6fe   :  { %v1869_v51 = vrot.slane %v1868_v32, 4  ;;  %v1893_v0 = vpop.permute.xlu1 %1892 }
 0x700   :  { %v1870_v49 = vadd.f32 %v1869_v51, %v1868_v32 }
 0x702   :  { %v1871_v33 = vrot.slane %v1870_v49, 2 }
 0x704   :  { %v1872_v20 = vadd.f32 %v1871_v33, %v1870_v49 }
 0x706   :  { %v1873_v23 = vrot.slane %v1872_v20, 1 }
 0x708   :  { %v1874_v61 = vadd.f32 %v1873_v23, %v1872_v20 }
 0x70a   :  { %v1875_v17 = vand.u32 2147483647, %v1874_v61  ;;  %vm1881_vm6 = vcmp.ge.f32.partialorder %v1874_v61, 0.0 }
 0x70c   :  { %v1876_v55 = vsub.f32 0.0, %v1875_v17  ;;  %v2033_v17 = vld [vmem:[%s3915_s8] sm:$0xff]  ;;  %s2457_s8 = smov [#allocation4]  }
 0x70d   :  { %s2128_s11 = sshll.u32 %s2457_s8, 4  ;;  %s2129_s11 = int_to_ptr.vmem [resolvable:$true] %s2128_s11 }
 0x70e   :  { %v1877_v10 = vmul.f32 1.442695, %v1876_v55  ;;  %s2357_s12 = scalar_lea.vmem %s2129_s11, 512  ;;  %p2362_p1 = scmp.lt.s32.totalorder %s2129_s11, %s2129_s11 }
 0x70f   :  { %p2358_p0 = scmp.ne.s32.totalorder %s2129_s11, %s2357_s12  ;;  %p2363_p2 = scmp.lt.s32.totalorder %s2357_s12, %s2357_s12 }
 0x710   :  { %2325 = vpow2.f32 %v1877_v10 }
 0x711   :  { %p2364_p3 = por %p2363_p2, %p2362_p1 }
 0x713   :  { %p2365_p4 = pnand %p2364_p3, %p2358_p0 }
 0x71a   :  { %v2326_v4 = vpop.eup %2325 }
 0x71b   :  { %v1879_v5 = vadd.f32 1.0, %v2326_v4 }
 0x71d   :  { %2327 = vrcp.f32 %v1879_v5 }
 0x727   :  { %v2328_v19 = vpop.eup %2327 }
 0x728   :  { %v1882_v3 = vmul.f32 %v2328_v19, %v2326_v4 }
 0x72a   :  { %v1883_v6 = vsel %vm1881_vm6, %v2328_v19, %v1882_v3 }
 0x72b   :  { %v1884_v36 = vmul.f32 %v1883_v6, %v1874_v61 }
 0x72d   :  { %v1895_v40 = vmul.f32 %v1888_v24, %v1884_v36  ;;  %v1896_v41 = vmul.f32 %v1893_v0, %v1884_v36 }
 0x72f   :  { %v1899_v26 = vand.u32 2147483647, %v1895_v40  ;;  %v1900_v58 = vand.u32 2147483647, %v1896_v41  ;;  %vm1911_vm11 = vcmp.ge.f32.partialorder %v1895_v40, 0.0  ;;  %vm1912_vm12 = vcmp.ge.f32.partialorder %v1896_v41, 0.0 }
 0x731   :  { %v1901_v37 = vsub.f32 0.0, %v1899_v26  ;;  %v1902_v7 = vsub.f32 0.0, %v1900_v58 }
 0x733   :  { %v1903_v1 = vmul.f32 1.442695, %v1901_v37  ;;  %v1905_v56 = vmul.f32 1.442695, %v1902_v7 }
 0x735   :  { %2329 = vpow2.f32 %v1903_v1 }
 0x736   :  { %2331 = vpow2.f32 %v1905_v56 }
 0x73f   :  { %v2330_v39 = vpop.eup %2329 }
 0x740   :  { %v2332_v46 = vpop.eup %2331  ;;  %v1907_v43 = vadd.f32 1.0, %v2330_v39 }
 0x741   :  { %v1908_v53 = vadd.f32 1.0, %v2332_v46 }
 0x742   :  { %2333 = vrcp.f32 %v1907_v43 }
 0x743   :  { %2335 = vrcp.f32 %v1908_v53 }
 0x74c   :  { %v2334_v42 = vpop.eup %2333 }
 0x74d   :  { %v2336_v27 = vpop.eup %2335  ;;  %v1913_v25 = vmul.f32 %v2334_v42, %v2330_v39 }
 0x74e   :  { %v1914_v54 = vmul.f32 %v2336_v27, %v2332_v46 }
 0x74f   :  { %v1915_v52 = vsel %vm1911_vm11, %v2334_v42, %v1913_v25 }
 0x750   :  { %1919 = vperm.xlu1 %2245, %v1915_v52   ;;  %v1916_v59 = vsel %vm1912_vm12, %v2336_v27, %v1914_v54 }
 0x754   :  { %1924 = vperm.xlu1 %2245, %v1916_v59  }
 0x758   :  { %2247 = vset.pattern.permute.xlu1 %v3982_v57  ;;  %v1943_v57 = vld [vmem:[%s3914_s7] sm:$0xf] }
 0x759   :  { %1932 = vperm.xlu1 %2247, %v1915_v52  }
 0x75d   :  { %1936 = vperm.xlu1 %2247, %v1916_v59  }
 0x761   :  { %2248 = vset.pattern.permute.xlu1 %v3981_v28 }
 0x7cf   :  { %v1920_v21 = vpop.permute.xlu1 %1919 }
 0x7d0   :  { %v1927_v45 = vmul.f32 %v1920_v21, %v3827_v47  ;;  %v1928_v35 = vmul.f32 %v1920_v21, %v3831_v22 }
 0x7d3   :  { %v1925_v9 = vpop.permute.xlu1 %1924 }
 0x7d4   :  { %v1929_v30 = vmul.f32 %v1925_v9, %v3848_v34  ;;  %v1930_v50 = vmul.f32 %v1925_v9, %v3852_v2 }
 0x7d6   :  { %v1944_v38 = vpack.c.bf16 %v1929_v30, %v1927_v45  ;;  %v1945_v16 = vpack.c.bf16 %v1930_v50, %v1928_v35 }
 0x7d8   :  { %1951 = vmatprep.subr.bf16.mxu0 %v1945_v16  ;;  %v1933_v11 = vpop.permute.xlu1 %1932 }
 0x7d9   :  { %1952 = vmatpush1.bf16.msra.mxu0 %v1944_v38  ;;  %v1939_v47 = vmul.f32 %v1933_v11, %v3837_v44  ;;  %v1940_v22 = vmul.f32 %v1933_v11, %v3840_v31 }
 0x7dc   :  { %v1937_v28 = vpop.permute.xlu1 %1936  ;;  %2145 = vmatmul.mubr.msk.bf16.vlgmr.msra.gmra.mrb[4].mxu0 %vm1342_vm5, %v1943_v57 }
 0x7dd   :  { %v1941_v34 = vmul.f32 %v1937_v28, %v3855_v29  ;;  %v1942_v2 = vmul.f32 %v1937_v28, %v3858_v18 }
 0x7df   :  { %v1946_v13 = vpack.c.bf16 %v1941_v34, %v1939_v47  ;;  %v1947_v14 = vpack.c.bf16 %v1942_v2, %v1940_v22 }
 0x7e1   :  { %1992 = vmatprep.subr.bf16.mxu1 %v1947_v14 }
 0x7e2   :  { %1993 = vmatpush1.bf16.msra.mxu1 %v1946_v13 }
 0x7e5   :  { %2146 = vmatmul.mubr.msk.bf16.vlgmr.msra.gmra.mrb[4].mxu1 %vm1342_vm5, %v1943_v57 }
 0x8af   :  { %v1985_v62 = vpop.f32.mrb[4].mxu0 }
 0x8b0   :  { %v2039_v8 = vmul.f32 %v1985_v62, %v1985_v62  ;;  %v1987_v48 = vpop.f32.mrb[5].mxu0 }
 0x8b1   :  { %v2034_v12 = vadd.f32 %v1987_v48, %v1985_v62  ;;  %v2040_v15 = vmul.f32 %v1987_v48, %v1987_v48  ;;  %v1989_v60 = vpop.f32.mrb[6].mxu0 }
 0x8b2   :  { %v1990_v63 = vpop.f32.mrb[7].mxu0 }
 0x8b3   :  { %v2043_v44 = vadd.f32 %v2040_v15, %v2039_v8 }
 0x8b8   :  { %v2026_v32 = vpop.f32.mrb[4].mxu1 }
 0x8b9   :  { %v2035_v31 = vadd.f32 %v2034_v12, %v2026_v32  ;;  %v2041_v51 = vmul.f32 %v2026_v32, %v2026_v32  ;;  %v2028_v29 = vpop.f32.mrb[5].mxu1 }
 0x8ba   :  { %v2042_v49 = vmul.f32 %v2028_v29, %v2028_v29  ;;  %v2030_v18 = vpop.f32.mrb[6].mxu1 }
 0x8bb   :  { %v2044_v33 = vadd.f32 %v2043_v44, %v2041_v51  ;;  %v2036_v20 = vadd.f32 %v2035_v31, %v2028_v29  ;;  %v2031_v23 = vpop.f32.mrb[7].mxu1 }
 0x8bd   :  { %2037 = vadd.xlane.f32.xlu1 %v2036_v20  ;;  %v2045_v61 = vadd.f32 %v2044_v33, %v2042_v49 }
 0x8bf   :  { %2046 = vadd.xlane.f32.xlu0 %v2045_v61 }
 0x8d5   :  { %2071 = vperm.xlu0 %2249, %v2033_v17  }
 0x94a   :  { %v2038_v55 = vpop.xlane.xlu1 %2037 }
 0x94b   :  { %v2048_v10 = vmul.f32 0.001953125, %v2038_v55 }
 0x94c   :  { %v2047_v4 = vpop.xlane.xlu0 %2046 }
 0x94d   :  { %v2049_v5 = vmul.f32 0.001953125, %v2047_v4  ;;  %v2050_v24 = vmul.f32 %v2048_v10, %v2048_v10  ;;  %v2053_v19 = vsub.f32 %v1985_v62, %v2048_v10  ;;  %v2054_v3 = vsub.f32 %v1987_v48, %v2048_v10 }
 0x94e   :  { %v2055_v6 = vsub.f32 %v2026_v32, %v2048_v10  ;;  %v2056_v36 = vsub.f32 %v2028_v29, %v2048_v10 }
 0x94f   :  { %v2051_v0 = vsub.f32 %v2049_v5, %v2050_v24 }
 0x951   :  { %v2052_v40 = vmax.f32 %v2051_v0, 0.0 }
 0x953   :  { %v2057_v41 = vadd.f32 1e-05, %v2052_v40 }
 0x954   :  { %v2072_v7 = vpop.permute.xlu0 %2071 }
 0x955   :  { %2337 = vrsqrt.f32 %v2057_v41 }
 0x95f   :  { %v2338_v26 = vpop.eup %2337 }
 0x960   :  { %v2059_v58 = vmul.f32 %v2338_v26, %v2033_v17 }
 0x962   :  { %2062 = vperm.xlu1 %2248, %v2059_v58  }
 0x9e1   :  { %v2063_v37 = vpop.permute.xlu1 %2062 }
 0x9e2   :  { %v2065_v1 = vmul.f32 %v2063_v37, %v2053_v19  ;;  %v2066_v56 = vmul.f32 %v2063_v37, %v2054_v3  ;;  %v2067_v39 = vmul.f32 %v2063_v37, %v2055_v6  ;;  %v2068_v46 = vmul.f32 %v2063_v37, %v2056_v36 }
 0x9e4   :  { %v2074_v43 = vadd.f32 %v2072_v7, %v2065_v1  ;;  %v2075_v53 = vadd.f32 %v2072_v7, %v2066_v56  ;;  %v2076_v42 = vadd.f32 %v2072_v7, %v2067_v39  ;;  %v2077_v27 = vadd.f32 %v2072_v7, %v2068_v46 }
 0x9e6   :  { %v2078_v25 = vand.u32 2147483647, %v2074_v43  ;;  %v2079_v52 = vand.u32 2147483647, %v2075_v53  ;;  %v2080_v54 = vand.u32 2147483647, %v2076_v42 }
 0x9e7   :  { %v2081_v59 = vand.u32 2147483647, %v2077_v27  ;;  %vm2102_vm5 = vcmp.ge.f32.partialorder %v2074_v43, 0.0  ;;  %vm2103_vm14 = vcmp.ge.f32.partialorder %v2075_v53, 0.0  ;;  %vm2104_vm1 = vcmp.ge.f32.partialorder %v2076_v42, 0.0 }
 0x9e8   :  { %v2082_v21 = vsub.f32 0.0, %v2078_v25  ;;  %v2083_v9 = vsub.f32 0.0, %v2079_v52  ;;  %v2084_v45 = vsub.f32 0.0, %v2080_v54  ;;  %vm2105_vm4 = vcmp.ge.f32.partialorder %v2077_v27, 0.0 }
 0x9e9   :  { %v2085_v35 = vsub.f32 0.0, %v2081_v59 }
 0x9ea   :  { %v2086_v30 = vmul.f32 1.442695, %v2082_v21  ;;  %v2088_v50 = vmul.f32 1.442695, %v2083_v9  ;;  %v2090_v38 = vmul.f32 1.442695, %v2084_v45 }
 0x9eb   :  { %v2092_v16 = vmul.f32 1.442695, %v2085_v35 }
 0x9ec   :  { %2339 = vpow2.f32 %v2086_v30 }
 0x9ed   :  { %2341 = vpow2.f32 %v2088_v50 }
 0x9ee   :  { %2343 = vpow2.f32 %v2090_v38 }
 0x9ef   :  { %2345 = vpow2.f32 %v2092_v16 }
 0x9f6   :  { %v2340_v11 = vpop.eup %2339 }
 0x9f7   :  { %v2342_v57 = vpop.eup %2341  ;;  %v2094_v28 = vadd.f32 1.0, %v2340_v11 }
 0x9f8   :  { %v2344_v47 = vpop.eup %2343  ;;  %v2095_v22 = vadd.f32 1.0, %v2342_v57 }
 0x9f9   :  { %v2346_v34 = vpop.eup %2345  ;;  %v2096_v2 = vadd.f32 1.0, %v2344_v47  ;;  %2347 = vrcp.f32 %v2094_v28 }
 0x9fa   :  { %v2097_v13 = vadd.f32 1.0, %v2346_v34  ;;  %2349 = vrcp.f32 %v2095_v22 }
 0x9fb   :  { %2351 = vrcp.f32 %v2096_v2 }
 0x9fc   :  { %2353 = vrcp.f32 %v2097_v13 }
 0xa03   :  { %v2348_v14 = vpop.eup %2347 }
 0xa04   :  { %v2350_v62 = vpop.eup %2349  ;;  %v2106_v8 = vmul.f32 %v2348_v14, %v2340_v11 }
 0xa05   :  { %v2352_v48 = vpop.eup %2351  ;;  %v2107_v12 = vmul.f32 %v2350_v62, %v2342_v57 }
 0xa06   :  { %v2354_v15 = vpop.eup %2353  ;;  %v2108_v60 = vmul.f32 %v2352_v48, %v2344_v47  ;;  %v2110_v63 = vsel %vm2102_vm5, %v2348_v14, %v2106_v8 }
 0xa07   :  { %v2109_v44 = vmul.f32 %v2354_v15, %v2346_v34  ;;  %v2111_v32 = vsel %vm2103_vm14, %v2350_v62, %v2107_v12  ;;  %v2114_v31 = vmul.f32 %v2110_v63, %v2074_v43 }
 0xa08   :  { %v2112_v51 = vsel %vm2104_vm1, %v2352_v48, %v2108_v60  ;;  %v2115_v29 = vmul.f32 %v2111_v32, %v2075_v53 }
 0xa09   :  { %v2113_v49 = vsel %vm2105_vm4, %v2354_v15, %v2109_v44  ;;  %v2116_v18 = vmul.f32 %v2112_v51, %v2076_v42  ;;  %2118 = vst [vmem:[#allocation4] sm:$0xff] %v2114_v31 }
 0xa0a   :  { %v2117_v33 = vmul.f32 %v2113_v49, %v2077_v27  ;;  %2119 = vst [vmem:[#allocation4 + $0x8] sm:$0xff] %v2115_v29 }
 0xa0b   :  { %2121 = vst [vmem:[#allocation4 + $0x10] sm:$0xff] %v2116_v18 }
 0xa0c   :  { %2122 = vst [vmem:[#allocation4 + $0x18] sm:$0xff] %v2117_v33 }
 0xa0d   :  { %2368 = shalt.err (!%p2365_p4)
}
 0xa0e   :  { %s2369_s0 = scalar_lea.hbm %s3916_s9, 512 }
 0xa0f   :  { %p2370_p5 = scmp.ne.s32.totalorder %s3916_s9, %s2369_s0  ;;  %p2373_p6 = scmp.lt.u32.totalorder %s2369_s0, %s3916_s9 }
 0xa11   :  { %p2375_p7 = pnand %p2373_p6, %p2370_p5 }
 0xa13   :  { %2378 = shalt.err (!%p2375_p7)
}
 0xa14   :  { %s2458_s16 = smov 256   ;;  %s2459_s23 = smov 16  }
 0xa15   :  { %2134 = dma.vmem_to_hbm [thread:$0]  %s2129_s11, 512, %s3916_s9, [#allocation5], %s2458_s16, %s2458_s16, %s2459_s23  }
 0xa16   :  { %2379 = dma.done.wait [#allocation5], 512  }
 0xa17   :  { %2380 = vsyncadd [#allocation5], 4294966784 }
 0xa18   :  { %2138 = vsyncpa [#allocation5], 1 }

</bundles_post_ra>
